<compile_context>
chip_gen: v7x
topology: tpu7x:2x2x1
jax: 0.10.0
libtpu: 0.0.40
codegen_flags: <defaults>
</compile_context>

<pallas_src>
import functools

import jax
import jax.numpy as jnp
from jax import lax
from jax.experimental import pallas as pl
from jax.experimental.pallas import tpu as pltpu


def _topk_sum(loss_row, loss_col, k_min_f, *, tri_bf, ones_bf):
    """Sum of the k_min largest entries of the loss vector.

    loss_row: (1, N) lane-dense copy; loss_col: (N, 1) bitwise-identical copy.
    rank_i = #{j: loss_j > loss_i} + #{j < i: loss_j == loss_i} (exact, MXU
    reduce of a 0/1 bf16 matrix with f32 accumulation); the top-k sum is
    sum(loss_i * [rank_i < k_min]).  Returns (1, 1) f32.
    """
    gt = (loss_row > loss_col).astype(jnp.bfloat16)              # (N, N) 0/1
    cmp = jnp.where(loss_row == loss_col, tri_bf, gt)            # (N, N) bf16 0/1
    rank = jnp.dot(cmp, ones_bf, preferred_element_type=jnp.float32)[:, 0:1]
    sel = (rank < k_min_f).astype(jnp.float32)                   # (N, 1)
    return jnp.sum(loss_col * sel, axis=0, keepdims=True)        # (1, 1)


def _hard_mining_mse(k, t_rc, true_rc, pred_rc, topk):
    t_r, t_c = t_rc
    tr_r, tr_c = true_rc
    pr_r, pr_c = pred_rc
    n_pos = jnp.sum((t_r == 1.0).astype(jnp.int32), axis=1, keepdims=True)  # (1,1)
    # Flag t is 0 on padded lanes, so the padded loss is already exactly 0.
    loss_r = ((tr_r - pr_r) ** 2) * t_r
    loss_c = ((tr_c - pr_c) ** 2) * t_c
    k_min = jnp.minimum(k, n_pos)
    s = topk(loss_r, loss_c, k_min.astype(jnp.float32))
    denom = jnp.maximum(k_min, 1).astype(jnp.float32)
    return jnp.where(n_pos == 0, jnp.zeros_like(s), s / denom)              # (1,1)


def _hard_mining_entropy(k, t_rc, true_rc, logp_rc, log1mp_rc, valid_rc, topk):
    t_r, t_c = t_rc
    tr_r, tr_c = true_rc
    lp_r, lp_c = logp_rc
    lq_r, lq_c = log1mp_rc
    v_r, v_c = valid_rc
    # Padded lanes have t == 0; count negatives among VALID lanes only.
    n_neg = jnp.sum(jnp.logical_and(t_r == 0.0, v_r > 0.5).astype(jnp.int32),
                    axis=1, keepdims=True)                                   # (1,1)
    loss_r = (-(tr_r * lp_r + (1.0 - tr_r) * lq_r)) * (1.0 - t_r) * v_r
    loss_c = (-(tr_c * lp_c + (1.0 - tr_c) * lq_c)) * (1.0 - t_c) * v_c
    k_min = jnp.minimum(k, n_neg)
    s = topk(loss_r, loss_c, k_min.astype(jnp.float32))
    denom = jnp.maximum(k_min, 1).astype(jnp.float32)
    return jnp.where(n_neg == 0, jnp.zeros_like(s), s / denom)               # (1,1)


def _old_hard_mining_mse(k, n_true, true_rc, pred_rc, valid_rc, topk):
    tr_r, tr_c = true_rc
    pr_r, pr_c = pred_rc
    v_r, v_c = valid_rc
    loss_r = ((tr_r - pr_r) ** 2) * v_r
    loss_c = ((tr_c - pr_c) ** 2) * v_c
    k_min_f = jnp.minimum(k, n_true).astype(jnp.float32)   # n_true = real N (static)
    return topk(loss_r, loss_c, k_min_f) / k_min_f          # (1,1)


def _old_hard_mining_entropy(k, n_true, true_rc, logp_rc, log1mp_rc, valid_rc, topk):
    tr_r, tr_c = true_rc
    lp_r, lp_c = logp_rc
    lq_r, lq_c = log1mp_rc
    v_r, v_c = valid_rc
    loss_r = (-(tr_r * lp_r + (1.0 - tr_r) * lq_r)) * v_r
    loss_c = (-(tr_c * lp_c + (1.0 - tr_c) * lq_c)) * v_c
    k_min_f = jnp.minimum(k, n_true).astype(jnp.float32)
    return topk(loss_r, loss_c, k_min_f) / k_min_f          # (1,1)


def _attack_loss_kernel(k_ref, params_ref, row_ref, col_ref, out_ref, *,
                        n_true, is_targeted, use_old_loss):
    k = k_ref[0]                       # int32 scalar (SMEM)
    row = row_ref[...]                 # (8, N_pad) lane-dense slab
    col = col_ref[...]                 # (N_pad, 8) column-oriented copy (same bits)
    n_pad = row.shape[1]

    # (row, col) pairs — bitwise-identical values in both layouts.
    t_steer    = (row[0:1, :], col[:, 0:1])   # steer flag
    true_steer = (row[1:2, :], col[:, 1:2])   # steer ground truth
    t_coll     = (row[2:3, :], col[:, 2:3])   # coll flag
    true_coll  = (row[3:4, :], col[:, 3:4])   # coll ground truth
    st_pred    = (row[4:5, :], col[:, 4:5])   # steer prediction
    cl_pred    = (row[5:6, :], col[:, 5:6])   # coll prediction
    valid      = (row[6:7, :], col[:, 6:7])   # 1.0 for real samples, 0.0 for pad

    # Hoisted O(N^2) geometry, shared by every top-k call (JAX does not CSE
    # broadcasted iotas); tri is pre-materialized in the bf16 compute dtype.
    i_idx = lax.broadcasted_iota(jnp.int32, (n_pad, n_pad), 0)
    j_idx = lax.broadcasted_iota(jnp.int32, (n_pad, n_pad), 1)
    tri_bf = (j_idx < i_idx).astype(jnp.bfloat16)        # index tie-break (j < i)
    ones_bf = jnp.ones((n_pad, 128), jnp.bfloat16)       # lane-aligned MXU operand
    topk = functools.partial(_topk_sum, tri_bf=tri_bf, ones_bf=ones_bf)

    if is_targeted:
        steer_target = params_ref[0]
        coll_target = params_ref[1]
        beta = params_ref[2]
        balance_steer, balance_coll = 10.0, 10.0
        tgt_steer = (jnp.zeros_like(st_pred[0]) + steer_target,
                     jnp.zeros_like(st_pred[1]) + steer_target)
        tgt_coll = (jnp.zeros_like(st_pred[0]) + coll_target,
                    jnp.zeros_like(st_pred[1]) + coll_target)

        # BCE only ever sees coll_pred: compute the clamped logs once per
        # orientation and share them between loss3 and loss4.
        log_p = (jnp.maximum(jnp.log(cl_pred[0]), -100.0),
                 jnp.maximum(jnp.log(cl_pred[1]), -100.0))
        log_1mp = (jnp.maximum(jnp.log(1.0 - cl_pred[0]), -100.0),
                   jnp.maximum(jnp.log(1.0 - cl_pred[1]), -100.0))

        if use_old_loss:
            # Reference computes loss1/loss3 here but never uses them -> skipped.
            loss2 = _old_hard_mining_mse(k, n_true, tgt_steer, st_pred, valid, topk)
            loss4 = _old_hard_mining_entropy(k, n_true, tgt_coll, log_p, log_1mp,
                                             valid, topk)
            result = beta * (balance_steer * loss2) + balance_coll * loss4
        else:
            loss1 = _hard_mining_mse(k, t_steer, true_steer, st_pred, topk)
            loss2 = _hard_mining_mse(k, t_steer, tgt_steer, st_pred, topk)
            loss3 = _hard_mining_entropy(k, t_coll, true_coll, log_p, log_1mp,
                                         valid, topk)
            # NOTE: reference builds target_coll from steer_true.clone() -> the
            # flag column of loss4 is the STEER flag.
            loss4 = _hard_mining_entropy(k, t_steer, tgt_coll, log_p, log_1mp,
                                         valid, topk)
            result = -loss1 + balance_steer * loss2 + beta * (-loss3 + balance_coll * loss4)
    else:
        # Untargeted reference uses the MODULE constant self.beta == 0 (not the
        # runtime `beta` argument), so the entropy term is statically dead and
        # the result is exactly -hard_mining_mse(...).
        loss1 = _hard_mining_mse(k, t_steer, true_steer, st_pred, topk)
        result = -loss1

    out_ref[...] = result


def attack_loss(k, steer_true, steer_pred, coll_true, coll_pred,
                steer_target, coll_target, is_targeted, use_old_loss, beta):
    steer_true = jnp.asarray(steer_true, jnp.float32)                 # (N, 2)
    coll_true = jnp.asarray(coll_true, jnp.float32)                   # (N, 2)
    steer_pred = jnp.asarray(steer_pred, jnp.float32).reshape(-1)     # (N,)
    coll_pred = jnp.asarray(coll_pred, jnp.float32).reshape(-1)       # (N,)
    n = steer_true.shape[0]

    # Pad the sample axis to a lane multiple (min 128) so every vreg is
    # lane-dense and the rank-matmul K dim is MXU-aligned; a valid-mask row
    # keeps padded entries out of counts / top-k.
    n_pad = max(128, ((n + 127) // 128) * 128)

    def pad(x):
        return jnp.pad(x, (0, n_pad - n))

    rows = [pad(steer_true[:, 0]), pad(steer_true[:, 1]),
            pad(coll_true[:, 0]), pad(coll_true[:, 1]),
            pad(steer_pred), pad(coll_pred),
            pad(jnp.ones((n,), jnp.float32)),           # valid mask
            jnp.zeros((n_pad,), jnp.float32)]
    slab_row = jnp.stack(rows, axis=0)   # (8, n_pad)  -> lane-dense row views
    slab_col = jnp.stack(rows, axis=1)   # (n_pad, 8)  -> bit-identical column views

    kern = functools.partial(_attack_loss_kernel,
                             n_true=int(n),
                             is_targeted=bool(is_targeted),
                             use_old_loss=bool(use_old_loss))
    smem = pl.BlockSpec(memory_space=pltpu.MemorySpace.SMEM)
    vmem = pl.BlockSpec(memory_space=pltpu.MemorySpace.VMEM)

    # Scoped-VMEM limit: size to the live N^2 intermediates (bf16 cmp + tri +
    # bool/broadcast temps ~ 16 B/elem), capped at ~75% of physical VMEM so the
    # request stays legal on v7x's 64 MiB parts as well as 128 MiB v5e/v6e.
    est = n_pad * n_pad * 16 + (4 << 20)
    try:
        cap = int(pltpu.get_tpu_info().vmem_capacity_bytes)
    except Exception:
        cap = 64 << 20   # conservative: valid on every TPU generation
    vmem_limit = int(min(max(est, 32 << 20), (cap * 3) // 4))

    out = pl.pallas_call(
        kern,
        out_shape=jax.ShapeDtypeStruct((1, 1), jnp.float32),
        in_specs=[smem, smem, vmem, vmem],
        out_specs=vmem,
        compiler_params=pltpu.CompilerParams(vmem_limit_bytes=vmem_limit),
    )(
        jnp.asarray([k], jnp.int32),
        jnp.asarray([steer_target, coll_target, beta], jnp.float32),
        slab_row,
        slab_col,
    )
    return out[0, 0]


if __name__ == "__main__":
    key = jax.random.PRNGKey(0)
    N = 8
    k1, k2, k3, k4 = jax.random.split(key, 4)

    steer_flag = jnp.array([1., 0., 1., 1., 0., 1., 0., 1.], jnp.float32)
    coll_flag = jnp.array([1., 0., 1., 0., 0., 1., 1., 0.], jnp.float32)
    steer_val = jax.random.uniform(k1, (N,), jnp.float32, minval=-1.0, maxval=1.0)
    coll_val = (jax.random.uniform(k2, (N,), jnp.float32) > 0.5).astype(jnp.float32)

    steer_true = jnp.stack([steer_flag, steer_val], axis=1)   # (N, 2)
    coll_true = jnp.stack([coll_flag, coll_val], axis=1)      # (N, 2)
    steer_pred = jax.random.uniform(k3, (N, 1), jnp.float32, minval=-1.0, maxval=1.0)
    coll_pred = jax.nn.sigmoid(jax.random.normal(k4, (N, 1), jnp.float32))  # (0,1) probs

    kk = 3
    steer_target, coll_target, beta = 0.5, 0.0, 2.0

    out_targeted_new = attack_loss(kk, steer_true, steer_pred, coll_true, coll_pred,
                                   steer_target, coll_target, True, False, beta)
    out_targeted_old = attack_loss(kk, steer_true, steer_pred, coll_true, coll_pred,
                                   steer_target, coll_target, True, True, beta)
    out_untargeted = attack_loss(kk, steer_true, steer_pred, coll_true, coll_pred,
                                 steer_target, coll_target, False, False, beta)

    jax.block_until_ready((out_targeted_new, out_targeted_old, out_untargeted))
    print("KERNEL_OK")
</pallas_src>

<mosaic_0001>
module attributes {stable_mosaic.version = 11 : i64} {
  func.func @_attack_loss_kernel(%arg0: memref<1xi32, #tpu.memory_space<smem>>, %arg1: memref<3xf32, #tpu.memory_space<smem>>, %arg2: memref<8x128xf32, #tpu.memory_space<vmem>>, %arg3: memref<128x8xf32, #tpu.memory_space<vmem>>, %arg4: memref<1x1xf32, #tpu.memory_space<vmem>>) attributes {dimension_semantics = [], scalar_prefetch = 0 : i64, scratch_operands = 0 : i64, tpu.core_type = #tpu.core_type<tc>} {
    %c0 = arith.constant 0 : index
    %0 = memref.load %arg0[%c0] : memref<1xi32, #tpu.memory_space<smem>>
    %c0_0 = arith.constant 0 : index
    %c0_1 = arith.constant 0 : index
    %1 = vector.load %arg2[%c0_0, %c0_1] : memref<8x128xf32, #tpu.memory_space<vmem>>, vector<8x128xf32>
    %c0_2 = arith.constant 0 : index
    %c0_3 = arith.constant 0 : index
    %2 = vector.load %arg3[%c0_2, %c0_3] : memref<128x8xf32, #tpu.memory_space<vmem>>, vector<128x8xf32>
    %3 = vector.extract_strided_slice %1 {offsets = [0, 0], sizes = [1, 128], strides = [1, 1]} : vector<8x128xf32> to vector<1x128xf32>
    %4 = vector.extract_strided_slice %2 {offsets = [0, 0], sizes = [128, 1], strides = [1, 1]} : vector<128x8xf32> to vector<128x1xf32>
    %5 = vector.extract_strided_slice %1 {offsets = [1, 0], sizes = [1, 128], strides = [1, 1]} : vector<8x128xf32> to vector<1x128xf32>
    %6 = vector.extract_strided_slice %2 {offsets = [0, 1], sizes = [128, 1], strides = [1, 1]} : vector<128x8xf32> to vector<128x1xf32>
    %7 = vector.extract_strided_slice %1 {offsets = [2, 0], sizes = [1, 128], strides = [1, 1]} : vector<8x128xf32> to vector<1x128xf32>
    %8 = vector.extract_strided_slice %2 {offsets = [0, 2], sizes = [128, 1], strides = [1, 1]} : vector<128x8xf32> to vector<128x1xf32>
    %9 = vector.extract_strided_slice %1 {offsets = [3, 0], sizes = [1, 128], strides = [1, 1]} : vector<8x128xf32> to vector<1x128xf32>
    %10 = vector.extract_strided_slice %2 {offsets = [0, 3], sizes = [128, 1], strides = [1, 1]} : vector<128x8xf32> to vector<128x1xf32>
    %11 = vector.extract_strided_slice %1 {offsets = [4, 0], sizes = [1, 128], strides = [1, 1]} : vector<8x128xf32> to vector<1x128xf32>
    %12 = vector.extract_strided_slice %2 {offsets = [0, 4], sizes = [128, 1], strides = [1, 1]} : vector<128x8xf32> to vector<128x1xf32>
    %13 = vector.extract_strided_slice %1 {offsets = [5, 0], sizes = [1, 128], strides = [1, 1]} : vector<8x128xf32> to vector<1x128xf32>
    %14 = vector.extract_strided_slice %2 {offsets = [0, 5], sizes = [128, 1], strides = [1, 1]} : vector<128x8xf32> to vector<128x1xf32>
    %15 = vector.extract_strided_slice %1 {offsets = [6, 0], sizes = [1, 128], strides = [1, 1]} : vector<8x128xf32> to vector<1x128xf32>
    %16 = vector.extract_strided_slice %2 {offsets = [0, 6], sizes = [128, 1], strides = [1, 1]} : vector<128x8xf32> to vector<128x1xf32>
    %17 = tpu.iota {dimensions = array<i32: 0>} : vector<128x128xi32>
    %18 = tpu.iota {dimensions = array<i32: 1>} : vector<128x128xi32>
    %19 = arith.cmpi slt, %18, %17 : vector<128x128xi32>
    %20 = arith.extui %19 : vector<128x128xi1> to vector<128x128xi32>
    %21 = arith.sitofp %20 : vector<128x128xi32> to vector<128x128xf32>
    %22 = arith.truncf %21 : vector<128x128xf32> to vector<128x128xbf16>
    %cst = arith.constant 1.000000e+00 : bf16
    %23 = vector.broadcast %cst : bf16 to vector<128x128xbf16>
    %c0_4 = arith.constant 0 : index
    %24 = memref.load %arg1[%c0_4] : memref<3xf32, #tpu.memory_space<smem>>
    %c1 = arith.constant 1 : index
    %25 = memref.load %arg1[%c1] : memref<3xf32, #tpu.memory_space<smem>>
    %c2 = arith.constant 2 : index
    %26 = memref.load %arg1[%c2] : memref<3xf32, #tpu.memory_space<smem>>
    %cst_5 = arith.constant 0.000000e+00 : f32
    %27 = vector.broadcast %cst_5 : f32 to vector<1x128xf32>
    %28 = vector.broadcast %24 : f32 to vector<1x128xf32>
    %29 = arith.addf %27, %28 : vector<1x128xf32>
    %cst_6 = arith.constant 0.000000e+00 : f32
    %30 = vector.broadcast %cst_6 : f32 to vector<128x1xf32>
    %31 = vector.broadcast %24 : f32 to vector<128x1xf32>
    %32 = arith.addf %30, %31 : vector<128x1xf32>
    %cst_7 = arith.constant 0.000000e+00 : f32
    %33 = vector.broadcast %cst_7 : f32 to vector<1x128xf32>
    %34 = vector.broadcast %25 : f32 to vector<1x128xf32>
    %35 = arith.addf %33, %34 : vector<1x128xf32>
    %cst_8 = arith.constant 0.000000e+00 : f32
    %36 = vector.broadcast %cst_8 : f32 to vector<128x1xf32>
    %37 = vector.broadcast %25 : f32 to vector<128x1xf32>
    %38 = arith.addf %36, %37 : vector<128x1xf32>
    %39 = math.log %13 : vector<1x128xf32>
    %cst_9 = arith.constant -1.000000e+02 : f32
    %40 = vector.broadcast %cst_9 : f32 to vector<1x128xf32>
    %41 = arith.maximumf %39, %40 : vector<1x128xf32>
    %42 = math.log %14 : vector<128x1xf32>
    %cst_10 = arith.constant -1.000000e+02 : f32
    %43 = vector.broadcast %cst_10 : f32 to vector<128x1xf32>
    %44 = arith.maximumf %42, %43 : vector<128x1xf32>
    %cst_11 = arith.constant 1.000000e+00 : f32
    %45 = vector.broadcast %cst_11 : f32 to vector<1x128xf32>
    %46 = arith.subf %45, %13 : vector<1x128xf32>
    %47 = math.log %46 : vector<1x128xf32>
    %cst_12 = arith.constant -1.000000e+02 : f32
    %48 = vector.broadcast %cst_12 : f32 to vector<1x128xf32>
    %49 = arith.maximumf %47, %48 : vector<1x128xf32>
    %cst_13 = arith.constant 1.000000e+00 : f32
    %50 = vector.broadcast %cst_13 : f32 to vector<128x1xf32>
    %51 = arith.subf %50, %14 : vector<128x1xf32>
    %52 = math.log %51 : vector<128x1xf32>
    %cst_14 = arith.constant -1.000000e+02 : f32
    %53 = vector.broadcast %cst_14 : f32 to vector<128x1xf32>
    %54 = arith.maximumf %52, %53 : vector<128x1xf32>
    %cst_15 = arith.constant 1.000000e+00 : f32
    %55 = vector.broadcast %cst_15 : f32 to vector<1x128xf32>
    %56 = arith.cmpf oeq, %3, %55 : vector<1x128xf32>
    %57 = arith.extui %56 : vector<1x128xi1> to vector<1x128xi32>
    %cst_16 = arith.constant dense<0> : vector<1xi32>
    %58 = vector.multi_reduction <add>, %57, %cst_16 [1] : vector<1x128xi32> to vector<1xi32>
    %59 = vector.shape_cast %58 : vector<1xi32> to vector<1x1xi32>
    %60 = arith.subf %5, %11 : vector<1x128xf32>
    %61 = arith.mulf %60, %60 : vector<1x128xf32>
    %62 = arith.mulf %61, %3 : vector<1x128xf32>
    %63 = arith.subf %6, %12 : vector<128x1xf32>
    %64 = arith.mulf %63, %63 : vector<128x1xf32>
    %65 = arith.mulf %64, %4 : vector<128x1xf32>
    %66 = vector.broadcast %0 : i32 to vector<1x1xi32>
    %67 = arith.minsi %66, %59 : vector<1x1xi32>
    %68 = arith.sitofp %67 : vector<1x1xi32> to vector<1x1xf32>
    %69 = vector.broadcast %62 : vector<1x128xf32> to vector<128x128xf32>
    %70 = vector.broadcast %65 : vector<128x1xf32> to vector<128x128xf32>
    %71 = arith.cmpf ogt, %69, %70 : vector<128x128xf32>
    %72 = arith.extui %71 : vector<128x128xi1> to vector<128x128xi32>
    %73 = arith.sitofp %72 : vector<128x128xi32> to vector<128x128xf32>
    %74 = arith.truncf %73 : vector<128x128xf32> to vector<128x128xbf16>
    %75 = vector.broadcast %62 : vector<1x128xf32> to vector<128x128xf32>
    %76 = vector.broadcast %65 : vector<128x1xf32> to vector<128x128xf32>
    %77 = arith.cmpf oeq, %75, %76 : vector<128x128xf32>
    %78 = arith.select %77, %22, %74 : vector<128x128xi1>, vector<128x128xbf16>
    %cst_17 = arith.constant dense<0.000000e+00> : vector<128x128xf32>
    %79 = tpu.matmul %78, %23, %cst_17 {dimension_numbers = #tpu.dot_dimension_numbers<[1], [0], [0], [1], [0, 0, 1, 1], [], []>} : vector<128x128xbf16>, vector<128x128xbf16>, vector<128x128xf32> -> vector<128x128xf32>
    %80 = vector.extract_strided_slice %79 {offsets = [0, 0], sizes = [128, 1], strides = [1, 1]} : vector<128x128xf32> to vector<128x1xf32>
    %81 = vector.broadcast %68 : vector<1x1xf32> to vector<128x1xf32>
    %82 = arith.cmpf olt, %80, %81 : vector<128x1xf32>
    %83 = arith.extui %82 : vector<128x1xi1> to vector<128x1xi32>
    %84 = arith.sitofp %83 : vector<128x1xi32> to vector<128x1xf32>
    %85 = arith.mulf %65, %84 : vector<128x1xf32>
    %cst_18 = arith.constant dense<0.000000e+00> : vector<1xf32>
    %86 = vector.multi_reduction <add>, %85, %cst_18 [0] : vector<128x1xf32> to vector<1xf32>
    %87 = vector.shape_cast %86 : vector<1xf32> to vector<1x1xf32>
    %c1_i32 = arith.constant 1 : i32
    %88 = vector.broadcast %c1_i32 : i32 to vector<1x1xi32>
    %89 = arith.maxsi %67, %88 : vector<1x1xi32>
    %90 = arith.sitofp %89 : vector<1x1xi32> to vector<1x1xf32>
    %c0_i32 = arith.constant 0 : i32
    %91 = vector.broadcast %c0_i32 : i32 to vector<1x1xi32>
    %92 = arith.cmpi eq, %59, %91 : vector<1x1xi32>
    %cst_19 = arith.constant 0.000000e+00 : f32
    %93 = vector.broadcast %cst_19 : f32 to vector<1x1xf32>
    %94 = arith.divf %87, %90 : vector<1x1xf32>
    %95 = arith.select %92, %93, %94 : vector<1x1xi1>, vector<1x1xf32>
    %cst_20 = arith.constant 1.000000e+00 : f32
    %96 = vector.broadcast %cst_20 : f32 to vector<1x128xf32>
    %97 = arith.cmpf oeq, %3, %96 : vector<1x128xf32>
    %98 = arith.extui %97 : vector<1x128xi1> to vector<1x128xi32>
    %cst_21 = arith.constant dense<0> : vector<1xi32>
    %99 = vector.multi_reduction <add>, %98, %cst_21 [1] : vector<1x128xi32> to vector<1xi32>
    %100 = vector.shape_cast %99 : vector<1xi32> to vector<1x1xi32>
    %101 = arith.subf %29, %11 : vector<1x128xf32>
    %102 = arith.mulf %101, %101 : vector<1x128xf32>
    %103 = arith.mulf %102, %3 : vector<1x128xf32>
    %104 = arith.subf %32, %12 : vector<128x1xf32>
    %105 = arith.mulf %104, %104 : vector<128x1xf32>
    %106 = arith.mulf %105, %4 : vector<128x1xf32>
    %107 = vector.broadcast %0 : i32 to vector<1x1xi32>
    %108 = arith.minsi %107, %100 : vector<1x1xi32>
    %109 = arith.sitofp %108 : vector<1x1xi32> to vector<1x1xf32>
    %110 = vector.broadcast %103 : vector<1x128xf32> to vector<128x128xf32>
    %111 = vector.broadcast %106 : vector<128x1xf32> to vector<128x128xf32>
    %112 = arith.cmpf ogt, %110, %111 : vector<128x128xf32>
    %113 = arith.extui %112 : vector<128x128xi1> to vector<128x128xi32>
    %114 = arith.sitofp %113 : vector<128x128xi32> to vector<128x128xf32>
    %115 = arith.truncf %114 : vector<128x128xf32> to vector<128x128xbf16>
    %116 = vector.broadcast %103 : vector<1x128xf32> to vector<128x128xf32>
    %117 = vector.broadcast %106 : vector<128x1xf32> to vector<128x128xf32>
    %118 = arith.cmpf oeq, %116, %117 : vector<128x128xf32>
    %119 = arith.select %118, %22, %115 : vector<128x128xi1>, vector<128x128xbf16>
    %cst_22 = arith.constant dense<0.000000e+00> : vector<128x128xf32>
    %120 = tpu.matmul %119, %23, %cst_22 {dimension_numbers = #tpu.dot_dimension_numbers<[1], [0], [0], [1], [0, 0, 1, 1], [], []>} : vector<128x128xbf16>, vector<128x128xbf16>, vector<128x128xf32> -> vector<128x128xf32>
    %121 = vector.extract_strided_slice %120 {offsets = [0, 0], sizes = [128, 1], strides = [1, 1]} : vector<128x128xf32> to vector<128x1xf32>
    %122 = vector.broadcast %109 : vector<1x1xf32> to vector<128x1xf32>
    %123 = arith.cmpf olt, %121, %122 : vector<128x1xf32>
    %124 = arith.extui %123 : vector<128x1xi1> to vector<128x1xi32>
    %125 = arith.sitofp %124 : vector<128x1xi32> to vector<128x1xf32>
    %126 = arith.mulf %106, %125 : vector<128x1xf32>
    %cst_23 = arith.constant dense<0.000000e+00> : vector<1xf32>
    %127 = vector.multi_reduction <add>, %126, %cst_23 [0] : vector<128x1xf32> to vector<1xf32>
    %128 = vector.shape_cast %127 : vector<1xf32> to vector<1x1xf32>
    %c1_i32_24 = arith.constant 1 : i32
    %129 = vector.broadcast %c1_i32_24 : i32 to vector<1x1xi32>
    %130 = arith.maxsi %108, %129 : vector<1x1xi32>
    %131 = arith.sitofp %130 : vector<1x1xi32> to vector<1x1xf32>
    %c0_i32_25 = arith.constant 0 : i32
    %132 = vector.broadcast %c0_i32_25 : i32 to vector<1x1xi32>
    %133 = arith.cmpi eq, %100, %132 : vector<1x1xi32>
    %cst_26 = arith.constant 0.000000e+00 : f32
    %134 = vector.broadcast %cst_26 : f32 to vector<1x1xf32>
    %135 = arith.divf %128, %131 : vector<1x1xf32>
    %136 = arith.select %133, %134, %135 : vector<1x1xi1>, vector<1x1xf32>
    %cst_27 = arith.constant 0.000000e+00 : f32
    %137 = vector.broadcast %cst_27 : f32 to vector<1x128xf32>
    %138 = arith.cmpf oeq, %7, %137 : vector<1x128xf32>
    %cst_28 = arith.constant 5.000000e-01 : f32
    %139 = vector.broadcast %cst_28 : f32 to vector<1x128xf32>
    %140 = arith.cmpf ogt, %15, %139 : vector<1x128xf32>
    %141 = arith.andi %138, %140 : vector<1x128xi1>
    %142 = arith.extui %141 : vector<1x128xi1> to vector<1x128xi32>
    %cst_29 = arith.constant dense<0> : vector<1xi32>
    %143 = vector.multi_reduction <add>, %142, %cst_29 [1] : vector<1x128xi32> to vector<1xi32>
    %144 = vector.shape_cast %143 : vector<1xi32> to vector<1x1xi32>
    %145 = arith.mulf %9, %41 : vector<1x128xf32>
    %cst_30 = arith.constant 1.000000e+00 : f32
    %146 = vector.broadcast %cst_30 : f32 to vector<1x128xf32>
    %147 = arith.subf %146, %9 : vector<1x128xf32>
    %148 = arith.mulf %147, %49 : vector<1x128xf32>
    %149 = arith.addf %145, %148 : vector<1x128xf32>
    %cst_31 = arith.constant 0.000000e+00 : f32
    %150 = vector.broadcast %cst_31 : f32 to vector<1x128xf32>
    %151 = arith.subf %150, %149 : vector<1x128xf32>
    %cst_32 = arith.constant 1.000000e+00 : f32
    %152 = vector.broadcast %cst_32 : f32 to vector<1x128xf32>
    %153 = arith.subf %152, %7 : vector<1x128xf32>
    %154 = arith.mulf %151, %153 : vector<1x128xf32>
    %155 = arith.mulf %154, %15 : vector<1x128xf32>
    %156 = arith.mulf %10, %44 : vector<128x1xf32>
    %cst_33 = arith.constant 1.000000e+00 : f32
    %157 = vector.broadcast %cst_33 : f32 to vector<128x1xf32>
    %158 = arith.subf %157, %10 : vector<128x1xf32>
    %159 = arith.mulf %158, %54 : vector<128x1xf32>
    %160 = arith.addf %156, %159 : vector<128x1xf32>
    %cst_34 = arith.constant 0.000000e+00 : f32
    %161 = vector.broadcast %cst_34 : f32 to vector<128x1xf32>
    %162 = arith.subf %161, %160 : vector<128x1xf32>
    %cst_35 = arith.constant 1.000000e+00 : f32
    %163 = vector.broadcast %cst_35 : f32 to vector<128x1xf32>
    %164 = arith.subf %163, %8 : vector<128x1xf32>
    %165 = arith.mulf %162, %164 : vector<128x1xf32>
    %166 = arith.mulf %165, %16 : vector<128x1xf32>
    %167 = vector.broadcast %0 : i32 to vector<1x1xi32>
    %168 = arith.minsi %167, %144 : vector<1x1xi32>
    %169 = arith.sitofp %168 : vector<1x1xi32> to vector<1x1xf32>
    %170 = vector.broadcast %155 : vector<1x128xf32> to vector<128x128xf32>
    %171 = vector.broadcast %166 : vector<128x1xf32> to vector<128x128xf32>
    %172 = arith.cmpf ogt, %170, %171 : vector<128x128xf32>
    %173 = arith.extui %172 : vector<128x128xi1> to vector<128x128xi32>
    %174 = arith.sitofp %173 : vector<128x128xi32> to vector<128x128xf32>
    %175 = arith.truncf %174 : vector<128x128xf32> to vector<128x128xbf16>
    %176 = vector.broadcast %155 : vector<1x128xf32> to vector<128x128xf32>
    %177 = vector.broadcast %166 : vector<128x1xf32> to vector<128x128xf32>
    %178 = arith.cmpf oeq, %176, %177 : vector<128x128xf32>
    %179 = arith.select %178, %22, %175 : vector<128x128xi1>, vector<128x128xbf16>
    %cst_36 = arith.constant dense<0.000000e+00> : vector<128x128xf32>
    %180 = tpu.matmul %179, %23, %cst_36 {dimension_numbers = #tpu.dot_dimension_numbers<[1], [0], [0], [1], [0, 0, 1, 1], [], []>} : vector<128x128xbf16>, vector<128x128xbf16>, vector<128x128xf32> -> vector<128x128xf32>
    %181 = vector.extract_strided_slice %180 {offsets = [0, 0], sizes = [128, 1], strides = [1, 1]} : vector<128x128xf32> to vector<128x1xf32>
    %182 = vector.broadcast %169 : vector<1x1xf32> to vector<128x1xf32>
    %183 = arith.cmpf olt, %181, %182 : vector<128x1xf32>
    %184 = arith.extui %183 : vector<128x1xi1> to vector<128x1xi32>
    %185 = arith.sitofp %184 : vector<128x1xi32> to vector<128x1xf32>
    %186 = arith.mulf %166, %185 : vector<128x1xf32>
    %cst_37 = arith.constant dense<0.000000e+00> : vector<1xf32>
    %187 = vector.multi_reduction <add>, %186, %cst_37 [0] : vector<128x1xf32> to vector<1xf32>
    %188 = vector.shape_cast %187 : vector<1xf32> to vector<1x1xf32>
    %c1_i32_38 = arith.constant 1 : i32
    %189 = vector.broadcast %c1_i32_38 : i32 to vector<1x1xi32>
    %190 = arith.maxsi %168, %189 : vector<1x1xi32>
    %191 = arith.sitofp %190 : vector<1x1xi32> to vector<1x1xf32>
    %c0_i32_39 = arith.constant 0 : i32
    %192 = vector.broadcast %c0_i32_39 : i32 to vector<1x1xi32>
    %193 = arith.cmpi eq, %144, %192 : vector<1x1xi32>
    %cst_40 = arith.constant 0.000000e+00 : f32
    %194 = vector.broadcast %cst_40 : f32 to vector<1x1xf32>
    %195 = arith.divf %188, %191 : vector<1x1xf32>
    %196 = arith.select %193, %194, %195 : vector<1x1xi1>, vector<1x1xf32>
    %cst_41 = arith.constant 0.000000e+00 : f32
    %197 = vector.broadcast %cst_41 : f32 to vector<1x128xf32>
    %198 = arith.cmpf oeq, %3, %197 : vector<1x128xf32>
    %cst_42 = arith.constant 5.000000e-01 : f32
    %199 = vector.broadcast %cst_42 : f32 to vector<1x128xf32>
    %200 = arith.cmpf ogt, %15, %199 : vector<1x128xf32>
    %201 = arith.andi %198, %200 : vector<1x128xi1>
    %202 = arith.extui %201 : vector<1x128xi1> to vector<1x128xi32>
    %cst_43 = arith.constant dense<0> : vector<1xi32>
    %203 = vector.multi_reduction <add>, %202, %cst_43 [1] : vector<1x128xi32> to vector<1xi32>
    %204 = vector.shape_cast %203 : vector<1xi32> to vector<1x1xi32>
    %205 = arith.mulf %35, %41 : vector<1x128xf32>
    %cst_44 = arith.constant 1.000000e+00 : f32
    %206 = vector.broadcast %cst_44 : f32 to vector<1x128xf32>
    %207 = arith.subf %206, %35 : vector<1x128xf32>
    %208 = arith.mulf %207, %49 : vector<1x128xf32>
    %209 = arith.addf %205, %208 : vector<1x128xf32>
    %cst_45 = arith.constant 0.000000e+00 : f32
    %210 = vector.broadcast %cst_45 : f32 to vector<1x128xf32>
    %211 = arith.subf %210, %209 : vector<1x128xf32>
    %cst_46 = arith.constant 1.000000e+00 : f32
    %212 = vector.broadcast %cst_46 : f32 to vector<1x128xf32>
    %213 = arith.subf %212, %3 : vector<1x128xf32>
    %214 = arith.mulf %211, %213 : vector<1x128xf32>
    %215 = arith.mulf %214, %15 : vector<1x128xf32>
    %216 = arith.mulf %38, %44 : vector<128x1xf32>
    %cst_47 = arith.constant 1.000000e+00 : f32
    %217 = vector.broadcast %cst_47 : f32 to vector<128x1xf32>
    %218 = arith.subf %217, %38 : vector<128x1xf32>
    %219 = arith.mulf %218, %54 : vector<128x1xf32>
    %220 = arith.addf %216, %219 : vector<128x1xf32>
    %cst_48 = arith.constant 0.000000e+00 : f32
    %221 = vector.broadcast %cst_48 : f32 to vector<128x1xf32>
    %222 = arith.subf %221, %220 : vector<128x1xf32>
    %cst_49 = arith.constant 1.000000e+00 : f32
    %223 = vector.broadcast %cst_49 : f32 to vector<128x1xf32>
    %224 = arith.subf %223, %4 : vector<128x1xf32>
    %225 = arith.mulf %222, %224 : vector<128x1xf32>
    %226 = arith.mulf %225, %16 : vector<128x1xf32>
    %227 = vector.broadcast %0 : i32 to vector<1x1xi32>
    %228 = arith.minsi %227, %204 : vector<1x1xi32>
    %229 = arith.sitofp %228 : vector<1x1xi32> to vector<1x1xf32>
    %230 = vector.broadcast %215 : vector<1x128xf32> to vector<128x128xf32>
    %231 = vector.broadcast %226 : vector<128x1xf32> to vector<128x128xf32>
    %232 = arith.cmpf ogt, %230, %231 : vector<128x128xf32>
    %233 = arith.extui %232 : vector<128x128xi1> to vector<128x128xi32>
    %234 = arith.sitofp %233 : vector<128x128xi32> to vector<128x128xf32>
    %235 = arith.truncf %234 : vector<128x128xf32> to vector<128x128xbf16>
    %236 = vector.broadcast %215 : vector<1x128xf32> to vector<128x128xf32>
    %237 = vector.broadcast %226 : vector<128x1xf32> to vector<128x128xf32>
    %238 = arith.cmpf oeq, %236, %237 : vector<128x128xf32>
    %239 = arith.select %238, %22, %235 : vector<128x128xi1>, vector<128x128xbf16>
    %cst_50 = arith.constant dense<0.000000e+00> : vector<128x128xf32>
    %240 = tpu.matmul %239, %23, %cst_50 {dimension_numbers = #tpu.dot_dimension_numbers<[1], [0], [0], [1], [0, 0, 1, 1], [], []>} : vector<128x128xbf16>, vector<128x128xbf16>, vector<128x128xf32> -> vector<128x128xf32>
    %241 = vector.extract_strided_slice %240 {offsets = [0, 0], sizes = [128, 1], strides = [1, 1]} : vector<128x128xf32> to vector<128x1xf32>
    %242 = vector.broadcast %229 : vector<1x1xf32> to vector<128x1xf32>
    %243 = arith.cmpf olt, %241, %242 : vector<128x1xf32>
    %244 = arith.extui %243 : vector<128x1xi1> to vector<128x1xi32>
    %245 = arith.sitofp %244 : vector<128x1xi32> to vector<128x1xf32>
    %246 = arith.mulf %226, %245 : vector<128x1xf32>
    %cst_51 = arith.constant dense<0.000000e+00> : vector<1xf32>
    %247 = vector.multi_reduction <add>, %246, %cst_51 [0] : vector<128x1xf32> to vector<1xf32>
    %248 = vector.shape_cast %247 : vector<1xf32> to vector<1x1xf32>
    %c1_i32_52 = arith.constant 1 : i32
    %249 = vector.broadcast %c1_i32_52 : i32 to vector<1x1xi32>
    %250 = arith.maxsi %228, %249 : vector<1x1xi32>
    %251 = arith.sitofp %250 : vector<1x1xi32> to vector<1x1xf32>
    %c0_i32_53 = arith.constant 0 : i32
    %252 = vector.broadcast %c0_i32_53 : i32 to vector<1x1xi32>
    %253 = arith.cmpi eq, %204, %252 : vector<1x1xi32>
    %cst_54 = arith.constant 0.000000e+00 : f32
    %254 = vector.broadcast %cst_54 : f32 to vector<1x1xf32>
    %255 = arith.divf %248, %251 : vector<1x1xf32>
    %256 = arith.select %253, %254, %255 : vector<1x1xi1>, vector<1x1xf32>
    %cst_55 = arith.constant 0.000000e+00 : f32
    %257 = vector.broadcast %cst_55 : f32 to vector<1x1xf32>
    %258 = arith.subf %257, %95 : vector<1x1xf32>
    %cst_56 = arith.constant 1.000000e+01 : f32
    %259 = vector.broadcast %cst_56 : f32 to vector<1x1xf32>
    %260 = arith.mulf %259, %136 : vector<1x1xf32>
    %261 = arith.addf %258, %260 : vector<1x1xf32>
    %cst_57 = arith.constant 0.000000e+00 : f32
    %262 = vector.broadcast %cst_57 : f32 to vector<1x1xf32>
    %263 = arith.subf %262, %196 : vector<1x1xf32>
    %cst_58 = arith.constant 1.000000e+01 : f32
    %264 = vector.broadcast %cst_58 : f32 to vector<1x1xf32>
    %265 = arith.mulf %264, %256 : vector<1x1xf32>
    %266 = arith.addf %263, %265 : vector<1x1xf32>
    %267 = vector.broadcast %26 : f32 to vector<1x1xf32>
    %268 = arith.mulf %267, %266 : vector<1x1xf32>
    %269 = arith.addf %261, %268 : vector<1x1xf32>
    %c0_59 = arith.constant 0 : index
    %c0_60 = arith.constant 0 : index
    %270 = vector.load %arg4[%c0_59, %c0_60] : memref<1x1xf32, #tpu.memory_space<vmem>>, vector<1x1xf32>
    tpu.vector_store %arg4[%c0_59, %c0_60], %269 {strides = array<i32>} : memref<1x1xf32, #tpu.memory_space<vmem>>, vector<1x1xf32>,
    return
  }
}

</mosaic_0001>

<bundles_post_ra>
// kernel: tpu_custom_call.1
= control target key start
LH: loop header
LB: loop body
LE: loop exit
PB: predicated region body
PF: predicated region fallthrough
CT: control target
= control target key end

     0   :  { %10 = vsyncpa [#allocation5], 0  ;;  %s5642_s0 = inlined_call_operand.<no memory space> [shape: s32[1], index: 0, kind: input, shape index: {}]   ;;  %s5643_s1 = inlined_call_operand.vmem [shape: f32[3], index: 1, kind: input, shape index: {}]   ;;  %s5644_s2 = inlined_call_operand.vmem [shape: f32[8,128], index: 2, kind: input, shape index: {}]   ;;  %s5645_s3 = inlined_call_operand.vmem [shape: f32[128,8], index: 3, kind: input, shape index: {}]   ;;  %s5646_s4 = inlined_call_operand.hbm [shape: f32[1,1], index: 4, kind: output, shape index: {}]  }
   0x1   :  { %11 = vsyncpa [#allocation4], 0  ;;  %s20_s17 = sshll.u32 %s5643_s1, 4  ;;  %s21_s17 = int_to_ptr.vmem [resolvable:$true] %s20_s17 }
   0x2   :  { %s3445_s18 = scalar_lea.vmem %s21_s17, 16  ;;  %p3450_p1 = scmp.lt.s32.totalorder %s21_s17, %s21_s17 }
   0x3   :  { %p3446_p0 = scmp.ne.s32.totalorder %s21_s17, %s3445_s18  ;;  %p3451_p2 = scmp.lt.s32.totalorder %s3445_s18, %s3445_s18 }
   0x5   :  { %p3452_p3 = por %p3451_p2, %p3450_p1 }
   0x7   :  { %p3453_p4 = pnand %p3452_p3, %p3446_p0 }
   0x9   :  { %3456 = shalt.err (!%p3453_p4)
}
   0xa   :  { %s3483_s19 = smov [#allocation3]  }
   0xb   :  { %23 = dma.vmem_to_smem %s21_s17, 16, %s3483_s19, [#allocation5]  }
   0xc   :  { %3479 = dma.done.wait [#allocation5], 16  }
   0xd   :  { %3480 = vsyncadd [#allocation5], 4294967280 }
   0xe   :  { %31 = sfence }
   0xf   :  { %v3530_v0 = vld [vmem:[%s5645_s3] sm:$0xff]  ;;  %s3484_s23 = smov 125   ;;  %vm255_vm1 = vcmask 1040384   ;;  %v3543_v2 = vld [vmem:[%s5645_s3 + $0x8] sm:$0xff]  ;;  %v5647_v3 = vmov 0   ;;  %v3559_v10 = vld [vmem:[%s5645_s3 + $0x18] sm:$0xff] }
  0x10   :  { %v3535_v1 = vld [vmem:[%s5644_s2] sm:$0xff]  ;;  %293 = vrot.lane.b32.xlu1 %v3530_v0, %s3484_s23  ;;  %v3583_v17 = vld [vmem:[%s5645_s3 + $0x28] sm:$0xff]  ;;  %v3592_v20 = vld [vmem:[%s5645_s3 + $0x30] sm:$0xff]  ;;  %v3486_v39 = vmov 4   ;;  %s3487_s26 = smov 4   ;;  %v3709_v46 = vsub.f32 1.0, %v3543_v2 }
  0x11   :  { %5766 = vst [vmem:[#allocation9_spill] sm:$0xff] %v3535_v1  ;;  %vm253_vm0 = vcmp.eq.f32.partialorder %v3535_v1, 1.0  ;;  %vm1426_vm2 = vcmp.gt.f32.partialorder %v3535_v1, 0.5  ;;  %vm1425_vm3 = vcmp.eq.f32.partialorder %v3535_v1, 0.0  ;;  %3354 = vlog2.f32 %v3535_v1  ;;  %v3576_v15 = vld [vmem:[%s5645_s3 + $0x20] sm:$0xff]  ;;  %v3604_v25 = vld [vmem:[%s5645_s3 + $0x38] sm:$0xff]  ;;  %3266 = vset.pattern.permute.xlu1 %v3486_v39  ;;  %3265 = vset.pattern.permute.xlu0 %v3486_v39 }
  0x12   :  { %v254_v4 = vsel %vm253_vm0, 1, %v5647_v3  ;;  %v3549_v7 = vsel %vm1426_vm2, 1, %v5647_v3  ;;  %v3564_v11 = vsub.f32 1.0, %v3535_v1  ;;  %v3615_v29 = vld [vmem:[%s5645_s3 + $0x40] sm:$0xff]  ;;  %v3624_v33 = vld [vmem:[%s5645_s3 + $0x50] sm:$0xff]  ;;  %v5648_v36 = vrot.slane %v3535_v1, 3 }
  0x13   :  { %v256_v5 = vsel %vm255_vm1, %v254_v4, 0  ;;  %5767 = vst [vmem:[#allocation10_spill] sm:$0xff] %v3549_v7  ;;  %v2198_v8 = vrot.slane %v3549_v7, 6  ;;  %v3629_v35 = vld [vmem:[%s5645_s3 + $0x10] sm:$0xff]  ;;  %v3637_v38 = vld [vmem:[%s5645_s3 + $0x60] sm:$0xff]  ;;  %v3648_v41 = vld [vmem:[%s5645_s3 + $0x48] sm:$0xff] }
  0x14   :  { %v257_v6 = vand.u32 65535, %v256_v5  ;;  %295 = vrot.lane.b32.xlu1 %v3543_v2, %s3484_s23  ;;  %5768 = vst [vmem:[#allocation11_spill] sm:$0xff] %v3564_v11  ;;  %v258_v12 = vshrl.u32 %v256_v5, 16  ;;  %3356 = vlog2.f32 %v3564_v11  ;;  %v1457_v32 = vrot.slane %v3564_v11, 7  ;;  %v3655_v42 = vld [vmem:[%s5645_s3 + $0x70] sm:$0xff]  ;;  %v3662_v43 = vld [vmem:[%s5645_s3 + $0x58] sm:$0xff] }
  0x15   :  { %vm2199_vm4 = vcmp.ne.s32.totalorder %v2198_v8, 0  ;;  %v3671_v44 = vld [vmem:[%s5645_s3 + $0x68] sm:$0xff]  ;;  %v3702_v45 = vld [vmem:[%s5645_s3 + $0x78] sm:$0xff]  ;;  %5773 = vst [vmem:[#allocation16_spill] sm:$0xff] %v3709_v46  ;;  %s3488_s29 = smov 5   ;;  %v3716_v47 = vsub.f32 1.0, %v3559_v10  ;;  %3358 = vlog2.f32 %v3543_v2 }
  0x16   :  { %v259_v9 = vcvt.s32.f32 %v257_v6  ;;  %vm2200_vm5 = vmand %vm1425_vm3, %vm2199_vm4  ;;  %v260_v16 = vcvt.s32.f32 %v258_v12  ;;  %v3721_v48 = vsub.f32 1.0, %v3530_v0  ;;  %v3728_v49 = vsub.f32 1.0, %v3629_v35  ;;  %s3489_s30 = smov 127   ;;  %s127_s5 = sld [smem:[#allocation3]] }
  0x17   :  { %v2201_v13 = vsel %vm2200_vm5, 1, %v5647_v3  ;;  %5774 = vst [vmem:[#allocation17_spill] sm:$0xff] %v3716_v47  ;;  %v3737_v50 = vsub.f32 1.0, %v3583_v17  ;;  %v3744_v51 = vsub.f32 1.0, %v3604_v25  ;;  %v3749_v52 = vsub.f32 1.0, %v3576_v15  ;;  %s3490_s6 = smov 1  }
  0x18   :  { %261 = vadd.xlane.f32.xlu0 %v259_v9  ;;  %299 = vrot.lane.b32.xlu1 %v3559_v10, %s3484_s23  ;;  %v3570_v14 = vsel %vm255_vm1, %v2201_v13, 0  ;;  %5775 = vst [vmem:[#allocation18_spill] sm:$0xff] %v3721_v48  ;;  %5776 = vst [vmem:[#allocation19_spill] sm:$0xff] %v3728_v49  ;;  %v3756_v53 = vsub.f32 1.0, %v3592_v20  ;;  %v3765_v54 = vsub.f32 1.0, %v3648_v41  ;;  %v3772_v55 = vsub.f32 1.0, %v3662_v43 }
  0x19   :  { %5769 = vst [vmem:[#allocation12_spill] sm:$0xff] %v3570_v14  ;;  %5777 = vst [vmem:[#allocation20_spill] sm:$0xff] %v3737_v50  ;;  %v3777_v56 = vsub.f32 1.0, %v3615_v29  ;;  %v3786_v58 = vsub.f32 1.0, %v3624_v33  ;;  %v3797_v60 = vsub.f32 1.0, %v3671_v44  ;;  %v3806_v62 = vsub.f32 1.0, %v3702_v45 }
  0x1a   :  { %5778 = vst [vmem:[#allocation21_spill] sm:$0xff] %v3744_v51  ;;  %5779 = vst [vmem:[#allocation22_spill] sm:$0xff] %v3756_v53  ;;  %v3813_v4 = vsub.f32 1.0, %v3637_v38  ;;  %v3822_v6 = vsub.f32 1.0, %v3655_v42  ;;  %3360 = vlog2.f32 %v3530_v0  ;;  %s3492_s7 = smov 126   ;;  %s2927_s8 = sld [smem:[#allocation3 + $0x1]] }
  0x1b   :  { %v3355_v18 = vpop.eup %3354  ;;  %5780 = vst [vmem:[#allocation23_spill] sm:$0xff] %v3765_v54  ;;  %5781 = vst [vmem:[#allocation24_spill] sm:$0xff] %v3772_v55  ;;  %3362 = vlog2.f32 %v3709_v46 }
  0x1c   :  { %263 = vadd.xlane.f32.xlu0 %v260_v16  ;;  %301 = vrot.lane.b32.xlu1 %v3576_v15, %s3484_s23  ;;  %v3585_v19 = vmul.f32 0.6931472, %v3355_v18  ;;  %5782 = vst [vmem:[#allocation25_spill] sm:$0xff] %v3777_v56  ;;  %5784 = vst [vmem:[#allocation27_spill] sm:$0xff] %v3786_v58  ;;  %v3846_v16 = vstv %s127_s5  ;;  %3364 = vlog2.f32 %v3721_v48 }
  0x1d   :  { %5786 = vst [vmem:[#allocation29_spill] sm:$0xff] %v3797_v60  ;;  %5788 = vst [vmem:[#allocation31_spill] sm:$0xff] %v3806_v62  ;;  %3366 = vlog2.f32 %v3559_v10 }
  0x1e   :  { %5770 = vst [vmem:[#allocation13_spill] sm:$0xff] %v3585_v19  ;;  %v5650_v21 = vmax.f32 %v3585_v19, -100.0  ;;  %v3357_v22 = vpop.eup %3356  ;;  %5790 = vst [vmem:[#allocation33_spill] sm:$0xff] %v3813_v4  ;;  %3368 = vlog2.f32 %v3629_v35 }
  0x1f   :  { %v3595_v23 = vmul.f32 0.6931472, %v3357_v22  ;;  %5792 = vst [vmem:[#allocation35_spill] sm:$0xff] %v3822_v6  ;;  %3370 = vlog2.f32 %v3716_v47 }
  0x20   :  { %303 = vrot.lane.b32.xlu1 %v3583_v17, %s3484_s23  ;;  %v1447_v24 = vrot.slane %v5650_v21, 2  ;;  %3372 = vlog2.f32 %v3728_v49 }
  0x21   :  { %5771 = vst [vmem:[#allocation14_spill] sm:$0xff] %v3595_v23  ;;  %v5649_v26 = vmax.f32 %v3595_v23, -100.0  ;;  %3374 = vlog2.f32 %v3583_v17 }
  0x22   :  { %v1449_v27 = vmul.f32 %v1447_v24, %v3535_v1  ;;  %v893_v24 = vsub.f32 %v3846_v16, %v3543_v2  ;;  %3376 = vlog2.f32 %v3576_v15 }
  0x23   :  { %v1451_v28 = vrot.slane %v5649_v26, 2  ;;  %3378 = vlog2.f32 %v3737_v50 }
  0x24   :  { %305 = vrot.lane.b32.xlu1 %v3592_v20, %s3484_s23  ;;  %3380 = vlog2.f32 %v3749_v52 }
  0x25   :  { %v1453_v30 = vmul.f32 %v1451_v28, %v3564_v11  ;;  %3382 = vlog2.f32 %v3604_v25 }
  0x26   :  { %3384 = vlog2.f32 %v3592_v20 }
  0x27   :  { %v1454_v31 = vadd.f32 %v1453_v30, %v1449_v27  ;;  %v909_v30 = vmul.f32 %v893_v24, %v893_v24  ;;  %3386 = vlog2.f32 %v3744_v51 }
  0x28   :  { %307 = vrot.lane.b32.xlu1 %v3604_v25, %s3484_s23  ;;  %3388 = vlog2.f32 %v3756_v53 }
  0x29   :  { %v1455_v34 = vsub.f32 0.0, %v1454_v31 }
  0x2b   :  { %v1459_v37 = vmul.f32 %v1457_v32, %v1455_v34  ;;  %v5662_v32 = vmov 1065369472  }
  0x2c   :  { %309 = vrot.lane.b32.xlu1 %v3615_v29, %s3484_s23  ;;  %3153 = vmatprep.subr.bf16.mxu1 %v5662_v32 }
  0x2d   :  { %v3641_v40 = vmul.f32 %v1459_v37, %v5648_v36  ;;  %3121 = vmatprep.subr.bf16.mxu0 %v5662_v32  ;;  %3154 = vmatpush3.bf16.msra.mxu1 %v5662_v32 }
  0x2e   :  { %3122 = vmatpush3.bf16.msra.mxu0 %v5662_v32  ;;  %3155 = vmatprep.subr.bf16.mxu1 %v5662_v32 }
  0x2f   :  { %5772 = vst [vmem:[#allocation15_spill] sm:$0xff] %v3641_v40  ;;  %3123 = vmatprep.subr.bf16.mxu0 %v5662_v32  ;;  %v895_v40 = vsub.f32 %v3846_v16, %v3559_v10 }
  0x30   :  { %313 = vrot.lane.b32.xlu1 %v3624_v33, %s3484_s23 }
  0x31   :  { %3156 = vmatpush3.bf16.msra.mxu1 %v5662_v32  ;;  %v911_v7 = vmul.f32 %v895_v40, %v895_v40  ;;  %v897_v40 = vsub.f32 %v3846_v16, %v3583_v17 }
  0x32   :  { %297 = vrot.lane.b32.xlu0 %v3629_v35, %s3484_s23  ;;  %3124 = vmatpush3.bf16.msra.mxu0 %v5662_v32 }
  0x33   :  { %3157 = vmatprep.subr.bf16.mxu1 %v5662_v32  ;;  %3125 = vmatprep.subr.bf16.mxu0 %v5662_v32 }
  0x34   :  { %317 = vrot.lane.b32.xlu1 %v3637_v38, %s3484_s23 }
  0x35   :  { %3158 = vmatpush3.bf16.msra.mxu1 %v5662_v32 }
  0x36   :  { %311 = vrot.lane.b32.xlu0 %v3648_v41, %s3484_s23  ;;  %3126 = vmatpush3.bf16.msra.mxu0 %v5662_v32 }
  0x37   :  { %3159 = vmatprep.subr.bf16.mxu1 %v5662_v32  ;;  %3127 = vmatprep.subr.bf16.mxu0 %v5662_v32 }
  0x38   :  { %321 = vrot.lane.b32.xlu1 %v3655_v42, %s3484_s23 }
  0x39   :  { %3160 = vmatpush3.bf16.msra.mxu1 %v5662_v32 }
  0x3a   :  { %315 = vrot.lane.b32.xlu0 %v3662_v43, %s3484_s23  ;;  %3128 = vmatpush3.bf16.msra.mxu0 %v5662_v32 }
  0x3b   :  { %3161 = vmatprep.subr.bf16.mxu1 %v5662_v32  ;;  %3129 = vmatprep.subr.bf16.mxu0 %v5662_v32 }
  0x3c   :  { %926 = vrot.lane.b32.xlu1 %v3543_v2, %s3487_s26 }
  0x3d   :  { %3162 = vmatpush3.bf16.msra.mxu1 %v5662_v32 }
  0x3e   :  { %319 = vrot.lane.b32.xlu0 %v3671_v44, %s3484_s23  ;;  %3130 = vmatpush3.bf16.msra.mxu0 %v5662_v32 }
  0x3f   :  { %3163 = vmatprep.subr.bf16.mxu1 %v5662_v32  ;;  %3131 = vmatprep.subr.bf16.mxu0 %v5662_v32 }
  0x40   :  { %930 = vrot.lane.b32.xlu1 %v3559_v10, %s3487_s26 }
  0x41   :  { %3164 = vmatpush3.bf16.msra.mxu1 %v5662_v32 }
  0x42   :  { %924 = vrot.lane.b32.xlu0 %v3530_v0, %s3487_s26  ;;  %3132 = vmatpush3.bf16.msra.mxu0 %v5662_v32 }
  0x43   :  { %3165 = vmatprep.subr.bf16.mxu1 %v5662_v32  ;;  %3133 = vmatprep.subr.bf16.mxu0 %v5662_v32 }
  0x44   :  { %934 = vrot.lane.b32.xlu1 %v3583_v17, %s3487_s26 }
  0x45   :  { %3166 = vmatpush3.bf16.msra.mxu1 %v5662_v32 }
  0x46   :  { %928 = vrot.lane.b32.xlu0 %v3629_v35, %s3487_s26  ;;  %3134 = vmatpush3.bf16.msra.mxu0 %v5662_v32 }
  0x47   :  { %3167 = vmatprep.subr.bf16.mxu1 %v5662_v32  ;;  %3135 = vmatprep.subr.bf16.mxu0 %v5662_v32 }
  0x48   :  { %938 = vrot.lane.b32.xlu1 %v3604_v25, %s3487_s26 }
  0x49   :  { %3168 = vmatpush3.bf16.msra.mxu1 %v5662_v32 }
  0x4a   :  { %932 = vrot.lane.b32.xlu0 %v3576_v15, %s3487_s26  ;;  %3136 = vmatpush3.bf16.msra.mxu0 %v5662_v32 }
  0x4b   :  { %3217 = vmatprep.subr.bf16.mxu1 %v5662_v32  ;;  %3185 = vmatprep.subr.bf16.mxu0 %v5662_v32  ;;  %v900_v32 = vsub.f32 %v3846_v16, %v3615_v29 }
  0x4c   :  { %942 = vrot.lane.b32.xlu1 %v3648_v41, %s3487_s26 }
  0x4e   :  { %936 = vrot.lane.b32.xlu0 %v3592_v20, %s3487_s26 }
  0x50   :  { %946 = vrot.lane.b32.xlu1 %v3662_v43, %s3487_s26 }
  0x52   :  { %940 = vrot.lane.b32.xlu0 %v3615_v29, %s3487_s26 }
  0x54   :  { %950 = vrot.lane.b32.xlu1 %v3671_v44, %s3487_s26 }
  0x56   :  { %944 = vrot.lane.b32.xlu0 %v3624_v33, %s3487_s26 }
  0x58   :  { %954 = vrot.lane.b32.xlu1 %v3702_v45, %s3487_s26 }
  0x5a   :  { %948 = vrot.lane.b32.xlu0 %v3637_v38, %s3487_s26 }
  0x5c   :  { %2292 = vrot.lane.b32.xlu1 %v3709_v46, %s3488_s29 }
  0x5e   :  { %952 = vrot.lane.b32.xlu0 %v3655_v42, %s3487_s26 }
  0x60   :  { %2296 = vrot.lane.b32.xlu1 %v3716_v47, %s3488_s29 }
  0x62   :  { %2290 = vrot.lane.b32.xlu0 %v3721_v48, %s3488_s29 }
  0x64   :  { %2356 = vrot.lane.b32.xlu1 %v3543_v2, %s3489_s30 }
  0x66   :  { %2294 = vrot.lane.b32.xlu0 %v3728_v49, %s3488_s29 }
  0x68   :  { %2360 = vrot.lane.b32.xlu1 %v3559_v10, %s3489_s30 }
  0x6a   :  { %2354 = vrot.lane.b32.xlu0 %v3530_v0, %s3489_s30 }
  0x6c   :  { %2300 = vrot.lane.b32.xlu1 %v3737_v50, %s3488_s29 }
  0x6e   :  { %2358 = vrot.lane.b32.xlu0 %v3629_v35, %s3489_s30 }
  0x70   :  { %2304 = vrot.lane.b32.xlu1 %v3744_v51, %s3488_s29 }
  0x72   :  { %2298 = vrot.lane.b32.xlu0 %v3749_v52, %s3488_s29 }
  0x74   :  { %2364 = vrot.lane.b32.xlu1 %v3583_v17, %s3489_s30 }
  0x76   :  { %2302 = vrot.lane.b32.xlu0 %v3756_v53, %s3488_s29 }
  0x78   :  { %2368 = vrot.lane.b32.xlu1 %v3604_v25, %s3489_s30 }
  0x7a   :  { %2362 = vrot.lane.b32.xlu0 %v3576_v15, %s3489_s30 }
  0x7c   :  { %2308 = vrot.lane.b32.xlu1 %v3765_v54, %s3488_s29 }
  0x7e   :  { %2366 = vrot.lane.b32.xlu0 %v3592_v20, %s3489_s30 }
  0x80   :  { %2312 = vrot.lane.b32.xlu1 %v3772_v55, %s3488_s29 }
  0x82   :  { %v3781_v57 = vpop.permute.xlu1 %293  ;;  %2306 = vrot.lane.b32.xlu0 %v3777_v56, %s3488_s29 }
  0x83   :  { %5783 = vst [vmem:[#allocation26_spill] sm:$0xff] %v3781_v57 }
  0x84   :  { %2372 = vrot.lane.b32.xlu1 %v3648_v41, %s3489_s30 }
  0x86   :  { %v3790_v59 = vpop.permute.xlu1 %295  ;;  %2310 = vrot.lane.b32.xlu0 %v3786_v58, %s3488_s29 }
  0x87   :  { %5785 = vst [vmem:[#allocation28_spill] sm:$0xff] %v3790_v59 }
  0x88   :  { %2376 = vrot.lane.b32.xlu1 %v3662_v43, %s3489_s30 }
  0x8a   :  { %v3799_v61 = vpop.permute.xlu1 %299  ;;  %2370 = vrot.lane.b32.xlu0 %v3615_v29, %s3489_s30 }
  0x8b   :  { %5787 = vst [vmem:[#allocation30_spill] sm:$0xff] %v3799_v61 }
  0x8c   :  { %2316 = vrot.lane.b32.xlu1 %v3797_v60, %s3488_s29 }
  0x8e   :  { %v3808_v63 = vpop.permute.xlu1 %301  ;;  %2374 = vrot.lane.b32.xlu0 %v3624_v33, %s3489_s30 }
  0x8f   :  { %5789 = vst [vmem:[#allocation32_spill] sm:$0xff] %v3808_v63 }
  0x90   :  { %2320 = vrot.lane.b32.xlu1 %v3806_v62, %s3488_s29 }
  0x92   :  { %v3817_v5 = vpop.permute.xlu1 %303  ;;  %2314 = vrot.lane.b32.xlu0 %v3813_v4, %s3488_s29 }
  0x93   :  { %5791 = vst [vmem:[#allocation34_spill] sm:$0xff] %v3817_v5 }
  0x94   :  { %2380 = vrot.lane.b32.xlu1 %v3671_v44, %s3489_s30 }
  0x96   :  { %v3826_v8 = vpop.permute.xlu1 %305  ;;  %2318 = vrot.lane.b32.xlu0 %v3822_v6, %s3488_s29 }
  0x97   :  { %5793 = vst [vmem:[#allocation36_spill] sm:$0xff] %v3826_v8 }
  0x98   :  { %2384 = vrot.lane.b32.xlu1 %v3702_v45, %s3489_s30 }
  0x9a   :  { %v3832_v9 = vpop.permute.xlu1 %307  ;;  %2378 = vrot.lane.b32.xlu0 %v3637_v38, %s3489_s30 }
  0x9b   :  { %5794 = vst [vmem:[#allocation37_spill] sm:$0xff] %v3832_v9 }
  0x9c   :  { %375 = vrot.lane.b32.xlu1 %v3543_v2, %s3490_s6 }
  0x9e   :  { %v3838_v12 = vpop.permute.xlu1 %309  ;;  %2382 = vrot.lane.b32.xlu0 %v3655_v42, %s3489_s30 }
  0x9f   :  { %5795 = vst [vmem:[#allocation38_spill] sm:$0xff] %v3838_v12 }
  0xa2   :  { %v3842_v13 = vpop.permute.xlu1 %313  ;;  %373 = vrot.lane.b32.xlu0 %v3530_v0, %s3490_s6 }
  0xa3   :  { %5796 = vst [vmem:[#allocation39_spill] sm:$0xff] %v3842_v13 }
  0xa5   :  { %v3848_v18 = vpop.xlane.xlu0 %261 }
  0xa6   :  { %5797 = vst [vmem:[#allocation40_spill] sm:$0xff] %v3848_v18  ;;  %v3850_v22 = vpop.permute.xlu1 %317 }
  0xa7   :  { %5798 = vst [vmem:[#allocation41_spill] sm:$0xff] %v3850_v22 }
  0xa9   :  { %v3854_v27 = vpop.xlane.xlu0 %263 }
  0xaa   :  { %5799 = vst [vmem:[#allocation42_spill] sm:$0xff] %v3854_v27  ;;  %v3856_v28 = vpop.permute.xlu1 %321 }
  0xab   :  { %5800 = vst [vmem:[#allocation43_spill] sm:$0xff] %v3856_v28 }
  0xad   :  { %v3858_v31 = vpop.permute.xlu0 %297 }
  0xae   :  { %5801 = vst [vmem:[#allocation44_spill] sm:$0xff] %v3858_v31  ;;  %v927_v34 = vpop.permute.xlu1 %926 }
  0xaf   :  { %v3864_v37 = vmul.f32 %v927_v34, %v909_v30  ;;  %v892_v34 = vsub.f32 %v3846_v16, %v3530_v0  ;;  %v904_v0 = vsub.f32 %v3846_v16, %v3637_v38 }
  0xb1   :  { %5802 = vst [vmem:[#allocation45_spill] sm:$0xff] %v3864_v37  ;;  %v3868_v39 = vpop.permute.xlu0 %311  ;;  %999 = vperm.xlu1 %3266, %v3864_v37   ;;  %v908_v21 = vmul.f32 %v892_v34, %v892_v34  ;;  %v894_v37 = vsub.f32 %v3846_v16, %v3629_v35 }
  0xb2   :  { %5803 = vst [vmem:[#allocation46_spill] sm:$0xff] %v3868_v39  ;;  %v931_v24 = vpop.permute.xlu1 %930 }
  0xb3   :  { %v910_v34 = vmul.f32 %v894_v37, %v894_v37  ;;  %v3914_v37 = vmul.f32 %v931_v24, %v911_v7  ;;  %v913_v7 = vmul.f32 %v897_v40, %v897_v40 }
  0xb5   :  { %v3875_v3 = vpop.permute.xlu0 %315  ;;  %377 = vrot.lane.b32.xlu1 %v3629_v35, %s3490_s6  ;;  %5808 = vst [vmem:[#allocation51_spill] sm:$0xff] %v3914_v37 }
  0xb6   :  { %5804 = vst [vmem:[#allocation47_spill] sm:$0xff] %v3875_v3  ;;  %v935_v30 = vpop.permute.xlu1 %934 }
  0xb7   :  { %v3938_v40 = vmul.f32 %v935_v30, %v913_v7 }
  0xb9   :  { %v3885_v36 = vpop.permute.xlu0 %319  ;;  %5810 = vst [vmem:[#allocation53_spill] sm:$0xff] %v3938_v40 }
  0xba   :  { %5805 = vst [vmem:[#allocation48_spill] sm:$0xff] %v3885_v36  ;;  %v939_v26 = vpop.permute.xlu1 %938  ;;  %v896_v36 = vsub.f32 %v3846_v16, %v3576_v15 }
  0xbd   :  { %v925_v18 = vpop.permute.xlu0 %924 }
  0xbe   :  { %v3895_v14 = vmul.f32 %v925_v18, %v908_v21  ;;  %v3897_v27 = vpop.permute.xlu1 %942 }
  0xc0   :  { %5806 = vst [vmem:[#allocation49_spill] sm:$0xff] %v3895_v14  ;;  %994 = vperm.xlu0 %3265, %v3895_v14  }
  0xc1   :  { %v929_v28 = vpop.permute.xlu0 %928 }
  0xc2   :  { %v3906_v21 = vmul.f32 %v929_v28, %v910_v34  ;;  %v3910_v18 = vpop.permute.xlu1 %946  ;;  %v912_v28 = vmul.f32 %v896_v36, %v896_v36  ;;  %v898_v36 = vsub.f32 %v3846_v16, %v3592_v20 }
  0xc4   :  { %5807 = vst [vmem:[#allocation50_spill] sm:$0xff] %v3906_v21  ;;  %379 = vrot.lane.b32.xlu0 %v3559_v10, %s3490_s6  ;;  %1004 = vperm.xlu1 %3266, %v3906_v21   ;;  %v907_v10 = vsub.f32 %v3846_v16, %v3702_v45 }
  0xc5   :  { %v933_v34 = vpop.permute.xlu0 %932 }
  0xc6   :  { %v3925_v24 = vmul.f32 %v933_v34, %v912_v28  ;;  %v3932_v21 = vpop.permute.xlu1 %950  ;;  %v899_v28 = vsub.f32 %v3846_v16, %v3604_v25  ;;  %v914_v34 = vmul.f32 %v898_v36, %v898_v36  ;;  %v916_v36 = vmul.f32 %v900_v32, %v900_v32 }
  0xc8   :  { %5809 = vst [vmem:[#allocation52_spill] sm:$0xff] %v3925_v24  ;;  %1009 = vperm.xlu0 %3265, %v3914_v37   ;;  %381 = vrot.lane.b32.xlu1 %v3576_v15, %s3490_s6  ;;  %v915_v11 = vmul.f32 %v899_v28, %v899_v28  ;;  %v5689_v15 = vmov 5  }
  0xc9   :  { %v937_v14 = vpop.permute.xlu0 %936 }
  0xca   :  { %v3945_v3 = vpop.permute.xlu1 %954  ;;  %v3947_v22 = vmul.f32 %v937_v14, %v914_v34  ;;  %v3954_v7 = vmul.f32 %v939_v26, %v915_v11  ;;  %v901_v34 = vsub.f32 %v3846_v16, %v3648_v41 }
  0xcc   :  { %383 = vrot.lane.b32.xlu0 %v3583_v17, %s3490_s6  ;;  %1014 = vperm.xlu1 %3266, %v3925_v24   ;;  %5811 = vst [vmem:[#allocation54_spill] sm:$0xff] %v3947_v22  ;;  %5812 = vst [vmem:[#allocation55_spill] sm:$0xff] %v3954_v7  ;;  %v917_v26 = vmul.f32 %v901_v34, %v901_v34 }
  0xcd   :  { %v941_v37 = vpop.permute.xlu0 %940 }
  0xce   :  { %v3959_v28 = vpop.permute.xlu1 %2292  ;;  %v3963_v24 = vmul.f32 %v941_v37, %v916_v36  ;;  %v3980_v36 = vmul.f32 %v3897_v27, %v917_v26  ;;  %v3359_v26 = vpop.eup %3358  ;;  %3390 = vlog2.f32 %v3648_v41 }
  0xcf   :  { %v4025_v9 = vmul.f32 0.6931472, %v3359_v26 }
  0xd0   :  { %1019 = vperm.xlu0 %3265, %v3938_v40   ;;  %385 = vrot.lane.b32.xlu1 %v3592_v20, %s3490_s6  ;;  %5813 = vst [vmem:[#allocation56_spill] sm:$0xff] %v3963_v24  ;;  %v902_v40 = vsub.f32 %v3846_v16, %v3624_v33  ;;  %5814 = vst [vmem:[#allocation57_spill] sm:$0xff] %v3980_v36 }
  0xd1   :  { %v945_v30 = vpop.permute.xlu0 %944  ;;  %v170_v19 = vmax.f32 %v4025_v9, -100.0  ;;  %v906_v9 = vsub.f32 %v3846_v16, %v3655_v42 }
  0xd2   :  { %v3972_v32 = vpop.permute.xlu1 %2296 }
  0xd4   :  { %387 = vrot.lane.b32.xlu0 %v3604_v25, %s3490_s6  ;;  %1024 = vperm.xlu1 %3266, %v3947_v22   ;;  %v918_v22 = vmul.f32 %v902_v40, %v902_v40 }
  0xd5   :  { %v949_v14 = vpop.permute.xlu0 %948 }
  0xd6   :  { %v3985_v39 = vmul.f32 %v945_v30, %v918_v22  ;;  %v3990_v40 = vpop.permute.xlu1 %2356  ;;  %v905_v22 = vsub.f32 %v3846_v16, %v3671_v44 }
  0xd8   :  { %1029 = vperm.xlu0 %3265, %v3954_v7   ;;  %389 = vrot.lane.b32.xlu1 %v3615_v29, %s3490_s6  ;;  %v903_v7 = vsub.f32 %v3846_v16, %v3662_v43  ;;  %5815 = vst [vmem:[#allocation58_spill] sm:$0xff] %v3985_v39 }
  0xd9   :  { %v3970_v11 = vpop.permute.xlu0 %952 }
  0xda   :  { %v919_v27 = vmul.f32 %v903_v7, %v903_v7  ;;  %v4007_v30 = vpop.permute.xlu1 %2360 }
  0xdc   :  { %391 = vrot.lane.b32.xlu0 %v3648_v41, %s3490_s6  ;;  %1034 = vperm.xlu1 %3266, %v3963_v24   ;;  %v4001_v2 = vmul.f32 %v3910_v18, %v919_v27  ;;  %v3361_v18 = vpop.eup %3360  ;;  %3392 = vlog2.f32 %v3615_v29 }
  0xdd   :  { %v3977_v37 = vpop.permute.xlu0 %2290  ;;  %v3363_v13 = vpop.eup %3362  ;;  %3394 = vlog2.f32 %v3765_v54 }
  0xde   :  { %5816 = vst [vmem:[#allocation59_spill] sm:$0xff] %v4001_v2  ;;  %v4018_v27 = vpop.permute.xlu1 %2300  ;;  %v208_v12 = vmul.f32 0.6931472, %v3363_v13 }
  0xe0   :  { %1039 = vperm.xlu0 %3265, %v3980_v36   ;;  %393 = vrot.lane.b32.xlu1 %v3624_v33, %s3490_s6  ;;  %v920_v36 = vmul.f32 %v904_v0, %v904_v0  ;;  %v3365_v0 = vpop.eup %3364  ;;  %v238_v35 = vmax.f32 %v208_v12, -100.0  ;;  %3396 = vlog2.f32 %v3777_v56 }
  0xe1   :  { %v3993_v34 = vpop.permute.xlu0 %2294 }
  0xe2   :  { %v4027_v23 = vmul.f32 %v949_v14, %v920_v36  ;;  %v4037_v26 = vpop.permute.xlu1 %2304 }
  0xe4   :  { %395 = vrot.lane.b32.xlu0 %v3662_v43, %s3490_s6  ;;  %1044 = vperm.xlu1 %3266, %v3985_v39   ;;  %v921_v39 = vmul.f32 %v905_v22, %v905_v22  ;;  %5818 = vst [vmem:[#allocation61_spill] sm:$0xff] %v4027_v23  ;;  %v4029_v22 = vmul.f32 0.6931472, %v3361_v18 }
  0xe5   :  { %v4009_v7 = vpop.permute.xlu0 %2354 }
  0xe6   :  { %v4051_v36 = vpop.permute.xlu1 %2364 }
  0xe8   :  { %1049 = vperm.xlu0 %3265, %v4001_v2   ;;  %323 = vrot.lane.b32.xlu1 %v3702_v45, %s3484_s23  ;;  %v4023_v2 = vmul.f32 %v3932_v21, %v921_v39  ;;  %v169_v39 = vmax.f32 %v4029_v22, -100.0  ;;  %v206_v21 = vmul.f32 0.6931472, %v3365_v0  ;;  %v3367_v22 = vpop.eup %3366  ;;  %v923_v0 = vmul.f32 %v907_v10, %v907_v10 }
  0xe9   :  { %v4020_v24 = vpop.permute.xlu0 %2358  ;;  %v144_v5 = vmul.f32 0.6931472, %v3367_v22  ;;  %3398 = vlog2.f32 %v3662_v43 }
  0xea   :  { %5817 = vst [vmem:[#allocation60_spill] sm:$0xff] %v4023_v2  ;;  %v237_v13 = vmax.f32 %v206_v21, -100.0  ;;  %v4060_v21 = vmul.f32 %v3945_v3, %v923_v0  ;;  %v4067_v10 = vpop.permute.xlu1 %2368 }
  0xec   :  { %397 = vrot.lane.b32.xlu0 %v3637_v38, %s3490_s6  ;;  %399 = vrot.lane.b32.xlu1 %v3671_v44, %s3490_s6  ;;  %5819 = vst [vmem:[#allocation62_spill] sm:$0xff] %v4060_v21 }
  0xed   :  { %v4039_v14 = vpop.permute.xlu0 %2298 }
  0xee   :  { %v4085_v22 = vpop.permute.xlu1 %2308 }
  0xef   :  { %5821 = vst [vmem:[#allocation64_spill] sm:$0xff] %v4085_v22 }
  0xf0   :  { %1059 = vperm.xlu1 %3266, %v4023_v2   ;;  %1054 = vperm.xlu0 %3265, %v4027_v23   ;;  %v922_v2 = vmul.f32 %v906_v9, %v906_v9  ;;  %v3369_v23 = vpop.eup %3368  ;;  %3400 = vlog2.f32 %v3624_v33 }
  0xf1   :  { %v4053_v18 = vpop.permute.xlu0 %2302  ;;  %v3371_v12 = vpop.eup %3370  ;;  %v4065_v61 = vmul.f32 0.6931472, %v3369_v23  ;;  %3402 = vlog2.f32 %v3772_v55 }
  0xf2   :  { %v4063_v8 = vmul.f32 %v3970_v11, %v922_v2  ;;  %v3373_v31 = vpop.eup %3372  ;;  %v212_v3 = vmul.f32 0.6931472, %v3371_v12  ;;  %v172_v11 = vmax.f32 %v144_v5, -100.0  ;;  %v4097_v57 = vpop.permute.xlu1 %2312  ;;  %3404 = vlog2.f32 %v3786_v58 }
  0xf3   :  { %v171_v23 = vmax.f32 %v4065_v61, -100.0  ;;  %v210_v2 = vmul.f32 0.6931472, %v3373_v31 }
  0xf4   :  { %1479 = vrot.lane.b32.xlu1 %v170_v19, %s3492_s7  ;;  %1477 = vrot.lane.b32.xlu0 %v169_v39, %s3492_s7  ;;  %5820 = vst [vmem:[#allocation63_spill] sm:$0xff] %v4063_v8  ;;  %v240_v61 = vmax.f32 %v212_v3, -100.0 }
  0xf5   :  { %v4069_v9 = vpop.permute.xlu0 %2362  ;;  %v239_v5 = vmax.f32 %v210_v2, -100.0 }
  0xf6   :  { %v4117_v20 = vpop.permute.xlu1 %2372 }
  0xf8   :  { %1559 = vrot.lane.b32.xlu1 %v238_v35, %s3492_s7  ;;  %1557 = vrot.lane.b32.xlu0 %v237_v13, %s3492_s7 }
  0xf9   :  { %v4087_v0 = vpop.permute.xlu0 %2366 }
  0xfc   :  { %403 = vrot.lane.b32.xlu1 %v3702_v45, %s3490_s6  ;;  %401 = vrot.lane.b32.xlu0 %v3655_v42, %s3490_s6  ;;  %v4074_v42 = vstv %s2927_s8 }
  0xfd   :  { %v4082_v17 = vsub.f32 1.0, %v4074_v42  ;;  %v2227_v31 = vmul.f32 %v170_v19, %v4074_v42  ;;  %v4099_v22 = vpop.permute.xlu0 %2306 }
  0xff   :  { %v2243_v12 = vmul.f32 %v4082_v17, %v238_v35  ;;  %v2242_v63 = vmul.f32 %v4082_v17, %v237_v13 }
 0x100   :  { %1069 = vperm.xlu1 %3266, %v4060_v21   ;;  %1064 = vperm.xlu0 %3265, %v4063_v8   ;;  %v3375_v8 = vpop.eup %3374  ;;  %v2226_v21 = vmul.f32 %v169_v39, %v4074_v42  ;;  %3406 = vlog2.f32 %v3671_v44 }
 0x101   :  { %v3377_v59 = vpop.eup %3376  ;;  %v2259_v19 = vadd.f32 %v2243_v12, %v2227_v31  ;;  %v4107_v3 = vmul.f32 0.6931472, %v3375_v8  ;;  %v2229_v12 = vmul.f32 %v172_v11, %v4074_v42  ;;  %3408 = vlog2.f32 %v3797_v60 }
 0x102   :  { %v3379_v35 = vpop.eup %3378  ;;  %v2258_v39 = vadd.f32 %v2242_v63, %v2226_v21  ;;  %v4109_v13 = vmul.f32 0.6931472, %v3377_v59  ;;  %v4119_v63 = vpop.permute.xlu0 %2310  ;;  %3410 = vlog2.f32 %v3637_v38 }
 0x103   :  { %v3381_v2 = vpop.eup %3380  ;;  %v2275_v25 = vsub.f32 0.0, %v2259_v19  ;;  %5822 = vst [vmem:[#allocation65_spill] sm:$0xff] %v4119_v63  ;;  %v174_v59 = vmax.f32 %v4107_v3, -100.0  ;;  %v2245_v19 = vmul.f32 %v4082_v17, %v240_v61  ;;  %v2244_v3 = vmul.f32 %v4082_v17, %v239_v5 }
 0x104   :  { %1483 = vrot.lane.b32.xlu1 %v172_v11, %s3492_s7  ;;  %1481 = vrot.lane.b32.xlu0 %v171_v23, %s3492_s7  ;;  %v2274_v8 = vsub.f32 0.0, %v2258_v39  ;;  %v173_v21 = vmax.f32 %v4109_v13, -100.0  ;;  %v214_v31 = vmul.f32 0.6931472, %v3381_v2  ;;  %3412 = vlog2.f32 %v3813_v4 }
 0x105   :  { %3268 = vset.pattern.permute.xlu1 %v5689_v15  ;;  %3267 = vset.pattern.permute.xlu0 %v5689_v15  ;;  %v216_v15 = vmul.f32 0.6931472, %v3379_v35  ;;  %v2261_v11 = vadd.f32 %v2245_v19, %v2229_v12 }
 0x106   :  { %v2338_v39 = vmul.f32 %v3977_v37, %v2274_v8  ;;  %v241_v13 = vmax.f32 %v214_v31, -100.0  ;;  %v4133_v63 = vpop.permute.xlu0 %2370 }
 0x107   :  { %v242_v35 = vmax.f32 %v216_v15, -100.0  ;;  %v2277_v8 = vsub.f32 0.0, %v2261_v11 }
 0x108   :  { %1563 = vrot.lane.b32.xlu1 %v240_v61, %s3492_s7  ;;  %1561 = vrot.lane.b32.xlu0 %v239_v5, %s3492_s7  ;;  %v4143_v61 = vmul.f32 %v4009_v7, %v2338_v39 }
 0x109   :  { %v2341_v19 = vmul.f32 %v3972_v32, %v2277_v8  ;;  %v2230_v8 = vmul.f32 %v173_v21, %v4074_v42 }
 0x10a   :  { %5824 = vst [vmem:[#allocation67_spill] sm:$0xff] %v4143_v61  ;;  %v4153_v12 = vpop.permute.xlu0 %2374 }
 0x10b   :  { %v4178_v29 = vmul.f32 %v4007_v30, %v2341_v19  ;;  %v2246_v30 = vmul.f32 %v4082_v17, %v241_v13 }
 0x10c   :  { %1671 = vrot.lane.b32.xlu1 %v3709_v46, %s3490_s6  ;;  %1669 = vrot.lane.b32.xlu0 %v3721_v48, %s3490_s6  ;;  %v3383_v46 = vpop.eup %3382  ;;  %v4131_v48 = vpop.permute.xlu1 %2376  ;;  %3414 = vlog2.f32 %v3702_v45 }
 0x10d   :  { %v3385_v2 = vpop.eup %3384  ;;  %v4137_v15 = vmul.f32 0.6931472, %v3383_v46  ;;  %5825 = vst [vmem:[#allocation68_spill] sm:$0xff] %v4178_v29 }
 0x10e   :  { %v4145_v5 = vmul.f32 0.6931472, %v3385_v2  ;;  %v4172_v41 = vpop.permute.xlu0 %2314 }
 0x110   :  { %1675 = vrot.lane.b32.xlu1 %v3716_v47, %s3490_s6  ;;  %1673 = vrot.lane.b32.xlu0 %v3728_v49, %s3490_s6  ;;  %v2228_v49 = vmul.f32 %v171_v23, %v4074_v42  ;;  %v2339_v47 = vmul.f32 %v3959_v28, %v2275_v25  ;;  %v3387_v23 = vpop.eup %3386  ;;  %v4151_v46 = vpop.permute.xlu1 %2316 }
 0x111   :  { %v3389_v25 = vpop.eup %3388  ;;  %v4149_v31 = vmul.f32 0.6931472, %v3387_v23 }
 0x112   :  { %v4140_v28 = vmul.f32 %v3990_v40, %v2339_v47  ;;  %v2260_v37 = vadd.f32 %v2244_v3, %v2228_v49  ;;  %v176_v49 = vmax.f32 %v4137_v15, -100.0  ;;  %v5694_v40 = vmax.f32 %v4145_v5, -100.0 }
 0x113   :  { %v4157_v7 = vmul.f32 0.6931472, %v3389_v25  ;;  %v244_v3 = vmax.f32 %v4149_v31, -100.0  ;;  %v2247_v15 = vmul.f32 %v4082_v17, %v242_v35  ;;  %v3391_v25 = vpop.eup %3390 }
 0x114   :  { %1487 = vrot.lane.b32.xlu1 %v174_v59, %s3492_s7  ;;  %1485 = vrot.lane.b32.xlu0 %v173_v21, %s3492_s7  ;;  %5823 = vst [vmem:[#allocation66_spill] sm:$0xff] %v4140_v28  ;;  %v2276_v47 = vsub.f32 0.0, %v2260_v37  ;;  %v4170_v11 = vpop.permute.xlu1 %2320  ;;  %v4189_v37 = vpop.permute.xlu0 %2318 }
 0x115   :  { %v243_v2 = vmax.f32 %v4157_v7, -100.0  ;;  %v3393_v31 = vpop.eup %3392  ;;  %v2262_v7 = vadd.f32 %v2246_v30, %v2230_v8 }
 0x116   :  { %v2340_v39 = vmul.f32 %v3993_v34, %v2276_v47  ;;  %v2231_v34 = vmul.f32 %v174_v59, %v4074_v42  ;;  %v3395_v59 = vpop.eup %3394  ;;  %v4204_v43 = vmul.f32 0.6931472, %v3393_v31 }
 0x117   :  { %v3397_v21 = vpop.eup %3396  ;;  %v2278_v30 = vsub.f32 0.0, %v2262_v7 }
 0x118   :  { %1567 = vrot.lane.b32.xlu1 %v242_v35, %s3492_s7  ;;  %1565 = vrot.lane.b32.xlu0 %v241_v13, %s3492_s7  ;;  %v4181_v32 = vmul.f32 %v4020_v24, %v2340_v39  ;;  %v4187_v23 = vpop.permute.xlu1 %2380  ;;  %v887_v24 = vsub.f32 %v3846_v16, %v3535_v1  ;;  %v52_v35 = vlaneseq  ;;  %v2263_v47 = vadd.f32 %v2247_v15, %v2231_v34  ;;  %v4209_v16 = vpop.permute.xlu0 %2378 }
 0x119   :  { %v4201_v13 = vmul.f32 0.6931472, %v3391_v25  ;;  %v889_v39 = vrot.slane %v3535_v1, 4  ;;  %v4218_v15 = vmul.f32 0.6931472, %v3395_v59  ;;  %v3399_v59 = vpop.eup %3398 }
 0x11a   :  { %5826 = vst [vmem:[#allocation69_spill] sm:$0xff] %v4181_v32  ;;  %v888_v19 = vmul.f32 %v887_v24, %v887_v24  ;;  %v4216_v34 = vshrl.u32 %v52_v35, 7  ;;  %v4220_v25 = vmul.f32 0.6931472, %v3397_v21  ;;  %v2279_v8 = vsub.f32 0.0, %v2263_v47 }
 0x11b   :  { %v5698_v31 = vmax.f32 %v4201_v13, -100.0  ;;  %v5700_v24 = vmax.f32 %v4204_v43, -100.0  ;;  %v5827_v21 = vmax.f32 %v4145_v5, -100.0  ;;  %v4246_v47 = vand.u32 127, %v52_v35 }
 0x11c   :  { %2432 = vperm.xlu1 %3268, %v4140_v28   ;;  %2427 = vperm.xlu0 %3267, %v4143_v61   ;;  %v4207_v33 = vpop.permute.xlu1 %2384  ;;  %v2233_v61 = vmul.f32 %v176_v49, %v4074_v42  ;;  %v2249_v28 = vmul.f32 %v4082_v17, %v244_v3  ;;  %v54_v1 = vadd.s32 8, %v4216_v34  ;;  %v56_v44 = vadd.s32 24, %v4216_v34 }
 0x11d   :  { %v2232_v7 = vmul.f32 %v5827_v21, %v4074_v42  ;;  %vm71_vm6 = vcmp.lt.s32.totalorder %v4246_v47, %v4216_v34 }
 0x11e   :  { %v2265_v5 = vadd.f32 %v2249_v28, %v2233_v61  ;;  %vm72_vm7 = vcmp.lt.s32.totalorder %v4246_v47, %v54_v1  ;;  %vm74_vm12 = vcmp.lt.s32.totalorder %v4246_v47, %v56_v44  ;;  %v57_v44 = vadd.s32 32, %v4216_v34 }
 0x120   :  { %1489 = vrot.lane.b32.xlu1 %v5694_v40, %s3492_s7  ;;  %1491 = vrot.lane.b32.xlu0 %v176_v49, %s3492_s7  ;;  %v891_v40 = vmul.f32 %v889_v39, %v888_v19  ;;  %v2248_v19 = vmul.f32 %v4082_v17, %v243_v2  ;;  %v5705_v49 = vmax.f32 %v4220_v25, -100.0  ;;  %v4241_v39 = vpop.permute.xlu0 %2382  ;;  %vm75_vm2 = vcmp.lt.s32.totalorder %v4246_v47, %v57_v44 }
 0x121   :  { %v5841_v44 = vmov 1065369472  }
 0x124   :  { %1569 = vrot.lane.b32.xlu1 %v243_v2, %s3492_s7  ;;  %1571 = vrot.lane.b32.xlu0 %v244_v3, %s3492_s7  ;;  %v4239_v3 = vpop.permute.xlu1 %375  ;;  %v5828_v2 = vmax.f32 %v4218_v15, -100.0 }
 0x128   :  { %2442 = vperm.xlu0 %3267, %v4178_v29   ;;  %2437 = vperm.xlu1 %3268, %v4181_v32   ;;  %v990_v29 = vsub.s32 4, %v4216_v34  ;;  %v2343_v32 = vmul.f32 %v4018_v27, %v2279_v8  ;;  %v2264_v27 = vadd.f32 %v2248_v19, %v2232_v7  ;;  %v4256_v8 = vmul.f32 0.6931472, %v3399_v59 }
 0x12c   :  { %1679 = vrot.lane.b32.xlu0 %v3737_v50, %s3490_s6  ;;  %1677 = vrot.lane.b32.xlu1 %v3749_v52, %s3490_s6 }
 0x130   :  { %1683 = vrot.lane.b32.xlu0 %v3744_v51, %s3490_s6  ;;  %1681 = vrot.lane.b32.xlu1 %v3756_v53, %s3490_s6  ;;  %v4254_v53 = vrot.slane %v891_v40, %v990_v29  ;;  %v1000_v35 = vpop.permute.xlu1 %999  ;;  %v4271_v40 = vpop.permute.xlu0 %373  ;;  %v2281_v29 = vsub.f32 0.0, %v2265_v5 }
 0x132   :  { %vm1073_vm8 = vcmp.gt.f32.partialorder %v4254_v53, %v1000_v35  ;;  %v2345_v38 = vmul.f32 %v4037_v26, %v2281_v29  ;;  %vm1129_vm13 = vcmp.eq.f32.partialorder %v4254_v53, %v1000_v35 }
 0x134   :  { %1495 = vrot.lane.b32.xlu0 %v5698_v31, %s3492_s7  ;;  %1493 = vrot.lane.b32.xlu1 %v5700_v24, %s3492_s7  ;;  %v3401_v31 = vpop.eup %3400  ;;  %v2342_v24 = vmul.f32 %v4039_v14, %v2278_v30  ;;  %v4261_v30 = vmul.f32 %v4051_v36, %v2343_v32  ;;  %v5707_v36 = vmax.f32 %v4256_v8, -100.0  ;;  %v4287_v19 = vpop.permute.xlu1 %377 }
 0x135   :  { %v3403_v51 = vpop.eup %3402  ;;  %v4258_v14 = vmul.f32 0.6931472, %v3401_v31 }
 0x136   :  { %v3405_v21 = vpop.eup %3404  ;;  %5829 = vst [vmem:[#allocation70_spill] sm:$0xff] %v4261_v30  ;;  %v4264_v28 = vmul.f32 %v4069_v9, %v2342_v24  ;;  %v4269_v61 = vmul.f32 0.6931472, %v3403_v51  ;;  %v5708_v9 = vmov 0.0   ;;  %v55_v51 = vadd.s32 16, %v4216_v34 }
 0x137   :  { %v4274_v31 = vmul.f32 0.6931472, %v3405_v21  ;;  %v2911_v32 = vsel %vm71_vm6, 1.0, %v5708_v9  ;;  %v2912_v1 = vsel %vm72_vm7, 1.0, %v5708_v9  ;;  %v2280_v24 = vsub.f32 0.0, %v2264_v27  ;;  %v3407_v29 = vpop.eup %3406 }
 0x138   :  { %1575 = vrot.lane.b32.xlu0 %v5828_v2, %s3492_s7  ;;  %1573 = vrot.lane.b32.xlu1 %v5705_v49, %s3492_s7  ;;  %5830 = vst [vmem:[#allocation71_spill] sm:$0xff] %v4264_v28  ;;  %v5706_v59 = vmax.f32 %v4258_v14, -100.0  ;;  %v4298_v21 = vpack.c.bf16 %v2912_v1, %v2911_v32  ;;  %v2962_v27 = vsel %vm1073_vm8, 1.0, %v5708_v9  ;;  %vm73_vm11 = vcmp.lt.s32.totalorder %v4246_v47, %v55_v51 }
 0x139   :  { %v2344_v2 = vmul.f32 %v4053_v18, %v2280_v24  ;;  %v5831_v1 = vmax.f32 %v4269_v61, -100.0  ;;  %v5832_v51 = vmax.f32 %v4274_v31, -100.0  ;;  %v2913_v18 = vsel %vm73_vm11, 1.0, %v5708_v9 }
 0x13a   :  { %v4321_v24 = vmul.f32 %v4067_v10, %v2345_v38  ;;  %v58_v38 = vadd.s32 40, %v4216_v34 }
 0x13b   :  { %v4324_v35 = vmul.f32 %v4087_v0, %v2344_v2  ;;  %v5837_v0 = vmax.f32 %v4204_v43, -100.0 }
 0x13c   :  { %2452 = vperm.xlu0 %3267, %v4261_v30   ;;  %2447 = vperm.xlu1 %3268, %v4264_v28   ;;  %5833 = vst [vmem:[#allocation72_spill] sm:$0xff] %v4321_v24  ;;  %vm76_vm5 = vcmp.lt.s32.totalorder %v4246_v47, %v58_v38  ;;  %v5840_v38 = vmov 0.0   ;;  %v5843_v30 = vmax.f32 %v4256_v8, -100.0  ;;  %v5846_v8 = vmax.f32 %v4274_v31, -100.0 }
 0x13d   :  { %5834 = vst [vmem:[#allocation73_spill] sm:$0xff] %v4324_v35  ;;  %v2234_v2 = vmul.f32 %v5837_v0, %v4074_v42 }
 0x13e   :  { %v2237_v28 = vmul.f32 %v5843_v30, %v4074_v42  ;;  %v2252_v30 = vmul.f32 %v4082_v17, %v5846_v8  ;;  %v61_v8 = vadd.s32 64, %v4216_v34 }
 0x13f   :  { %v995_v5 = vpop.permute.xlu0 %994 }
 0x140   :  { %vm1072_vm9 = vcmp.gt.f32.partialorder %v4254_v53, %v995_v5  ;;  %1499 = vrot.lane.b32.xlu0 %v5707_v36, %s3492_s7  ;;  %1497 = vrot.lane.b32.xlu1 %v5706_v59, %s3492_s7  ;;  %vm1128_vm10 = vcmp.eq.f32.partialorder %v4254_v53, %v995_v5  ;;  %v5835_v5 = vmax.f32 %v4201_v13, -100.0  ;;  %v3409_v13 = vpop.eup %3408 }
 0x141   :  { %v2961_v49 = vsel %vm1072_vm9, 1.0, %v5708_v9  ;;  %vm1144_vm14 = vmpackc.low %vm1129_vm13, %vm1128_vm10  ;;  %v3411_v43 = vpop.eup %3410 }
 0x142   :  { %v1120_v7 = vpack.c.bf16 %v2962_v27, %v2961_v49  ;;  %v2914_v49 = vsel %vm74_vm12, 1.0, %v5708_v9  ;;  %v5836_v27 = vmax.f32 %v4218_v15, -100.0 }
 0x143   :  { %v1005_v59 = vpop.permute.xlu1 %1004  ;;  %v4308_v32 = vpop.permute.xlu0 %379 }
 0x144   :  { %1579 = vrot.lane.b32.xlu0 %v5831_v1, %s3492_s7  ;;  %1577 = vrot.lane.b32.xlu1 %v5832_v51, %s3492_s7  ;;  %v1152_v26 = vsel %vm1144_vm14, %v4298_v21, %v1120_v7  ;;  %vm1074_vm15 = vcmp.gt.f32.partialorder %v4254_v53, %v1005_v59  ;;  %v2235_v7 = vmul.f32 %v5835_v5, %v4074_v42 }
 0x145   :  { %3169 = vmatprep.mubr.bf16.mxu1 %v1152_v26  ;;  %v2251_v1 = vmul.f32 %v4082_v17, %v5836_v27  ;;  %v5838_v26 = vmax.f32 %v4220_v25, -100.0  ;;  %v2963_v15 = vsel %vm1074_vm15, 1.0, %v5708_v9  ;;  %v4349_v27 = vpack.c.bf16 %v2914_v49, %v2913_v18 }
 0x146   :  { %vm1130_vm4 = vcmp.eq.f32.partialorder %v4254_v53, %v1005_v59  ;;  %v4365_v49 = vmul.f32 0.6931472, %v3407_v29  ;;  %v4374_v59 = vmul.f32 0.6931472, %v3411_v43  ;;  %v2916_v29 = vsel %vm76_vm5, 1.0, %v5840_v38 }
 0x147   :  { %v4334_v51 = vpop.permute.xlu1 %381  ;;  %v1010_v10 = vpop.permute.xlu0 %1009  ;;  %v2250_v36 = vmul.f32 %v4082_v17, %v5838_v26  ;;  %5839 = vst [vmem:[#allocation74_spill] sm:$0xff] %v4349_v27  ;;  %v4353_v0 = vadd.f32 %v2251_v1, %v2235_v7  ;;  %v4358_v26 = vld [vmem:[%s5645_s3 + $0x70] sm:$0xff] }
 0x148   :  { %vm1075_vm0 = vcmp.gt.f32.partialorder %v4254_v53, %v1010_v10  ;;  %2462 = vperm.xlu0 %3267, %v4321_v24   ;;  %2457 = vperm.xlu1 %3268, %v4324_v35   ;;  %vm1131_vm1 = vcmp.eq.f32.partialorder %v4254_v53, %v1010_v10  ;;  %3416 = vlog2.f32 %v4358_v26  ;;  %v3413_v7 = vpop.eup %3412  ;;  %v60_v10 = vadd.s32 56, %v4216_v34 }
 0x149   :  { %v2964_v5 = vsel %vm1075_vm0, 1.0, %v5708_v9  ;;  %v2266_v45 = vadd.f32 %v2250_v36, %v2234_v2  ;;  %vm1145_vm6 = vmpackc.low %vm1131_vm1, %vm1130_vm4  ;;  %3418 = vlog2.f32 %v3806_v62  ;;  %v2915_v36 = vsel %vm75_vm2, 1.0, %v5840_v38 }
 0x14a   :  { %v1121_v25 = vpack.c.bf16 %v2964_v5, %v2963_v15  ;;  %v59_v2 = vadd.s32 48, %v4216_v34  ;;  %v2283_v15 = vsub.f32 0.0, %v4353_v0  ;;  %v4385_v5 = vmul.f32 0.6931472, %v3409_v13 }
 0x14b   :  { %v1015_v9 = vpop.permute.xlu1 %1014  ;;  %v4362_v18 = vpop.permute.xlu0 %383  ;;  %3420 = vlog2.f32 %v3822_v6  ;;  %v2282_v24 = vsub.f32 0.0, %v2266_v45  ;;  %v4392_v35 = vmul.f32 0.6931472, %v3413_v7  ;;  %v4404_v45 = vpack.c.bf16 %v2916_v29, %v2915_v36 }
 0x14c   :  { %1687 = vrot.lane.b32.xlu0 %v3765_v54, %s3490_s6  ;;  %1685 = vrot.lane.b32.xlu1 %v3777_v56, %s3490_s6  ;;  %v1153_v1 = vsel %vm1145_vm6, %v4349_v27, %v1121_v25  ;;  %vm1076_vm7 = vcmp.gt.f32.partialorder %v4254_v53, %v1015_v9  ;;  %vm77_vm10 = vcmp.lt.s32.totalorder %v4246_v47, %v59_v2  ;;  %v5845_v7 = vmax.f32 %v4258_v14, -100.0 }
 0x14d   :  { %3170 = vmatmul.mubr.bf16.vlgmr.msra.gmra.mrb[0].mxu1 %v1153_v1  ;;  %v2965_v13 = vsel %vm1076_vm7, 1.0, %v5840_v38  ;;  %5842 = vst [vmem:[#allocation75_spill] sm:$0xff] %v4404_v45  ;;  %vm78_vm11 = vcmp.lt.s32.totalorder %v4246_v47, %v60_v10  ;;  %vm1132_vm12 = vcmp.eq.f32.partialorder %v4254_v53, %v1015_v9  ;;  %v5848_v9 = vmax.f32 %v4374_v59, -100.0 }
 0x14e   :  { %3218 = vmatpush3.bf16.msra.mxu1 %v5841_v44  ;;  %v2236_v54 = vmul.f32 %v5845_v7, %v4074_v42  ;;  %v2917_v31 = vsel %vm77_vm10, 1.0, %v5840_v38  ;;  %v2918_v7 = vsel %vm78_vm11, 1.0, %v5840_v38  ;;  %vm79_vm1 = vcmp.lt.s32.totalorder %v4246_v47, %v61_v8 }
 0x14f   :  { %v4388_v43 = vpop.permute.xlu1 %385  ;;  %v1020_v25 = vpop.permute.xlu0 %1019  ;;  %3219 = vmatprep.subr.bf16.mxu1 %v5841_v44  ;;  %v5854_v8 = vmax.f32 %v4374_v59, -100.0 }
 0x150   :  { %vm1077_vm8 = vcmp.gt.f32.partialorder %v4254_v53, %v1020_v25  ;;  %1691 = vrot.lane.b32.xlu0 %v3772_v55, %s3490_s6  ;;  %1689 = vrot.lane.b32.xlu1 %v3786_v58, %s3490_s6  ;;  %vm1133_vm9 = vcmp.eq.f32.partialorder %v4254_v53, %v1020_v25  ;;  %v5844_v55 = vmax.f32 %v4269_v61, -100.0  ;;  %v5847_v61 = vmax.f32 %v4365_v49, -100.0 }
 0x151   :  { %v2966_v0 = vsel %vm1077_vm8, 1.0, %v5840_v38  ;;  %vm1146_vm13 = vmpackc.low %vm1133_vm9, %vm1132_vm12  ;;  %v2346_v25 = vmul.f32 %v4099_v22, %v2282_v24  ;;  %v2268_v27 = vadd.f32 %v2252_v30, %v2236_v54  ;;  %v5850_v22 = vmax.f32 %v4385_v5, -100.0 }
 0x152   :  { %v1122_v1 = vpack.c.bf16 %v2966_v0, %v2965_v13  ;;  %v2253_v58 = vmul.f32 %v4082_v17, %v5844_v55  ;;  %3220 = vmatpush3.bf16.msra.mxu1 %v5841_v44  ;;  %v3415_v13 = vpop.eup %3414  ;;  %v5851_v24 = vmax.f32 %v4392_v35, -100.0 }
 0x153   :  { %v1025_v36 = vpop.permute.xlu1 %1024  ;;  %v4417_v29 = vpop.permute.xlu0 %387  ;;  %3221 = vmatprep.subr.bf16.mxu1 %v5841_v44  ;;  %v4449_v56 = vmul.f32 0.6931472, %v3415_v13 }
 0x154   :  { %1503 = vrot.lane.b32.xlu0 %v5847_v61, %s3492_s7  ;;  %1501 = vrot.lane.b32.xlu1 %v5848_v9, %s3492_s7  ;;  %v3417_v0 = vpop.eup %3416  ;;  %v1154_v14 = vsel %vm1146_vm13, %v4404_v45, %v1122_v1  ;;  %v5849_v61 = vld [vmem:[#allocation64_spill] sm:$0xff]  ;;  %vm1078_vm14 = vcmp.gt.f32.partialorder %v4254_v53, %v1025_v36  ;;  %v62_v1 = vadd.s32 72, %v4216_v34  ;;  %v2269_v2 = vadd.f32 %v2253_v58, %v2237_v28 }
 0x155   :  { %v2347_v9 = vmul.f32 %v5849_v61, %v2283_v15  ;;  %3173 = vmatprep.mubr.bf16.mxu1 %v1154_v14  ;;  %v3419_v55 = vpop.eup %3418  ;;  %v4454_v50 = vmul.f32 0.6931472, %v3417_v0  ;;  %v4463_v58 = vpack.c.bf16 %v2918_v7, %v2917_v31  ;;  %v2967_v15 = vsel %vm1078_vm14, 1.0, %v5840_v38 }
 0x156   :  { %3222 = vmatpush3.bf16.msra.mxu1 %v5841_v44  ;;  %v3421_v28 = vpop.eup %3420  ;;  %v4476_v0 = vmul.f32 %v4133_v63, %v2346_v25  ;;  %vm80_vm2 = vcmp.lt.s32.totalorder %v4246_v47, %v62_v1  ;;  %v4479_v14 = vmul.f32 0.6931472, %v3419_v55  ;;  %vm1134_vm4 = vcmp.eq.f32.partialorder %v4254_v53, %v1025_v36 }
 0x157   :  { %v4451_v45 = vpop.permute.xlu1 %389  ;;  %v1030_v10 = vpop.permute.xlu0 %1029  ;;  %3223 = vmatprep.subr.bf16.mxu1 %v5841_v44  ;;  %v4473_v13 = vmul.f32 %v4117_v20, %v2347_v9  ;;  %v2285_v61 = vsub.f32 0.0, %v2269_v2  ;;  %v234_v20 = vmul.f32 0.6931472, %v3421_v28  ;;  %v2919_v36 = vsel %vm79_vm1, 1.0, %v5840_v38 }
 0x158   :  { %vm1079_vm15 = vcmp.gt.f32.partialorder %v4254_v53, %v1030_v10  ;;  %1583 = vrot.lane.b32.xlu0 %v5850_v22, %s3492_s7  ;;  %1581 = vrot.lane.b32.xlu1 %v5851_v24, %s3492_s7  ;;  %vm1135_vm0 = vcmp.eq.f32.partialorder %v4254_v53, %v1030_v10  ;;  %5853 = vst [vmem:[#allocation76_spill] sm:$0xff] %v4476_v0  ;;  %v184_v22 = vmax.f32 %v4449_v56, -100.0  ;;  %v2920_v55 = vsel %vm80_vm2, 1.0, %v5840_v38 }
 0x159   :  { %v2968_v54 = vsel %vm1079_vm15, 1.0, %v5840_v38  ;;  %5852 = vst [vmem:[#allocation64_spill] sm:$0xff] %v4473_v13  ;;  %vm1147_vm5 = vmpackc.low %vm1135_vm0, %vm1134_vm4  ;;  %v63_v9 = vadd.s32 80, %v4216_v34  ;;  %v2284_v56 = vsub.f32 0.0, %v2268_v27  ;;  %v183_v25 = vmax.f32 %v4454_v50, -100.0 }
 0x15a   :  { %v1123_v30 = vpack.c.bf16 %v2968_v54, %v2967_v15  ;;  %3224 = vmatpush3.bf16.msra.mxu1 %v5841_v44  ;;  %v64_v1 = vadd.s32 88, %v4216_v34  ;;  %v252_v2 = vmax.f32 %v4479_v14, -100.0  ;;  %v2238_v10 = vmul.f32 %v5854_v8, %v4074_v42  ;;  %v5857_v14 = vld [vmem:[#allocation65_spill] sm:$0xff] }
 0x15b   :  { %v1035_v31 = vpop.permute.xlu1 %1034  ;;  %v4482_v7 = vpop.permute.xlu0 %391  ;;  %3225 = vmatprep.subr.bf16.mxu1 %v5841_v44  ;;  %v5855_v27 = vmax.f32 %v4392_v35, -100.0  ;;  %v251_v15 = vmax.f32 %v234_v20, -100.0  ;;  %v4513_v54 = vpack.c.bf16 %v2920_v55, %v2919_v36  ;;  %vm81_vm9 = vcmp.lt.s32.totalorder %v4246_v47, %v63_v9 }
 0x15c   :  { %2472 = vperm.xlu0 %3267, %v4473_v13   ;;  %2467 = vperm.xlu1 %3268, %v4476_v0   ;;  %v1155_v63 = vsel %vm1147_vm5, %v4463_v58, %v1123_v30  ;;  %vm1080_vm6 = vcmp.gt.f32.partialorder %v4254_v53, %v1035_v31  ;;  %v2349_v35 = vmul.f32 %v4097_v57, %v2285_v61  ;;  %v5858_v36 = vmax.f32 %v4365_v49, -100.0 }
 0x15d   :  { %3174 = vmatmul.mubr.bf16.gmra.mrb[4].mxu1 %v1155_v63  ;;  %v2254_v50 = vmul.f32 %v4082_v17, %v5855_v27  ;;  %5856 = vst [vmem:[#allocation77_spill] sm:$0xff] %v4513_v54  ;;  %v2969_v59 = vsel %vm1080_vm6, 1.0, %v5840_v38  ;;  %v2348_v20 = vmul.f32 %v5857_v14, %v2284_v56  ;;  %vm82_vm10 = vcmp.lt.s32.totalorder %v4246_v47, %v64_v1 }
 0x15e   :  { %3226 = vmatpush3.bf16.msra.mxu1 %v5841_v44  ;;  %v2239_v55 = vmul.f32 %v5858_v36, %v4074_v42  ;;  %v5859_v8 = vmax.f32 %v4385_v5, -100.0  ;;  %vm1136_vm11 = vcmp.eq.f32.partialorder %v4254_v53, %v1035_v31  ;;  %v2240_v61 = vmul.f32 %v183_v25, %v4074_v42 }
 0x15f   :  { %v4504_v24 = vpop.permute.xlu1 %393  ;;  %v1040_v28 = vpop.permute.xlu0 %1039  ;;  %3227 = vmatprep.subr.bf16.mxu1 %v5841_v44  ;;  %v2270_v57 = vadd.f32 %v2254_v50, %v2238_v10  ;;  %v2921_v49 = vsel %vm81_vm9, 1.0, %v5840_v38  ;;  %v2922_v31 = vsel %vm82_vm10, 1.0, %v5840_v38  ;;  %v65_v56 = vadd.s32 96, %v4216_v34 }
 0x160   :  { %vm1081_vm7 = vcmp.gt.f32.partialorder %v4254_v53, %v1040_v28  ;;  %1507 = vrot.lane.b32.xlu0 %v184_v22, %s3492_s7  ;;  %1505 = vrot.lane.b32.xlu1 %v183_v25, %s3492_s7  ;;  %vm1137_vm8 = vcmp.eq.f32.partialorder %v4254_v53, %v1040_v28  ;;  %v2255_v27 = vmul.f32 %v4082_v17, %v5859_v8  ;;  %v66_v1 = vadd.s32 104, %v4216_v34 }
 0x161   :  { %v2970_v30 = vsel %vm1081_vm7, 1.0, %v5840_v38  ;;  %vm1148_vm12 = vmpackc.low %vm1137_vm8, %vm1136_vm11  ;;  %v4547_v25 = vmul.f32 %v4131_v48, %v2349_v35  ;;  %v4550_v10 = vmul.f32 %v4153_v12, %v2348_v20  ;;  %v2256_v28 = vmul.f32 %v4082_v17, %v251_v15 }
 0x162   :  { %v1124_v63 = vpack.c.bf16 %v2970_v30, %v2969_v59  ;;  %3228 = vmatpush3.bf16.msra.mxu1 %v5841_v44  ;;  %v2271_v9 = vadd.f32 %v2255_v27, %v2239_v55  ;;  %v2241_v50 = vmul.f32 %v184_v22, %v4074_v42  ;;  %v2257_v59 = vmul.f32 %v4082_v17, %v252_v2 }
 0x163   :  { %v1045_v13 = vpop.permute.xlu1 %1044  ;;  %v4530_v0 = vpop.permute.xlu0 %395  ;;  %3229 = vmatprep.subr.bf16.mxu1 %v5841_v44  ;;  %5860 = vst [vmem:[#allocation65_spill] sm:$0xff] %v4547_v25  ;;  %5861 = vst [vmem:[#allocation78_spill] sm:$0xff] %v4550_v10  ;;  %v4563_v48 = vpack.c.bf16 %v2922_v31, %v2921_v49  ;;  %vm83_vm0 = vcmp.lt.s32.totalorder %v4246_v47, %v65_v56  ;;  %vm84_vm1 = vcmp.lt.s32.totalorder %v4246_v47, %v66_v1 }
 0x164   :  { %1587 = vrot.lane.b32.xlu0 %v252_v2, %s3492_s7  ;;  %1585 = vrot.lane.b32.xlu1 %v251_v15, %s3492_s7  ;;  %v1156_v5 = vsel %vm1148_vm12, %v4513_v54, %v1124_v63  ;;  %vm1082_vm13 = vcmp.gt.f32.partialorder %v4254_v53, %v1045_v13  ;;  %v2286_v2 = vsub.f32 0.0, %v2270_v57  ;;  %v2272_v15 = vadd.f32 %v2256_v28, %v2240_v61 }
 0x165   :  { %3177 = vmatprep.mubr.bf16.mxu1 %v1156_v5  ;;  %5862 = vst [vmem:[#allocation79_spill] sm:$0xff] %v4563_v48  ;;  %v2971_v12 = vsel %vm1082_vm13, 1.0, %v5840_v38  ;;  %vm1138_vm2 = vcmp.eq.f32.partialorder %v4254_v53, %v1045_v13  ;;  %v2287_v20 = vsub.f32 0.0, %v2271_v9  ;;  %v2273_v63 = vadd.f32 %v2257_v59, %v2241_v50 }
 0x166   :  { %3230 = vmatpush3.bf16.msra.mxu1 %v5841_v44  ;;  %v2923_v8 = vsel %vm83_vm0, 1.0, %v5840_v38  ;;  %v2924_v27 = vsel %vm84_vm1, 1.0, %v5840_v38  ;;  %v2350_v57 = vmul.f32 %v4172_v41, %v2286_v2  ;;  %v2288_v61 = vsub.f32 0.0, %v2272_v15  ;;  %v4618_v2 = vld [vmem:[%s5645_s3] sm:$0xff] }
 0x167   :  { %v4556_v30 = vpop.permute.xlu1 %323  ;;  %v1050_v14 = vpop.permute.xlu0 %1049  ;;  %3231 = vmatprep.subr.bf16.mxu1 %v5841_v44  ;;  %v2351_v49 = vmul.f32 %v4151_v46, %v2287_v20  ;;  %v2289_v5 = vsub.f32 0.0, %v2273_v63  ;;  %v4591_v9 = vpack.c.bf16 %v2924_v27, %v2923_v8  ;;  %v68_v15 = vadd.s32 120, %v4216_v34  ;;  %v5867_v20 = vld [vmem:[#allocation28_spill] sm:$0xff] }
 0x168   :  { %vm1083_vm14 = vcmp.gt.f32.partialorder %v4254_v53, %v1050_v14  ;;  %vm1139_vm15 = vcmp.eq.f32.partialorder %v4254_v53, %v1050_v14  ;;  %2482 = vperm.xlu0 %3267, %v4547_v25   ;;  %2477 = vperm.xlu1 %3268, %v4550_v10   ;;  %v2352_v56 = vmul.f32 %v4189_v37, %v2288_v61  ;;  %v5866_v37 = vld [vmem:[#allocation26_spill] sm:$0xff]  ;;  %v4647_v61 = vld [vmem:[%s5645_s3 + $0x20] sm:$0xff] }
 0x169   :  { %v2972_v22 = vsel %vm1083_vm14, 1.0, %v5840_v38  ;;  %vm1149_vm4 = vmpackc.low %vm1139_vm15, %vm1138_vm2  ;;  %5863 = vst [vmem:[#allocation80_spill] sm:$0xff] %v4591_v9  ;;  %v4605_v1 = vmul.f32 %v4209_v16, %v2350_v57  ;;  %v2353_v59 = vmul.f32 %v4170_v11, %v2289_v5  ;;  %v4609_v14 = vmul.f32 %v4187_v23, %v2351_v49  ;;  %v5870_v49 = vld [vmem:[#allocation32_spill] sm:$0xff] }
 0x16a   :  { %v1125_v35 = vpack.c.bf16 %v2972_v22, %v2971_v12  ;;  %3232 = vmatpush3.bf16.msra.mxu1 %v5841_v44  ;;  %v341_v16 = vsub.f32 %v4618_v2, %v5866_v37  ;;  %v67_v23 = vadd.s32 112, %v4216_v34  ;;  %v345_v5 = vsub.f32 %v4647_v61, %v5870_v49 }
 0x16b   :  { %v4571_v36 = vpop.permute.xlu1 %399  ;;  %v4573_v55 = vpop.permute.xlu0 %397  ;;  %5864 = vst [vmem:[#allocation81_spill] sm:$0xff] %v4605_v1  ;;  %5865 = vst [vmem:[#allocation82_spill] sm:$0xff] %v4609_v14  ;;  %v4638_v8 = vmul.f32 %v4207_v33, %v2353_v59  ;;  %v4655_v33 = vld [vmem:[%s5645_s3 + $0x10] sm:$0xff]  ;;  %vm86_vm11 = vcmp.lt.s32.totalorder %v4246_v47, %v68_v15 }
 0x16c   :  { %1693 = vrot.lane.b32.xlu1 %v3813_v4, %s3490_s6  ;;  %1695 = vrot.lane.b32.xlu0 %v3797_v60, %s3490_s6  ;;  %v1157_v13 = vsel %vm1149_vm4, %v4563_v48, %v1125_v35  ;;  %v4630_v35 = vld [vmem:[%s5645_s3 + $0x8] sm:$0xff]  ;;  %vm85_vm10 = vcmp.lt.s32.totalorder %v4246_v47, %v67_v23  ;;  %v4677_v47 = vld [vmem:[%s5645_s3 + $0x18] sm:$0xff] }
 0x16d   :  { %3178 = vmatmul.mubr.bf16.gmra.mrb[8].mxu1 %v1157_v13  ;;  %v342_v63 = vsub.f32 %v4630_v35, %v5867_v20  ;;  %v4635_v13 = vmul.f32 %v4241_v39, %v2352_v56  ;;  %5869 = vst [vmem:[#allocation28_spill] sm:$0xff] %v4638_v8  ;;  %v5871_v39 = vld [vmem:[#allocation44_spill] sm:$0xff] }
 0x16f   :  { %v1060_v31 = vpop.permute.xlu1 %1059  ;;  %v1055_v28 = vpop.permute.xlu0 %1054  ;;  %5868 = vst [vmem:[#allocation26_spill] sm:$0xff] %v4635_v13 }
 0x170   :  { %vm1085_vm5 = vcmp.gt.f32.partialorder %v4254_v53, %v1060_v31  ;;  %vm1141_vm6 = vcmp.eq.f32.partialorder %v4254_v53, %v1060_v31  ;;  %vm1084_vm7 = vcmp.gt.f32.partialorder %v4254_v53, %v1055_v28  ;;  %vm1140_vm8 = vcmp.eq.f32.partialorder %v4254_v53, %v1055_v28  ;;  %1697 = vrot.lane.b32.xlu1 %v3822_v6, %s3490_s6  ;;  %v5884_v6 = vld [vmem:[#allocation14_spill] sm:$0xff] }
 0x171   :  { %v2974_v41 = vsel %vm1085_vm5, 1.0, %v5840_v38  ;;  %v2973_v46 = vsel %vm1084_vm7, 1.0, %v5840_v38  ;;  %1699 = vrot.lane.b32.xlu0 %v3806_v62, %s3490_s6  ;;  %vm1150_vm9 = vmpackc.low %vm1141_vm6, %vm1140_vm8  ;;  %v357_v31 = vmul.f32 %v341_v16, %v341_v16  ;;  %v343_v28 = vsub.f32 %v4655_v33, %v5871_v39 }
 0x172   :  { %v1126_v50 = vpack.c.bf16 %v2974_v41, %v2973_v46  ;;  %v358_v41 = vmul.f32 %v342_v63, %v342_v63  ;;  %v3495_v16 = vmov 1   ;;  %v361_v63 = vmul.f32 %v345_v5, %v345_v5 }
 0x173   :  { %v4611_v12 = vpop.permute.xlu1 %1479  ;;  %v4613_v22 = vpop.permute.xlu0 %1477  ;;  %v4663_v46 = vmul.f32 %v4271_v40, %v357_v31  ;;  %v5874_v40 = vld [vmem:[#allocation30_spill] sm:$0xff]  ;;  %v359_v15 = vmul.f32 %v343_v28, %v343_v28  ;;  %v5875_v31 = vld [vmem:[#allocation36_spill] sm:$0xff] }
 0x174   :  { %2487 = vperm.xlu1 %3268, %v4605_v1   ;;  %v1158_v11 = vsel %vm1150_vm9, %v4591_v9, %v1126_v50  ;;  %v4670_v59 = vmul.f32 %v4239_v3, %v358_v41  ;;  %v344_v23 = vsub.f32 %v4677_v47, %v5874_v40  ;;  %v4685_v3 = vld [vmem:[%s5645_s3 + $0x30] sm:$0xff] }
 0x175   :  { %2492 = vperm.xlu0 %3267, %v4609_v14   ;;  %3181 = vmatprep.mubr.bf16.mxu1 %v1158_v11  ;;  %5872 = vst [vmem:[#allocation32_spill] sm:$0xff] %v4663_v46  ;;  %v2925_v11 = vsel %vm85_vm10, 1.0, %v5840_v38  ;;  %v347_v41 = vsub.f32 %v4685_v3, %v5875_v31  ;;  %v4694_v14 = vmul.f32 %v4334_v51, %v361_v63 }
 0x176   :  { %5873 = vst [vmem:[#allocation44_spill] sm:$0xff] %v4670_v59  ;;  %v360_v63 = vmul.f32 %v344_v23, %v344_v23 }
 0x177   :  { %v4640_v27 = vpop.permute.xlu1 %1559  ;;  %v4642_v57 = vpop.permute.xlu0 %1557  ;;  %5877 = vst [vmem:[#allocation36_spill] sm:$0xff] %v4694_v14  ;;  %v363_v25 = vmul.f32 %v347_v41, %v347_v41  ;;  %v5885_v41 = vmax.f32 %v5884_v6, -100.0  ;;  %v4750_v6 = vld [vmem:[%s5645_s3 + $0x50] sm:$0xff] }
 0x178   :  { %2497 = vperm.xlu1 %3268, %v4635_v13   ;;  %v4691_v13 = vmul.f32 %v4287_v19, %v359_v15  ;;  %v4705_v19 = vld [vmem:[%s5645_s3 + $0x28] sm:$0xff]  ;;  %v4721_v23 = vmul.f32 %v4308_v32, %v360_v63 }
 0x179   :  { %2502 = vperm.xlu0 %3267, %v4638_v8   ;;  %v2926_v8 = vsel %vm86_vm11, 1.0, %v5840_v38  ;;  %v5879_v15 = vld [vmem:[#allocation34_spill] sm:$0xff] }
 0x17a   :  { %5876 = vst [vmem:[#allocation30_spill] sm:$0xff] %v4691_v13  ;;  %v346_v51 = vsub.f32 %v4705_v19, %v5879_v15  ;;  %5881 = vst [vmem:[#allocation34_spill] sm:$0xff] %v4721_v23 }
 0x17b   :  { %v4665_v56 = vpop.permute.xlu1 %403  ;;  %v4667_v50 = vpop.permute.xlu0 %401 }
 0x17c   :  { %3269 = vset.pattern.permute.xlu1 %v3495_v16  ;;  %v362_v63 = vmul.f32 %v346_v51, %v346_v51 }
 0x17d   :  { %3270 = vset.pattern.permute.xlu0 %v3495_v16  ;;  %447 = vperm.xlu1 %3269, %v4663_v46   ;;  %v4696_v16 = vpack.c.bf16 %v2926_v8, %v2925_v11  ;;  %v4715_v46 = vld [vmem:[%s5645_s3 + $0x40] sm:$0xff] }
 0x17e   :  { %452 = vperm.xlu0 %3270, %v4670_v59   ;;  %v5880_v59 = vld [vmem:[#allocation38_spill] sm:$0xff] }
 0x17f   :  { %v1070_v5 = vpop.permute.xlu1 %1069  ;;  %v1065_v28 = vpop.permute.xlu0 %1064  ;;  %5878 = vst [vmem:[#allocation83_spill] sm:$0xff] %v4696_v16  ;;  %v349_v1 = vsub.f32 %v4715_v46, %v5880_v59 }
 0x180   :  { %vm1087_vm12 = vcmp.gt.f32.partialorder %v4254_v53, %v1070_v5  ;;  %vm1143_vm13 = vcmp.eq.f32.partialorder %v4254_v53, %v1070_v5  ;;  %vm1086_vm14 = vcmp.gt.f32.partialorder %v4254_v53, %v1065_v28  ;;  %vm1142_vm15 = vcmp.eq.f32.partialorder %v4254_v53, %v1065_v28  ;;  %v4742_v28 = vld [vmem:[%s5645_s3 + $0x38] sm:$0xff]  ;;  %v5887_v53 = vld [vmem:[#allocation37_spill] sm:$0xff] }
 0x181   :  { %v2976_v8 = vsel %vm1087_vm12, 1.0, %v5840_v38  ;;  %v2975_v11 = vsel %vm1086_vm14, 1.0, %v5840_v38  ;;  %457 = vperm.xlu1 %3269, %v4691_v13   ;;  %vm1151_vm0 = vmpackc.low %vm1143_vm13, %vm1142_vm15  ;;  %v5882_v13 = vld [vmem:[#allocation13_spill] sm:$0xff]  ;;  %v348_v5 = vsub.f32 %v4742_v28, %v5887_v53 }
 0x182   :  { %v1127_v10 = vpack.c.bf16 %v2976_v8, %v2975_v11  ;;  %467 = vperm.xlu0 %3270, %v4694_v14   ;;  %v5883_v48 = vmax.f32 %v5882_v13, -100.0  ;;  %v2217_v8 = vmul.f32 %v4082_v17, %v5885_v41  ;;  %v4736_v11 = vmul.f32 %v4388_v43, %v363_v25  ;;  %v4764_v41 = vld [vmem:[%s5645_s3 + $0x48] sm:$0xff] }
 0x183   :  { %v1484_v44 = vpop.permute.xlu1 %1483  ;;  %v4723_v9 = vpop.permute.xlu0 %1481  ;;  %v365_v43 = vmul.f32 %v349_v1, %v349_v1  ;;  %v4756_v25 = vmul.f32 %v4362_v18, %v362_v63  ;;  %v364_v1 = vmul.f32 %v348_v5, %v348_v5  ;;  %v4772_v18 = vld [vmem:[%s5645_s3 + $0x60] sm:$0xff] }
 0x184   :  { %v2215_v62 = vmul.f32 %v5883_v48, %v4074_v42  ;;  %5886 = vst [vmem:[#allocation38_spill] sm:$0xff] %v4736_v11  ;;  %v1159_v32 = vsel %vm1151_vm0, %v4696_v16, %v1127_v10  ;;  %v5888_v42 = vld [vmem:[#allocation39_spill] sm:$0xff]  ;;  %5892 = vst [vmem:[#allocation37_spill] sm:$0xff] %v4772_v18 }
 0x185   :  { %462 = vperm.xlu1 %3269, %v4721_v23   ;;  %3182 = vmatmul.mubr.bf16.gmra.mrb[12].mxu1 %v1159_v32  ;;  %v351_v17 = vsub.f32 %v4750_v6, %v5888_v42  ;;  %5889 = vst [vmem:[#allocation13_spill] sm:$0xff] %v4756_v25  ;;  %v4759_v51 = vmul.f32 %v4451_v45, %v365_v43  ;;  %v5891_v32 = vld [vmem:[#allocation46_spill] sm:$0xff]  ;;  %v5896_v16 = vld [vmem:[#allocation11_spill] sm:$0xff] }
 0x186   :  { %477 = vperm.xlu0 %3270, %v4736_v11   ;;  %v2218_v13 = vadd.f32 %v2217_v8, %v2215_v62  ;;  %v350_v14 = vsub.f32 %v4764_v41, %v5891_v32  ;;  %v5893_v62 = vld [vmem:[#allocation41_spill] sm:$0xff]  ;;  %v4778_v63 = vmul.f32 %v4417_v29, %v364_v1  ;;  %v5895_v43 = vld [vmem:[#allocation18_spill] sm:$0xff]  ;;  %v2220_v60 = vrot.slane %v5896_v16, 3 }
 0x187   :  { %v1564_v10 = vpop.permute.xlu1 %1563  ;;  %v1562_v48 = vpop.permute.xlu0 %1561  ;;  %5890 = vst [vmem:[#allocation14_spill] sm:$0xff] %v4759_v51  ;;  %v353_v45 = vsub.f32 %v4772_v18, %v5893_v62  ;;  %v367_v8 = vmul.f32 %v351_v17, %v351_v17  ;;  %v1605_v11 = vmul.f32 %v4642_v57, %v5895_v43  ;;  %v4789_v17 = vld [vmem:[%s5645_s3 + $0x58] sm:$0xff]  ;;  %v1525_v57 = vmul.f32 %v4618_v2, %v4613_v22  ;;  %v5901_v62 = vld [vmem:[#allocation17_spill] sm:$0xff] }
 0x188   :  { %5894 = vst [vmem:[#allocation39_spill] sm:$0xff] %v4778_v63  ;;  %v366_v1 = vmul.f32 %v350_v14, %v350_v14  ;;  %v1608_v18 = vmul.f32 %v1564_v10, %v5901_v62  ;;  %v4808_v14 = vld [vmem:[%s5644_s2] sm:$0xff] }
 0x189   :  { %472 = vperm.xlu1 %3269, %v4756_v25   ;;  %v2219_v25 = vsub.f32 0.0, %v2218_v13  ;;  %v4784_v4 = vmul.f32 %v4504_v24, %v367_v8  ;;  %v5899_v13 = vld [vmem:[#allocation43_spill] sm:$0xff]  ;;  %v369_v43 = vmul.f32 %v353_v45, %v353_v45  ;;  %v1621_v8 = vadd.f32 %v1605_v11, %v1525_v57  ;;  %v5903_v11 = vld [vmem:[#allocation48_spill] sm:$0xff] }
 0x18a   :  { %487 = vperm.xlu0 %3270, %v4759_v51   ;;  %v5898_v51 = vld [vmem:[#allocation47_spill] sm:$0xff]  ;;  %v355_v16 = vsub.f32 %v4358_v26, %v5899_v13  ;;  %v4800_v24 = vmul.f32 %v4482_v7, %v366_v1  ;;  %v2223_v22 = vrot.slane %v4808_v14, 1  ;;  %v4817_v7 = vld [vmem:[%s5645_s3 + $0x68] sm:$0xff]  ;;  %v5904_v1 = vld [vmem:[#allocation16_spill] sm:$0xff] }
 0x18b   :  { %v1672_v5 = vpop.permute.xlu1 %1671  ;;  %v1670_v23 = vpop.permute.xlu0 %1669  ;;  %5897 = vst [vmem:[#allocation46_spill] sm:$0xff] %v4784_v4  ;;  %v352_v29 = vsub.f32 %v4789_v17, %v5898_v51  ;;  %v2222_v2 = vmul.f32 %v2220_v60, %v2219_v25  ;;  %v4812_v45 = vmul.f32 %v4573_v55, %v369_v43  ;;  %v354_v10 = vsub.f32 %v4817_v7, %v5903_v11 }
 0x18c   :  { %5900 = vst [vmem:[#allocation18_spill] sm:$0xff] %v4800_v24  ;;  %v1606_v57 = vmul.f32 %v4640_v27, %v5904_v1  ;;  %v371_v60 = vmul.f32 %v355_v16, %v355_v16  ;;  %v1526_v25 = vmul.f32 %v4630_v35, %v4611_v12  ;;  %v2423_v11 = vsub.s32 5, %v4216_v34  ;;  %v5907_v35 = vld [vmem:[#allocation19_spill] sm:$0xff] }
 0x18d   :  { %482 = vperm.xlu1 %3269, %v4778_v63   ;;  %5902 = vst [vmem:[#allocation11_spill] sm:$0xff] %v4812_v45  ;;  %v368_v62 = vmul.f32 %v352_v29, %v352_v29  ;;  %v1637_v63 = vsub.f32 0.0, %v1621_v8  ;;  %v2225_v27 = vmul.f32 %v2223_v22, %v2222_v2  ;;  %v370_v16 = vmul.f32 %v354_v10, %v354_v10 }
 0x18e   :  { %497 = vperm.xlu0 %3270, %v4784_v4   ;;  %v1528_v4 = vmul.f32 %v4677_v47, %v1484_v44  ;;  %v4833_v44 = vmul.f32 %v4667_v50, %v371_v60  ;;  %v4838_v47 = vld [vmem:[%s5645_s3 + $0x78] sm:$0xff]  ;;  %v1622_v12 = vadd.f32 %v1606_v57, %v1526_v25  ;;  %v1527_v1 = vmul.f32 %v4655_v33, %v4723_v9 }
 0x18f   :  { %v1676_v54 = vpop.permute.xlu1 %1675  ;;  %v4803_v51 = vpop.permute.xlu0 %1673  ;;  %v4827_v55 = vmul.f32 %v4530_v0, %v368_v62  ;;  %v356_v0 = vsub.f32 %v4838_v47, %v4556_v30  ;;  %v4846_v50 = vmul.f32 %v4571_v36, %v370_v16  ;;  %v4848_v62 = vrot.slane %v2225_v27, %v2423_v11 }
 0x190   :  { %v1624_v43 = vadd.f32 %v1608_v18, %v1528_v4  ;;  %5906 = vst [vmem:[#allocation16_spill] sm:$0xff] %v4833_v44  ;;  %v1717_v4 = vmul.f32 %v1670_v23, %v1637_v63  ;;  %v1607_v18 = vmul.f32 %v1562_v48, %v5907_v35  ;;  %v1638_v57 = vsub.f32 0.0, %v1622_v12 }
 0x191   :  { %492 = vperm.xlu1 %3269, %v4800_v24   ;;  %5905 = vst [vmem:[#allocation17_spill] sm:$0xff] %v4827_v55  ;;  %5908 = vst [vmem:[#allocation19_spill] sm:$0xff] %v4846_v50  ;;  %v372_v10 = vmul.f32 %v356_v0, %v356_v0  ;;  %v3496_v60 = vmov 3  }
 0x192   :  { %507 = vperm.xlu0 %3270, %v4812_v45   ;;  %v1640_v8 = vsub.f32 0.0, %v1624_v43  ;;  %v4853_v23 = vmul.f32 %v1717_v4, %v5866_v37  ;;  %v1623_v48 = vadd.f32 %v1607_v18, %v1527_v1  ;;  %v1718_v25 = vmul.f32 %v1672_v5, %v1638_v57  ;;  %v5910_v4 = vld [vmem:[#allocation20_spill] sm:$0xff] }
 0x193   :  { %v1488_v13 = vpop.permute.xlu1 %1487  ;;  %v1486_v29 = vpop.permute.xlu0 %1485  ;;  %v4857_v36 = vmul.f32 %v4665_v56, %v372_v10 }
 0x194   :  { %v1720_v63 = vmul.f32 %v1676_v54, %v1640_v8  ;;  %v1639_v33 = vsub.f32 0.0, %v1623_v48  ;;  %v4872_v0 = vmul.f32 %v1718_v25, %v5867_v20  ;;  %v1529_v18 = vmul.f32 %v4647_v61, %v1486_v29 }
 0x195   :  { %502 = vperm.xlu1 %3269, %v4827_v55   ;;  %5909 = vst [vmem:[#allocation84_spill] sm:$0xff] %v4857_v36  ;;  %v1530_v20 = vmul.f32 %v4705_v19, %v1488_v13 }
 0x196   :  { %517 = vperm.xlu0 %3270, %v4833_v44   ;;  %v4865_v54 = vmul.f32 %v1720_v63, %v5874_v40  ;;  %v1719_v16 = vmul.f32 %v4803_v51, %v1639_v33  ;;  %v5911_v63 = vld [vmem:[#allocation22_spill] sm:$0xff] }
 0x197   :  { %v1568_v22 = vpop.permute.xlu1 %1567  ;;  %v1566_v2 = vpop.permute.xlu0 %1565 }
 0x198   :  { %v1609_v12 = vmul.f32 %v1566_v2, %v3749_v52  ;;  %v1610_v35 = vmul.f32 %v1568_v22, %v5910_v4  ;;  %v4881_v10 = vmul.f32 %v1719_v16, %v5871_v39  ;;  %v5912_v52 = vld [vmem:[#allocation21_spill] sm:$0xff] }
 0x199   :  { %512 = vperm.xlu1 %3269, %v4846_v50  }
 0x19a   :  { %3271 = vset.pattern.permute.xlu0 %v3496_v60  ;;  %v1625_v51 = vadd.f32 %v1609_v12, %v1529_v18  ;;  %v1626_v57 = vadd.f32 %v1610_v35, %v1530_v20 }
 0x19b   :  { %1758 = vperm.xlu0 %3271, %v4853_v23   ;;  %v2433_v11 = vpop.permute.xlu1 %2432  ;;  %v2428_v43 = vpop.permute.xlu0 %2427 }
 0x19c   :  { %vm2506_vm1 = vcmp.gt.f32.partialorder %v4848_v62, %v2433_v11  ;;  %vm2562_vm2 = vcmp.eq.f32.partialorder %v4848_v62, %v2433_v11  ;;  %vm2505_vm4 = vcmp.gt.f32.partialorder %v4848_v62, %v2428_v43  ;;  %vm2561_vm5 = vcmp.eq.f32.partialorder %v4848_v62, %v2428_v43 }
 0x19d   :  { %v3026_v9 = vsel %vm2506_vm1, 1.0, %v5840_v38  ;;  %v3025_v37 = vsel %vm2505_vm4, 1.0, %v5840_v38  ;;  %522 = vperm.xlu1 %3269, %v4857_v36   ;;  %vm2577_vm6 = vmpackc.low %vm2562_vm2, %vm2561_vm5  ;;  %v1641_v13 = vsub.f32 0.0, %v1625_v51  ;;  %v1642_v43 = vsub.f32 0.0, %v1626_v57 }
 0x19e   :  { %v2553_v56 = vpack.c.bf16 %v3026_v9, %v3025_v37 }
 0x19f   :  { %1773 = vperm.xlu0 %3271, %v4865_v54   ;;  %v1490_v5 = vpop.permute.xlu1 %1489  ;;  %v1492_v27 = vpop.permute.xlu0 %1491 }
 0x1a0   :  { %v2585_v40 = vsel %vm2577_vm6, %v4298_v21, %v2553_v56  ;;  %v1531_v22 = vmul.f32 %v4685_v3, %v1490_v5  ;;  %v5913_v56 = vld [vmem:[#allocation74_spill] sm:$0xff] }
 0x1a1   :  { %3272 = vset.pattern.permute.xlu1 %v3496_v60  ;;  %3233 = vmatprep.mubr.bf16.mxu1 %v2585_v40  ;;  %v1532_v60 = vmul.f32 %v4742_v28, %v1492_v27 }
 0x1a2   :  { %1763 = vperm.xlu1 %3272, %v4872_v0  }
 0x1a3   :  { %v1570_v8 = vpop.permute.xlu1 %1569  ;;  %v1572_v1 = vpop.permute.xlu0 %1571 }
 0x1a4   :  { %v1611_v48 = vmul.f32 %v1570_v8, %v5911_v63  ;;  %v1612_v2 = vmul.f32 %v1572_v1, %v5912_v52 }
 0x1a6   :  { %1768 = vperm.xlu1 %3272, %v4881_v10   ;;  %v1627_v25 = vadd.f32 %v1611_v48, %v1531_v22  ;;  %v1628_v11 = vadd.f32 %v1612_v2, %v1532_v60  ;;  %v5914_v60 = vld [vmem:[#allocation75_spill] sm:$0xff] }
 0x1a7   :  { %v2438_v61 = vpop.permute.xlu1 %2437  ;;  %v2443_v29 = vpop.permute.xlu0 %2442 }
 0x1a8   :  { %vm2507_vm7 = vcmp.gt.f32.partialorder %v4848_v62, %v2438_v61  ;;  %vm2563_vm8 = vcmp.eq.f32.partialorder %v4848_v62, %v2438_v61  ;;  %vm2508_vm9 = vcmp.gt.f32.partialorder %v4848_v62, %v2443_v29  ;;  %vm2564_vm10 = vcmp.eq.f32.partialorder %v4848_v62, %v2443_v29  ;;  %v5915_v29 = vld [vmem:[#allocation25_spill] sm:$0xff] }
 0x1a9   :  { %v3027_v39 = vsel %vm2507_vm7, 1.0, %v5840_v38  ;;  %v3028_v19 = vsel %vm2508_vm9, 1.0, %v5840_v38  ;;  %vm2578_vm11 = vmpackc.low %vm2564_vm10, %vm2563_vm8  ;;  %v1643_v40 = vsub.f32 0.0, %v1627_v25  ;;  %v1644_v12 = vsub.f32 0.0, %v1628_v11 }
 0x1aa   :  { %v2554_v3 = vpack.c.bf16 %v3028_v19, %v3027_v39  ;;  %v5916_v19 = vld [vmem:[#allocation23_spill] sm:$0xff] }
 0x1ab   :  { %v1678_v28 = vpop.permute.xlu1 %1677  ;;  %v1680_v9 = vpop.permute.xlu0 %1679 }
 0x1ac   :  { %v1721_v37 = vmul.f32 %v1678_v28, %v1641_v13  ;;  %v1722_v33 = vmul.f32 %v1680_v9, %v1642_v43  ;;  %v2586_v5 = vsel %vm2578_vm11, %v5913_v56, %v2554_v3 }
 0x1ad   :  { %3234 = vmatmul.mubr.bf16.vlgmr.msra.gmra.mrb[16].mxu1 %v2586_v5  ;;  %v5918_v5 = vld [vmem:[#allocation24_spill] sm:$0xff] }
 0x1ae   :  { %v4897_v27 = vmul.f32 %v1721_v37, %v5870_v49  ;;  %v4900_v16 = vmul.f32 %v1722_v33, %v5879_v15  ;;  %v5917_v37 = vld [vmem:[#allocation27_spill] sm:$0xff] }
 0x1af   :  { %v1682_v4 = vpop.permute.xlu1 %1681  ;;  %v1684_v35 = vpop.permute.xlu0 %1683 }
 0x1b0   :  { %v1723_v18 = vmul.f32 %v1682_v4, %v1643_v40  ;;  %v1724_v8 = vmul.f32 %v1684_v35, %v1644_v12  ;;  %1778 = vperm.xlu1 %3272, %v4897_v27   ;;  %1783 = vperm.xlu0 %3271, %v4900_v16  }
 0x1b2   :  { %v4905_v1 = vmul.f32 %v1723_v18, %v5875_v31  ;;  %v4908_v20 = vmul.f32 %v1724_v8, %v5887_v53 }
 0x1b3   :  { %v1494_v49 = vpop.permute.xlu1 %1493  ;;  %v1496_v51 = vpop.permute.xlu0 %1495 }
 0x1b4   :  { %1788 = vperm.xlu1 %3272, %v4905_v1   ;;  %1793 = vperm.xlu0 %3271, %v4908_v20   ;;  %v1533_v25 = vmul.f32 %v4715_v46, %v1494_v49  ;;  %v1534_v43 = vmul.f32 %v4764_v41, %v1496_v51 }
 0x1b7   :  { %v1574_v15 = vpop.permute.xlu1 %1573  ;;  %v1576_v57 = vpop.permute.xlu0 %1575 }
 0x1b8   :  { %v1613_v39 = vmul.f32 %v1574_v15, %v5915_v29  ;;  %v1614_v13 = vmul.f32 %v1576_v57, %v5916_v19 }
 0x1ba   :  { %v1629_v28 = vadd.f32 %v1613_v39, %v1533_v25  ;;  %v1630_v9 = vadd.f32 %v1614_v13, %v1534_v43  ;;  %v5919_v25 = vld [vmem:[#allocation47_spill] sm:$0xff] }
 0x1bb   :  { %v2448_v63 = vpop.permute.xlu1 %2447  ;;  %v2453_v48 = vpop.permute.xlu0 %2452 }
 0x1bc   :  { %vm2509_vm12 = vcmp.gt.f32.partialorder %v4848_v62, %v2448_v63  ;;  %vm2565_vm13 = vcmp.eq.f32.partialorder %v4848_v62, %v2448_v63  ;;  %vm2510_vm14 = vcmp.gt.f32.partialorder %v4848_v62, %v2453_v48  ;;  %vm2566_vm15 = vcmp.eq.f32.partialorder %v4848_v62, %v2453_v48 }
 0x1bd   :  { %v3029_v31 = vsel %vm2509_vm12, 1.0, %v5840_v38  ;;  %v3030_v53 = vsel %vm2510_vm14, 1.0, %v5840_v38  ;;  %vm2579_vm0 = vmpackc.low %vm2566_vm15, %vm2565_vm13  ;;  %v1645_v8 = vsub.f32 0.0, %v1629_v28  ;;  %v1646_v15 = vsub.f32 0.0, %v1630_v9 }
 0x1be   :  { %v2555_v52 = vpack.c.bf16 %v3030_v53, %v3029_v31 }
 0x1bf   :  { %v1498_v2 = vpop.permute.xlu1 %1497  ;;  %v1500_v22 = vpop.permute.xlu0 %1499 }
 0x1c0   :  { %v2587_v61 = vsel %vm2579_vm0, %v5914_v60, %v2555_v52  ;;  %v1535_v12 = vmul.f32 %v4750_v6, %v1498_v2  ;;  %v1536_v4 = vmul.f32 %v4789_v17, %v1500_v22 }
 0x1c1   :  { %3237 = vmatprep.mubr.bf16.mxu1 %v2587_v61 }
 0x1c3   :  { %v1578_v11 = vpop.permute.xlu1 %1577  ;;  %v1580_v3 = vpop.permute.xlu0 %1579 }
 0x1c4   :  { %v1615_v33 = vmul.f32 %v1578_v11, %v5917_v37  ;;  %v1616_v40 = vmul.f32 %v1580_v3, %v5918_v5 }
 0x1c6   :  { %v1631_v49 = vadd.f32 %v1615_v33, %v1535_v12  ;;  %v1632_v51 = vadd.f32 %v1616_v40, %v1536_v4  ;;  %v5920_v12 = vld [vmem:[#allocation77_spill] sm:$0xff] }
 0x1c7   :  { %v2458_v35 = vpop.permute.xlu1 %2457  ;;  %v2463_v18 = vpop.permute.xlu0 %2462 }
 0x1c8   :  { %vm2511_vm1 = vcmp.gt.f32.partialorder %v4848_v62, %v2458_v35  ;;  %vm2567_vm2 = vcmp.eq.f32.partialorder %v4848_v62, %v2458_v35  ;;  %vm2512_vm4 = vcmp.gt.f32.partialorder %v4848_v62, %v2463_v18  ;;  %vm2568_vm5 = vcmp.eq.f32.partialorder %v4848_v62, %v2463_v18  ;;  %v5921_v35 = vld [vmem:[#allocation33_spill] sm:$0xff] }
 0x1c9   :  { %v3031_v46 = vsel %vm2511_vm1, 1.0, %v5840_v38  ;;  %v3032_v41 = vsel %vm2512_vm4, 1.0, %v5840_v38  ;;  %vm2580_vm6 = vmpackc.low %vm2568_vm5, %vm2567_vm2  ;;  %v1647_v2 = vsub.f32 0.0, %v1631_v49  ;;  %v1648_v22 = vsub.f32 0.0, %v1632_v51 }
 0x1ca   :  { %v2556_v6 = vpack.c.bf16 %v3032_v41, %v3031_v46  ;;  %v5922_v46 = vld [vmem:[#allocation29_spill] sm:$0xff] }
 0x1cb   :  { %v1686_v17 = vpop.permute.xlu1 %1685  ;;  %v1688_v57 = vpop.permute.xlu0 %1687 }
 0x1cc   :  { %v1725_v63 = vmul.f32 %v1686_v17, %v1645_v8  ;;  %v1726_v48 = vmul.f32 %v1688_v57, %v1646_v15  ;;  %v2588_v31 = vsel %vm2580_vm6, %v4463_v58, %v2556_v6  ;;  %v5923_v8 = vld [vmem:[#allocation37_spill] sm:$0xff]  ;;  %v5924_v57 = vld [vmem:[#allocation35_spill] sm:$0xff] }
 0x1cd   :  { %3238 = vmatmul.mubr.bf16.gmra.mrb[20].mxu1 %v2588_v31 }
 0x1ce   :  { %v4935_v53 = vmul.f32 %v1725_v63, %v5880_v59  ;;  %v4938_v52 = vmul.f32 %v1726_v48, %v5891_v32  ;;  %v5925_v48 = vld [vmem:[#allocation31_spill] sm:$0xff] }
 0x1cf   :  { %v1690_v61 = vpop.permute.xlu1 %1689  ;;  %v1692_v29 = vpop.permute.xlu0 %1691 }
 0x1d0   :  { %v1727_v39 = vmul.f32 %v1690_v61, %v1647_v2  ;;  %v1728_v19 = vmul.f32 %v1692_v29, %v1648_v22  ;;  %1798 = vperm.xlu1 %3272, %v4935_v53   ;;  %1803 = vperm.xlu0 %3271, %v4938_v52  }
 0x1d2   :  { %v4943_v13 = vmul.f32 %v1727_v39, %v5888_v42  ;;  %v4946_v11 = vmul.f32 %v1728_v19, %v5919_v25 }
 0x1d3   :  { %v1502_v59 = vpop.permute.xlu1 %1501  ;;  %v1504_v3 = vpop.permute.xlu0 %1503 }
 0x1d4   :  { %1808 = vperm.xlu1 %3272, %v4943_v13   ;;  %1813 = vperm.xlu0 %3271, %v4946_v11   ;;  %v1537_v49 = vmul.f32 %v5923_v8, %v1502_v59  ;;  %v1538_v15 = vmul.f32 %v4817_v7, %v1504_v3 }
 0x1d7   :  { %v1582_v32 = vpop.permute.xlu1 %1581  ;;  %v1584_v43 = vpop.permute.xlu0 %1583 }
 0x1d8   :  { %v1617_v18 = vmul.f32 %v1582_v32, %v5921_v35  ;;  %v1618_v41 = vmul.f32 %v1584_v43, %v5922_v46 }
 0x1da   :  { %v1633_v17 = vadd.f32 %v1617_v18, %v1537_v49  ;;  %v1634_v2 = vadd.f32 %v1618_v41, %v1538_v15  ;;  %v5930_v18 = vld [vmem:[#allocation48_spill] sm:$0xff]  ;;  %v274_v15 = vrot.slane %v4808_v14, 7 }
 0x1db   :  { %v2468_v28 = vpop.permute.xlu1 %2467  ;;  %v2473_v9 = vpop.permute.xlu0 %2472 }
 0x1dc   :  { %vm2513_vm7 = vcmp.gt.f32.partialorder %v4848_v62, %v2468_v28  ;;  %vm2569_vm8 = vcmp.eq.f32.partialorder %v4848_v62, %v2468_v28  ;;  %vm2514_vm9 = vcmp.gt.f32.partialorder %v4848_v62, %v2473_v9  ;;  %vm2570_vm10 = vcmp.eq.f32.partialorder %v4848_v62, %v2473_v9  ;;  %v5926_v28 = vld [vmem:[#allocation9_spill] sm:$0xff] }
 0x1dd   :  { %v3033_v42 = vsel %vm2513_vm7, 1.0, %v5840_v38  ;;  %v3034_v37 = vsel %vm2514_vm9, 1.0, %v5840_v38  ;;  %vm2581_vm11 = vmpackc.low %vm2570_vm10, %vm2569_vm8  ;;  %v1649_v25 = vsub.f32 0.0, %v1633_v17  ;;  %v5927_v9 = vrot.slane %v5926_v28, 3 }
 0x1de   :  { %v2557_v33 = vpack.c.bf16 %v3034_v37, %v3033_v42 }
 0x1df   :  { %v1506_v5 = vpop.permute.xlu1 %1505  ;;  %v1508_v40 = vpop.permute.xlu0 %1507  ;;  %v272_v42 = vsub.f32 %v4808_v14, %v5927_v9 }
 0x1e0   :  { %v2589_v4 = vsel %vm2581_vm11, %v5920_v12, %v2557_v33  ;;  %v1539_v22 = vmul.f32 %v4358_v26, %v1506_v5  ;;  %v1540_v61 = vmul.f32 %v4838_v47, %v1508_v40  ;;  %v1650_v26 = vsub.f32 0.0, %v1634_v2  ;;  %v5928_v5 = vld [vmem:[#allocation79_spill] sm:$0xff] }
 0x1e1   :  { %3241 = vmatprep.mubr.bf16.mxu1 %v2589_v4  ;;  %v5929_v4 = vld [vmem:[#allocation41_spill] sm:$0xff] }
 0x1e3   :  { %v1586_v51 = vpop.permute.xlu1 %1585  ;;  %v1588_v6 = vpop.permute.xlu0 %1587 }
 0x1e4   :  { %v1619_v63 = vmul.f32 %v1586_v51, %v5924_v57  ;;  %v1620_v31 = vmul.f32 %v1588_v6, %v5925_v48  ;;  %v273_v6 = vmul.f32 %v272_v42, %v272_v42 }
 0x1e6   :  { %v1636_v59 = vadd.f32 %v1620_v31, %v1540_v61  ;;  %v1635_v32 = vadd.f32 %v1619_v63, %v1539_v22  ;;  %v5931_v63 = vld [vmem:[#allocation43_spill] sm:$0xff]  ;;  %v276_v22 = vmul.f32 %v274_v15, %v273_v6  ;;  %v443_v61 = vsub.s32 1, %v4216_v34 }
 0x1e7   :  { %v2478_v29 = vpop.permute.xlu1 %2477  ;;  %v2483_v39 = vpop.permute.xlu0 %2482 }
 0x1e8   :  { %vm2515_vm12 = vcmp.gt.f32.partialorder %v4848_v62, %v2478_v29  ;;  %vm2571_vm13 = vcmp.eq.f32.partialorder %v4848_v62, %v2478_v29  ;;  %vm2516_vm14 = vcmp.gt.f32.partialorder %v4848_v62, %v2483_v39  ;;  %vm2572_vm15 = vcmp.eq.f32.partialorder %v4848_v62, %v2483_v39 }
 0x1e9   :  { %v3035_v7 = vsel %vm2515_vm12, 1.0, %v5840_v38  ;;  %v3036_v19 = vsel %vm2516_vm14, 1.0, %v5840_v38  ;;  %vm2582_vm0 = vmpackc.low %vm2572_vm15, %vm2571_vm13  ;;  %v1651_v41 = vsub.f32 0.0, %v1635_v32  ;;  %v1652_v8 = vsub.f32 0.0, %v1636_v59 }
 0x1ea   :  { %v2558_v3 = vpack.c.bf16 %v3036_v19, %v3035_v7  ;;  %v4999_v19 = vrot.slane %v276_v22, %v443_v61  ;;  %v5933_v59 = vmov 5  }
 0x1eb   :  { %v1694_v47 = vpop.permute.xlu1 %1693  ;;  %v1696_v43 = vpop.permute.xlu0 %1695 }
 0x1ec   :  { %v1729_v37 = vmul.f32 %v1694_v47, %v1649_v25  ;;  %v1730_v33 = vmul.f32 %v1696_v43, %v1650_v26  ;;  %v2590_v40 = vsel %vm2582_vm0, %v5928_v5, %v2558_v3  ;;  %v5934_v26 = vld [vmem:[#allocation80_spill] sm:$0xff] }
 0x1ed   :  { %3242 = vmatmul.mubr.bf16.gmra.mrb[24].mxu1 %v2590_v40 }
 0x1ee   :  { %v4976_v35 = vmul.f32 %v1729_v37, %v5929_v4  ;;  %v4979_v46 = vmul.f32 %v1730_v33, %v5930_v18  ;;  %v5935_v37 = vld [vmem:[#allocation83_spill] sm:$0xff]  ;;  %v5936_v4 = vld [vmem:[#allocation10_spill] sm:$0xff] }
 0x1ef   :  { %v1698_v49 = vpop.permute.xlu1 %1697  ;;  %v1700_v51 = vpop.permute.xlu0 %1699  ;;  %v1428_v18 = vrot.slane %v5936_v4, 4 }
 0x1f0   :  { %v1731_v17 = vmul.f32 %v1698_v49, %v1651_v41  ;;  %v1732_v57 = vmul.f32 %v1700_v51, %v1652_v8  ;;  %1818 = vperm.xlu1 %3272, %v4976_v35   ;;  %1823 = vperm.xlu0 %3271, %v4979_v46  }
 0x1f2   :  { %v4985_v48 = vmul.f32 %v1731_v17, %v5931_v63  ;;  %v4988_v31 = vmul.f32 %v1732_v57, %v4556_v30 }
 0x1f3   :  { %v2488_v2 = vpop.permute.xlu1 %2487 }
 0x1f4   :  { %5932 = vst [vmem:[#allocation20_spill] sm:$0xff] %v4988_v31  ;;  %vm2517_vm1 = vcmp.gt.f32.partialorder %v4848_v62, %v2488_v2  ;;  %v2493_v29 = vpop.permute.xlu0 %2492  ;;  %1828 = vperm.xlu1 %3272, %v4985_v48   ;;  %1833 = vperm.xlu0 %3271, %v4988_v31   ;;  %vm2573_vm2 = vcmp.eq.f32.partialorder %v4848_v62, %v2488_v2 }
 0x1f5   :  { %v3037_v14 = vsel %vm2517_vm1, 1.0, %v5840_v38  ;;  %vm2518_vm4 = vcmp.gt.f32.partialorder %v4848_v62, %v2493_v29  ;;  %vm2574_vm5 = vcmp.eq.f32.partialorder %v4848_v62, %v2493_v29  ;;  %v5937_v29 = vmov 0  }
 0x1f6   :  { %v3038_v30 = vsel %vm2518_vm4, 1.0, %v5840_v38  ;;  %vm2583_vm6 = vmpackc.low %vm2574_vm5, %vm2573_vm2  ;;  %vm1429_vm2 = vcmp.ne.s32.totalorder %v1428_v18, 0 }
 0x1f7   :  { %v2559_v39 = vpack.c.bf16 %v3038_v30, %v3037_v14  ;;  %v2498_v7 = vpop.permute.xlu1 %2497  ;;  %v5938_v30 = vld [vmem:[#allocation42_spill] sm:$0xff] }
 0x1f8   :  { %vm2519_vm7 = vcmp.gt.f32.partialorder %v4848_v62, %v2498_v7  ;;  %vm2575_vm8 = vcmp.eq.f32.partialorder %v4848_v62, %v2498_v7  ;;  %v2503_v25 = vpop.permute.xlu0 %2502  ;;  %3353 = vset.pattern.permute.xlu0 %v5933_v59  ;;  %v266_v28 = vcvt.f32.s32 %v5938_v30 }
 0x1f9   :  { %v3039_v3 = vsel %vm2519_vm7, 1.0, %v5840_v38  ;;  %vm2520_vm9 = vcmp.gt.f32.partialorder %v4848_v62, %v2503_v25  ;;  %vm2576_vm10 = vcmp.eq.f32.partialorder %v4848_v62, %v2503_v25  ;;  %v2591_v32 = vsel %vm2583_vm6, %v5934_v26, %v2559_v39  ;;  %vm1430_vm6 = vmand %vm1425_vm3, %vm1429_vm2  ;;  %v5939_v25 = vld [vmem:[#allocation12_spill] sm:$0xff] }
 0x1fa   :  { %v3040_v47 = vsel %vm2520_vm9, 1.0, %v5840_v38  ;;  %3245 = vmatprep.mubr.bf16.mxu1 %v2591_v32  ;;  %vm2584_vm11 = vmpackc.low %vm2576_vm10, %vm2575_vm8  ;;  %vm1432_vm10 = vcmask 1042434   ;;  %v1431_v14 = vsel %vm1430_vm6, 1, %v5937_v29  ;;  %v2203_v59 = vand.u32 65535, %v5939_v25 }
 0x1fb   :  { %v2560_v43 = vpack.c.bf16 %v3040_v47, %v3039_v3  ;;  %v5940_v32 = vmov 1065369472  }
 0x1fc   :  { %v448_v9 = vpop.permute.xlu1 %447  ;;  %v2205_v4 = vcvt.s32.f32 %v2203_v59 }
 0x1fd   :  { %vm525_vm12 = vcmp.gt.f32.partialorder %v4999_v19, %v448_v9  ;;  %v453_v42 = vpop.permute.xlu0 %452  ;;  %v2592_v33 = vsel %vm2584_vm11, %v5935_v37, %v2560_v43  ;;  %vm581_vm13 = vcmp.eq.f32.partialorder %v4999_v19, %v448_v9  ;;  %v1433_v43 = vsel %vm1432_vm10, %v1431_v14, 0 }
 0x1fe   :  { %v2929_v40 = vsel %vm525_vm12, 1.0, %v5840_v38  ;;  %vm526_vm14 = vcmp.gt.f32.partialorder %v4999_v19, %v453_v42  ;;  %vm582_vm15 = vcmp.eq.f32.partialorder %v4999_v19, %v453_v42  ;;  %3246 = vmatmul.mubr.bf16.gmra.mrb[28].mxu1 %v2592_v33  ;;  %v267_v33 = vshll.u32 %v266_v28, 16 }
 0x1ff   :  { %v2930_v62 = vsel %vm526_vm14, 1.0, %v5840_v38  ;;  %vm597_vm0 = vmpackc.low %vm582_vm15, %vm581_vm13 }
 0x200   :  { %v573_v41 = vpack.c.bf16 %v2930_v62, %v2929_v40  ;;  %v458_v8 = vpop.permute.xlu1 %457 }
 0x201   :  { %v468_v49 = vpop.permute.xlu0 %467  ;;  %vm527_vm1 = vcmp.gt.f32.partialorder %v4999_v19, %v458_v8  ;;  %vm583_vm7 = vcmp.eq.f32.partialorder %v4999_v19, %v458_v8  ;;  %v5941_v8 = vld [vmem:[#allocation40_spill] sm:$0xff] }
 0x202   :  { %v605_v51 = vsel %vm597_vm0, %v4298_v21, %v573_v41  ;;  %v2931_v17 = vsel %vm527_vm1, 1.0, %v5840_v38  ;;  %vm529_vm8 = vcmp.gt.f32.partialorder %v4999_v19, %v468_v49  ;;  %vm585_vm3 = vcmp.eq.f32.partialorder %v4999_v19, %v468_v49 }
 0x203   :  { %3137 = vmatprep.mubr.bf16.mxu0 %v605_v51  ;;  %v2933_v39 = vsel %vm529_vm8, 1.0, %v5840_v38  ;;  %v1435_v41 = vshrl.u32 %v1433_v43, 16  ;;  %v265_v49 = vcvt.f32.s32 %v5941_v8 }
 0x204   :  { %v463_v6 = vpop.permute.xlu1 %462 }
 0x205   :  { %vm528_vm4 = vcmp.gt.f32.partialorder %v4999_v19, %v463_v6  ;;  %vm584_vm5 = vcmp.eq.f32.partialorder %v4999_v19, %v463_v6  ;;  %v478_v15 = vpop.permute.xlu0 %477  ;;  %v2204_v6 = vshrl.u32 %v5939_v25, 16  ;;  %v1437_v14 = vcvt.s32.f32 %v1435_v41  ;;  %v5943_v41 = vld [vmem:[#allocation15_spill] sm:$0xff] }
 0x206   :  { %v2932_v57 = vsel %vm528_vm4, 1.0, %v5840_v38  ;;  %vm598_vm9 = vmpackc.low %vm584_vm5, %vm583_vm7  ;;  %vm531_vm13 = vcmp.gt.f32.partialorder %v4999_v19, %v478_v15  ;;  %vm587_vm1 = vcmp.eq.f32.partialorder %v4999_v19, %v478_v15 }
 0x207   :  { %v574_v63 = vpack.c.bf16 %v2932_v57, %v2931_v17  ;;  %v2935_v40 = vsel %vm531_vm13, 1.0, %v5840_v38  ;;  %v5057_v57 = vstv %s5642_s0  ;;  %v2206_v28 = vcvt.s32.f32 %v2204_v6  ;;  %s3497_s0 = smov 3  }
 0x208   :  { %v473_v2 = vpop.permute.xlu1 %472 }
 0x209   :  { %vm530_vm11 = vcmp.gt.f32.partialorder %v4999_v19, %v473_v2  ;;  %vm586_vm12 = vcmp.eq.f32.partialorder %v4999_v19, %v473_v2  ;;  %v488_v22 = vpop.permute.xlu0 %487  ;;  %v606_v61 = vsel %vm598_vm9, %v5913_v56, %v574_v63  ;;  %v5059_v63 = vadd.s32 %v267_v33, %v265_v49 }
 0x20a   :  { %v2934_v7 = vsel %vm530_vm11, 1.0, %v5840_v38  ;;  %3138 = vmatmul.mubr.bf16.vlgmr.msra.gmra.mrb[0].mxu0 %v606_v61  ;;  %vm599_vm14 = vmpackc.low %vm586_vm12, %vm585_vm3  ;;  %vm533_vm2 = vcmp.gt.f32.partialorder %v4999_v19, %v488_v22  ;;  %vm589_vm7 = vcmp.eq.f32.partialorder %v4999_v19, %v488_v22  ;;  %v5755_v49 = vsub.s32 0, %v4216_v34 }
 0x20b   :  { %v575_v3 = vpack.c.bf16 %v2934_v7, %v2933_v39  ;;  %3186 = vmatpush3.bf16.msra.mxu0 %v5940_v32  ;;  %5942 = vst [vmem:[#allocation22_spill] sm:$0xff] %v5059_v63  ;;  %v2937_v2 = vsel %vm533_vm2, 1.0, %v5840_v38  ;;  %v1434_v39 = vand.u32 65535, %v1433_v43  ;;  %vm438_vm12 = vcmp.lt.s32.totalorder %v5057_v57, %v5059_v63 }
 0x20c   :  { %v483_v47 = vpop.permute.xlu1 %482  ;;  %3187 = vmatprep.subr.bf16.mxu0 %v5940_v32  ;;  %v5081_v33 = vsel %vm438_vm12, %v5057_v57, %v5059_v63 }
 0x20d   :  { %vm532_vm15 = vcmp.gt.f32.partialorder %v4999_v19, %v483_v47  ;;  %vm588_vm0 = vcmp.eq.f32.partialorder %v4999_v19, %v483_v47  ;;  %v498_v9 = vpop.permute.xlu0 %497  ;;  %v607_v42 = vsel %vm599_vm14, %v5914_v60, %v575_v3  ;;  %v1754_v47 = vsub.s32 3, %v4216_v34 }
 0x20e   :  { %v2936_v62 = vsel %vm532_vm15, 1.0, %v5840_v38  ;;  %3141 = vmatprep.mubr.bf16.mxu0 %v607_v42  ;;  %vm600_vm4 = vmpackc.low %vm588_vm0, %vm587_vm1  ;;  %vm535_vm8 = vcmp.gt.f32.partialorder %v4999_v19, %v498_v9  ;;  %vm591_vm3 = vcmp.eq.f32.partialorder %v4999_v19, %v498_v9  ;;  %v1436_v42 = vcvt.s32.f32 %v1434_v39 }
 0x20f   :  { %v576_v18 = vpack.c.bf16 %v2936_v62, %v2935_v40  ;;  %3188 = vmatpush3.bf16.msra.mxu0 %v5940_v32  ;;  %v2939_v25 = vsel %vm535_vm8, 1.0, %v5840_v38  ;;  %v5092_v8 = vrot.slane %v5943_v41, %v1754_v47 }
 0x210   :  { %v493_v51 = vpop.permute.xlu1 %492  ;;  %3189 = vmatprep.subr.bf16.mxu0 %v5940_v32 }
 0x211   :  { %vm534_vm5 = vcmp.gt.f32.partialorder %v4999_v19, %v493_v51  ;;  %vm590_vm6 = vcmp.eq.f32.partialorder %v4999_v19, %v493_v51  ;;  %v508_v17 = vpop.permute.xlu0 %507  ;;  %v608_v15 = vsel %vm600_vm4, %v4463_v58, %v576_v18  ;;  %v440_v51 = vcvt.s32.f32 %v5081_v33 }
 0x212   :  { %v2938_v61 = vsel %vm534_vm5, 1.0, %v5840_v38  ;;  %3142 = vmatmul.mubr.bf16.gmra.mrb[4].mxu0 %v608_v15  ;;  %vm601_vm9 = vmpackc.low %vm590_vm6, %vm589_vm7  ;;  %vm537_vm13 = vcmp.gt.f32.partialorder %v4999_v19, %v508_v17  ;;  %vm593_vm1 = vcmp.eq.f32.partialorder %v4999_v19, %v508_v17 }
 0x213   :  { %v577_v29 = vpack.c.bf16 %v2938_v61, %v2937_v2  ;;  %3190 = vmatpush3.bf16.msra.mxu0 %v5940_v32  ;;  %2207 = vadd.xlane.f32.xlu0 %v2205_v4  ;;  %v2941_v40 = vsel %vm537_vm13, 1.0, %v5840_v38 }
 0x214   :  { %v503_v30 = vpop.permute.xlu1 %502  ;;  %3191 = vmatprep.subr.bf16.mxu0 %v5940_v32 }
 0x215   :  { %vm536_vm10 = vcmp.gt.f32.partialorder %v4999_v19, %v503_v30  ;;  %vm592_vm11 = vcmp.eq.f32.partialorder %v4999_v19, %v503_v30  ;;  %v518_v7 = vpop.permute.xlu0 %517  ;;  %v609_v22 = vsel %vm601_vm9, %v5920_v12, %v577_v29  ;;  %v5106_v29 = vrot.slane %v440_v51, %v5755_v49 }
 0x216   :  { %v2940_v59 = vsel %vm536_vm10, 1.0, %v5840_v38  ;;  %3145 = vmatprep.mubr.bf16.mxu0 %v609_v22  ;;  %vm602_vm14 = vmpackc.low %vm592_vm11, %vm591_vm3  ;;  %vm539_vm2 = vcmp.gt.f32.partialorder %v4999_v19, %v518_v7  ;;  %vm595_vm7 = vcmp.eq.f32.partialorder %v4999_v19, %v518_v7 }
 0x217   :  { %v578_v3 = vpack.c.bf16 %v2940_v59, %v2939_v25  ;;  %3192 = vmatpush3.bf16.msra.mxu0 %v5940_v32  ;;  %1440 = vadd.xlane.f32.xlu0 %v1437_v14  ;;  %v2943_v15 = vsel %vm539_vm2, 1.0, %v5840_v38 }
 0x218   :  { %v513_v43 = vpop.permute.xlu1 %512  ;;  %2209 = vadd.xlane.f32.xlu1 %v2206_v28  ;;  %3193 = vmatprep.subr.bf16.mxu0 %v5940_v32 }
 0x219   :  { %vm538_vm15 = vcmp.gt.f32.partialorder %v4999_v19, %v513_v43  ;;  %vm594_vm0 = vcmp.eq.f32.partialorder %v4999_v19, %v513_v43  ;;  %v610_v9 = vsel %vm602_vm14, %v5928_v5, %v578_v3 }
 0x21a   :  { %v2942_v62 = vsel %vm538_vm15, 1.0, %v5840_v38  ;;  %v1759_v4 = vpop.permute.xlu0 %1758  ;;  %3146 = vmatmul.mubr.bf16.gmra.mrb[8].mxu0 %v610_v9  ;;  %vm603_vm4 = vmpackc.low %vm594_vm0, %vm593_vm1 }
 0x21b   :  { %v579_v18 = vpack.c.bf16 %v2942_v62, %v2941_v40  ;;  %3194 = vmatpush3.bf16.msra.mxu0 %v5940_v32  ;;  %vm1836_vm8 = vcmp.gt.f32.partialorder %v5092_v8, %v1759_v4  ;;  %vm1892_vm13 = vcmp.eq.f32.partialorder %v5092_v8, %v1759_v4 }
 0x21c   :  { %v523_v6 = vpop.permute.xlu1 %522  ;;  %3195 = vmatprep.subr.bf16.mxu0 %v5940_v32  ;;  %1438 = vadd.xlane.f32.xlu1 %v1436_v42  ;;  %v2993_v7 = vsel %vm1836_vm8, 1.0, %v5840_v38 }
 0x21d   :  { %vm540_vm5 = vcmp.gt.f32.partialorder %v4999_v19, %v523_v6  ;;  %vm596_vm6 = vcmp.eq.f32.partialorder %v4999_v19, %v523_v6  ;;  %v611_v17 = vsel %vm603_vm4, %v5934_v26, %v579_v18 }
 0x21e   :  { %v2944_v2 = vsel %vm540_vm5, 1.0, %v5840_v38  ;;  %3149 = vmatprep.mubr.bf16.mxu0 %v611_v17  ;;  %vm604_vm9 = vmpackc.low %vm596_vm6, %vm595_vm7  ;;  %v1774_v14 = vpop.permute.xlu0 %1773 }
 0x21f   :  { %v580_v61 = vpack.c.bf16 %v2944_v2, %v2943_v15  ;;  %3196 = vmatpush3.bf16.msra.mxu0 %v5940_v32  ;;  %vm1839_vm14 = vcmp.gt.f32.partialorder %v5092_v8, %v1774_v14  ;;  %vm1895_vm5 = vcmp.eq.f32.partialorder %v5092_v8, %v1774_v14 }
 0x220   :  { %3197 = vmatprep.subr.bf16.mxu0 %v5940_v32  ;;  %v3171_v30 = vpop.f32.mrb[0].mxu1  ;;  %v2996_v4 = vsel %vm1839_vm14, 1.0, %v5840_v38 }
 0x221   :  { %v1764_v28 = vpop.permute.xlu1 %1763  ;;  %v612_v39 = vsel %vm604_vm9, %v5935_v37, %v580_v61  ;;  %vm1259_vm10 = vcmp.lt.f32.partialorder %v3171_v30, %v5106_v29  ;;  %v1194_v19 = vpop.f32.mrb[1].mxu1 }
 0x222   :  { %vm1837_vm11 = vcmp.gt.f32.partialorder %v5092_v8, %v1764_v28  ;;  %3150 = vmatmul.mubr.bf16.gmra.mrb[12].mxu0 %v612_v39  ;;  %vm1257_vm12 = vcmp.lt.f32.partialorder %v1194_v19, %v5106_v29  ;;  %vm1893_vm3 = vcmp.eq.f32.partialorder %v5092_v8, %v1764_v28  ;;  %v3172_v25 = vpop.f32.mrb[2].mxu1  ;;  %v5125_v47 = vsel %vm1259_vm10, 1.0, %v5840_v38 }
 0x223   :  { %v2994_v22 = vsel %vm1837_vm11, 1.0, %v5840_v38  ;;  %3198 = vmatpush3.bf16.msra.mxu0 %v5940_v32  ;;  %vm1260_vm15 = vcmp.lt.f32.partialorder %v3172_v25, %v5106_v29  ;;  %v1197_v3 = vpop.f32.mrb[3].mxu1  ;;  %v5128_v43 = vsel %vm1257_vm12, 1.0, %v5840_v38  ;;  %vm1908_vm1 = vmpackc.low %vm1893_vm3, %vm1892_vm13 }
 0x224   :  { %v1884_v59 = vpack.c.bf16 %v2994_v22, %v2993_v7  ;;  %3199 = vmatprep.subr.bf16.mxu0 %v5940_v32  ;;  %v5131_v42 = vsel %vm1260_vm15, 1.0, %v5840_v38  ;;  %vm1258_vm0 = vcmp.lt.f32.partialorder %v1197_v3, %v5106_v29 }
 0x225   :  { %v1769_v9 = vpop.permute.xlu1 %1768  ;;  %v5137_v62 = vsel %vm1258_vm0, 1.0, %v5840_v38 }
 0x226   :  { %vm1838_vm2 = vcmp.gt.f32.partialorder %v5092_v8, %v1769_v9  ;;  %vm1894_vm4 = vcmp.eq.f32.partialorder %v5092_v8, %v1769_v9  ;;  %v1916_v51 = vsel %vm1908_vm1, %v4298_v21, %v1884_v59 }
 0x227   :  { %v2995_v41 = vsel %vm1838_vm2, 1.0, %v5840_v38  ;;  %3200 = vmatpush3.bf16.msra.mxu0 %v5940_v32  ;;  %3201 = vmatprep.mubr.bf16.mxu0 %v1916_v51  ;;  %vm1909_vm6 = vmpackc.low %vm1895_vm5, %vm1894_vm4 }
 0x228   :  { %v1885_v6 = vpack.c.bf16 %v2996_v4, %v2995_v41 }
 0x22a   :  { %v1917_v17 = vsel %vm1909_vm6, %v5913_v56, %v1885_v6 }
 0x22b   :  { %3202 = vmatmul.mubr.bf16.vlgmr.msra.gmra.mrb[16].mxu0 %v1917_v17 }
 0x22f   :  { %v1779_v15 = vpop.permute.xlu1 %1778  ;;  %v1784_v2 = vpop.permute.xlu0 %1783 }
 0x230   :  { %vm1840_vm7 = vcmp.gt.f32.partialorder %v5092_v8, %v1779_v15  ;;  %vm1841_vm8 = vcmp.gt.f32.partialorder %v5092_v8, %v1784_v2  ;;  %v3175_v30 = vpop.f32.mrb[4].mxu1  ;;  %vm1896_vm9 = vcmp.eq.f32.partialorder %v5092_v8, %v1779_v15  ;;  %vm1897_vm11 = vcmp.eq.f32.partialorder %v5092_v8, %v1784_v2 }
 0x231   :  { %v2997_v61 = vsel %vm1840_vm7, 1.0, %v5840_v38  ;;  %v2998_v21 = vsel %vm1841_vm8, 1.0, %v5840_v38  ;;  %vm1263_vm10 = vcmp.lt.f32.partialorder %v3175_v30, %v5106_v29  ;;  %v1210_v32 = vpop.f32.mrb[5].mxu1  ;;  %vm1910_vm1 = vmpackc.low %vm1897_vm11, %vm1896_vm9 }
 0x232   :  { %v1886_v14 = vpack.c.bf16 %v2998_v21, %v2997_v61  ;;  %v5157_v56 = vsel %vm1263_vm10, 1.0, %v5840_v38  ;;  %vm1261_vm12 = vcmp.lt.f32.partialorder %v1210_v32, %v5106_v29  ;;  %v3176_v28 = vpop.f32.mrb[6].mxu1 }
 0x233   :  { %v1789_v39 = vpop.permute.xlu1 %1788  ;;  %v5161_v19 = vsel %vm1261_vm12, 1.0, %v5840_v38  ;;  %vm1264_vm3 = vcmp.lt.f32.partialorder %v3176_v28, %v5106_v29  ;;  %v1213_v7 = vpop.f32.mrb[7].mxu1 }
 0x234   :  { %vm1842_vm13 = vcmp.gt.f32.partialorder %v5092_v8, %v1789_v39  ;;  %vm1898_vm14 = vcmp.eq.f32.partialorder %v5092_v8, %v1789_v39  ;;  %v1794_v22 = vpop.permute.xlu0 %1793  ;;  %v5167_v25 = vsel %vm1264_vm3, 1.0, %v5840_v38  ;;  %vm1262_vm15 = vcmp.lt.f32.partialorder %v1213_v7, %v5106_v29 }
 0x235   :  { %v2999_v59 = vsel %vm1842_vm13, 1.0, %v5840_v38  ;;  %vm1843_vm0 = vcmp.gt.f32.partialorder %v5092_v8, %v1794_v22  ;;  %v5179_v9 = vsel %vm1262_vm15, 1.0, %v5840_v38  ;;  %vm1899_vm2 = vcmp.eq.f32.partialorder %v5092_v8, %v1794_v22 }
 0x236   :  { %v3000_v4 = vsel %vm1843_vm0, 1.0, %v5840_v38  ;;  %v1918_v6 = vsel %vm1910_vm1, %v5914_v60, %v1886_v14  ;;  %vm1911_vm4 = vmpackc.low %vm1899_vm2, %vm1898_vm14 }
 0x237   :  { %v1887_v51 = vpack.c.bf16 %v3000_v4, %v2999_v59  ;;  %3205 = vmatprep.mubr.bf16.mxu0 %v1918_v6 }
 0x239   :  { %v1919_v17 = vsel %vm1911_vm4, %v4463_v58, %v1887_v51 }
 0x23a   :  { %3206 = vmatmul.mubr.bf16.gmra.mrb[20].mxu0 %v1919_v17 }
 0x240   :  { %v3179_v15 = vpop.f32.mrb[8].mxu1 }
 0x241   :  { %vm1267_vm5 = vcmp.lt.f32.partialorder %v3179_v15, %v5106_v29  ;;  %v1226_v2 = vpop.f32.mrb[9].mxu1 }
 0x242   :  { %vm1265_vm6 = vcmp.lt.f32.partialorder %v1226_v2, %v5106_v29  ;;  %v3180_v61 = vpop.f32.mrb[10].mxu1  ;;  %v5191_v30 = vsel %vm1267_vm5, 1.0, %v5840_v38 }
 0x243   :  { %vm1268_vm7 = vcmp.lt.f32.partialorder %v3180_v61, %v5106_v29  ;;  %v1229_v21 = vpop.f32.mrb[11].mxu1  ;;  %v5198_v58 = vsel %vm1265_vm6, 1.0, %v5840_v38 }
 0x244   :  { %v5194_v60 = vsel %vm1268_vm7, 1.0, %v5840_v38  ;;  %vm1266_vm8 = vcmp.lt.f32.partialorder %v1229_v21, %v5106_v29 }
 0x245   :  { %v5203_v14 = vsel %vm1266_vm8, 1.0, %v5840_v38 }
 0x24f   :  { %v1799_v39 = vpop.permute.xlu1 %1798  ;;  %v1804_v7 = vpop.permute.xlu0 %1803 }
 0x250   :  { %vm1844_vm9 = vcmp.gt.f32.partialorder %v5092_v8, %v1799_v39  ;;  %vm1845_vm10 = vcmp.gt.f32.partialorder %v5092_v8, %v1804_v7  ;;  %vm1900_vm11 = vcmp.eq.f32.partialorder %v5092_v8, %v1799_v39  ;;  %vm1901_vm12 = vcmp.eq.f32.partialorder %v5092_v8, %v1804_v7 }
 0x251   :  { %v3001_v22 = vsel %vm1844_vm9, 1.0, %v5840_v38  ;;  %v3002_v59 = vsel %vm1845_vm10, 1.0, %v5840_v38  ;;  %vm1912_vm3 = vmpackc.low %vm1901_vm12, %vm1900_vm11 }
 0x252   :  { %v1888_v4 = vpack.c.bf16 %v3002_v59, %v3001_v22 }
 0x253   :  { %v1809_v51 = vpop.permute.xlu1 %1808  ;;  %v1814_v6 = vpop.permute.xlu0 %1813 }
 0x254   :  { %vm1846_vm13 = vcmp.gt.f32.partialorder %v5092_v8, %v1809_v51  ;;  %vm1902_vm14 = vcmp.eq.f32.partialorder %v5092_v8, %v1809_v51  ;;  %vm1847_vm15 = vcmp.gt.f32.partialorder %v5092_v8, %v1814_v6  ;;  %vm1903_vm0 = vcmp.eq.f32.partialorder %v5092_v8, %v1814_v6 }
 0x255   :  { %v3003_v17 = vsel %vm1846_vm13, 1.0, %v5840_v38  ;;  %v3004_v15 = vsel %vm1847_vm15, 1.0, %v5840_v38  ;;  %v1920_v2 = vsel %vm1912_vm3, %v5920_v12, %v1888_v4  ;;  %vm1913_vm1 = vmpackc.low %vm1903_vm0, %vm1902_vm14 }
 0x256   :  { %v1889_v61 = vpack.c.bf16 %v3004_v15, %v3003_v17  ;;  %3209 = vmatprep.mubr.bf16.mxu0 %v1920_v2 }
 0x258   :  { %v5220_v21 = vpop.f32.mrb[12].mxu1  ;;  %v1921_v39 = vsel %vm1913_vm1, %v5928_v5, %v1889_v61 }
 0x259   :  { %v1242_v7 = vpop.f32.mrb[13].mxu1  ;;  %3210 = vmatmul.mubr.bf16.gmra.mrb[24].mxu0 %v1921_v39 }
 0x25a   :  { %vm1269_vm2 = vcmp.lt.f32.partialorder %v1242_v7, %v5106_v29  ;;  %v5224_v22 = vpop.f32.mrb[14].mxu1 }
 0x25b   :  { %v1245_v59 = vpop.f32.mrb[15].mxu1  ;;  %v5228_v51 = vsel %vm1269_vm2, 1.0, %v5840_v38 }
 0x25c   :  { %vm1270_vm4 = vcmp.lt.f32.partialorder %v1245_v59, %v5106_v29 }
 0x25d   :  { %v5231_v12 = vsel %vm1270_vm4, 1.0, %v5840_v38 }
 0x26f   :  { %v1819_v6 = vpop.permute.xlu1 %1818  ;;  %v1824_v5 = vpop.permute.xlu0 %1823 }
 0x270   :  { %vm1848_vm5 = vcmp.gt.f32.partialorder %v5092_v8, %v1819_v6  ;;  %vm1849_vm6 = vcmp.gt.f32.partialorder %v5092_v8, %v1824_v5  ;;  %vm1904_vm7 = vcmp.eq.f32.partialorder %v5092_v8, %v1819_v6  ;;  %vm1905_vm8 = vcmp.eq.f32.partialorder %v5092_v8, %v1824_v5 }
 0x271   :  { %v3005_v17 = vsel %vm1848_vm5, 1.0, %v5840_v38  ;;  %v3006_v15 = vsel %vm1849_vm6, 1.0, %v5840_v38  ;;  %vm1914_vm9 = vmpackc.low %vm1905_vm8, %vm1904_vm7 }
 0x272   :  { %v1890_v2 = vpack.c.bf16 %v3006_v15, %v3005_v17 }
 0x273   :  { %v1829_v61 = vpop.permute.xlu1 %1828  ;;  %v1834_v39 = vpop.permute.xlu0 %1833 }
 0x274   :  { %vm1850_vm10 = vcmp.gt.f32.partialorder %v5092_v8, %v1829_v61  ;;  %vm1906_vm11 = vcmp.eq.f32.partialorder %v5092_v8, %v1829_v61  ;;  %vm1851_vm12 = vcmp.gt.f32.partialorder %v5092_v8, %v1834_v39  ;;  %vm1907_vm3 = vcmp.eq.f32.partialorder %v5092_v8, %v1834_v39 }
 0x275   :  { %v3007_v7 = vsel %vm1850_vm10, 1.0, %v5840_v38  ;;  %v3008_v59 = vsel %vm1851_vm12, 1.0, %v5840_v38  ;;  %v1922_v6 = vsel %vm1914_vm9, %v5934_v26, %v1890_v2  ;;  %vm1915_vm13 = vmpackc.low %vm1907_vm3, %vm1906_vm11  ;;  %v5944_v2 = vsub.s32 0, %v4216_v34 }
 0x276   :  { %v1891_v4 = vpack.c.bf16 %v3008_v59, %v3007_v7  ;;  %3213 = vmatprep.mubr.bf16.mxu0 %v1922_v6 }
 0x278   :  { %v1923_v5 = vsel %vm1915_vm13, %v5935_v37, %v1891_v4 }
 0x279   :  { %3214 = vmatmul.mubr.bf16.gmra.mrb[28].mxu0 %v1923_v5 }
 0x280   :  { %v3235_v17 = vpop.f32.mrb[16].mxu1 }
 0x281   :  { %v2627_v15 = vpop.f32.mrb[17].mxu1 }
 0x282   :  { %v3236_v32 = vpop.f32.mrb[18].mxu1 }
 0x283   :  { %v2630_v61 = vpop.f32.mrb[19].mxu1 }
 0x2a0   :  { %v3239_v28 = vpop.f32.mrb[20].mxu1  ;;  %v2208_v39 = vpop.xlane.xlu0 %2207 }
 0x2a1   :  { %v2643_v3 = vpop.f32.mrb[21].mxu1  ;;  %v2211_v49 = vcvt.f32.s32 %v2208_v39 }
 0x2a2   :  { %v3240_v41 = vpop.f32.mrb[22].mxu1 }
 0x2a3   :  { %v2646_v8 = vpop.f32.mrb[23].mxu1 }
 0x2a5   :  { %v2210_v18 = vpop.xlane.xlu1 %2209 }
 0x2a6   :  { %v2212_v40 = vcvt.f32.s32 %v2210_v18 }
 0x2a8   :  { %v2213_v44 = vshll.u32 %v2212_v40, 16 }
 0x2aa   :  { %v5249_v26 = vadd.s32 %v2213_v44, %v2211_v49 }
 0x2ac   :  { %vm2418_vm14 = vcmp.lt.s32.totalorder %v5057_v57, %v5249_v26 }
 0x2ad   :  { %v5255_v37 = vsel %vm2418_vm14, %v5057_v57, %v5249_v26 }
 0x2ae   :  { %v2420_v4 = vcvt.s32.f32 %v5255_v37 }
 0x2b0   :  { %v2693_v7 = vrot.slane %v2420_v4, %v5944_v2 }
 0x2b2   :  { %vm2696_vm15 = vcmp.lt.f32.partialorder %v3235_v17, %v2693_v7  ;;  %vm2694_vm0 = vcmp.lt.f32.partialorder %v2627_v15, %v2693_v7  ;;  %vm2695_vm1 = vcmp.lt.f32.partialorder %v2630_v61, %v2693_v7  ;;  %vm2697_vm2 = vcmp.lt.f32.partialorder %v3236_v32, %v2693_v7 }
 0x2b3   :  { %v3043_v18 = vsel %vm2696_vm15, 1.0, %v5840_v38  ;;  %v3041_v44 = vsel %vm2694_vm0, 1.0, %v5840_v38  ;;  %v3042_v49 = vsel %vm2695_vm1, 1.0, %v5840_v38  ;;  %vm2698_vm4 = vcmp.lt.f32.partialorder %v2643_v3, %v2693_v7 }
 0x2b4   :  { %2762 = vrot.lane.b32.xlu1 %v3043_v18, %s3488_s29  ;;  %v3273_v40 = vpack.i.bf16 %v3042_v49, %v3041_v44  ;;  %v3044_v59 = vsel %vm2697_vm2, 1.0, %v5840_v38  ;;  %vm2699_vm5 = vcmp.lt.f32.partialorder %v2646_v8, %v2693_v7  ;;  %v3045_v6 = vsel %vm2698_vm4, 1.0, %v5840_v38 }
 0x2b5   :  { %vm2700_vm6 = vcmp.lt.f32.partialorder %v3239_v28, %v2693_v7  ;;  %v3046_v5 = vsel %vm2699_vm5, 1.0, %v5840_v38  ;;  %vm2701_vm7 = vcmp.lt.f32.partialorder %v3240_v41, %v2693_v7 }
 0x2b6   :  { %3274 = vrot.lane.b32.xlu0 %v3273_v40, %s3488_s29  ;;  %v3047_v32 = vsel %vm2700_vm6, 1.0, %v5840_v38  ;;  %v3048_v3 = vsel %vm2701_vm7, 1.0, %v5840_v38 }
 0x2b8   :  { %2764 = vrot.lane.b32.xlu1 %v3044_v59, %s3488_s29 }
 0x2ba   :  { %2766 = vrot.lane.b32.xlu0 %v3045_v6, %s3488_s29 }
 0x2bc   :  { %2768 = vrot.lane.b32.xlu1 %v3046_v5, %s3488_s29 }
 0x2be   :  { %2770 = vrot.lane.b32.xlu0 %v3047_v32, %s3488_s29 }
 0x2c0   :  { %2772 = vrot.lane.b32.xlu1 %v3048_v3, %s3488_s29  ;;  %v3243_v17 = vpop.f32.mrb[24].mxu1 }
 0x2c1   :  { %v2659_v15 = vpop.f32.mrb[25].mxu1  ;;  %vm2704_vm9 = vcmp.lt.f32.partialorder %v3243_v17, %v2693_v7 }
 0x2c2   :  { %vm2702_vm8 = vcmp.lt.f32.partialorder %v2659_v15, %v2693_v7  ;;  %v3244_v61 = vpop.f32.mrb[26].mxu1  ;;  %v3051_v39 = vsel %vm2704_vm9, 1.0, %v5840_v38 }
 0x2c3   :  { %v3049_v8 = vsel %vm2702_vm8, 1.0, %v5840_v38  ;;  %v2662_v28 = vpop.f32.mrb[27].mxu1  ;;  %vm2705_vm11 = vcmp.lt.f32.partialorder %v3244_v61, %v2693_v7 }
 0x2c4   :  { %vm2703_vm10 = vcmp.lt.f32.partialorder %v2662_v28, %v2693_v7  ;;  %2774 = vrot.lane.b32.xlu0 %v3049_v8, %s3488_s29  ;;  %v3052_v4 = vsel %vm2705_vm11, 1.0, %v5840_v38  ;;  %v1441_v8 = vpop.xlane.xlu0 %1440  ;;  %vm2822_vm11 = vcmask 48168  }
 0x2c5   :  { %v3050_v41 = vsel %vm2703_vm10, 1.0, %v5840_v38 }
 0x2c6   :  { %2776 = vrot.lane.b32.xlu1 %v3050_v41, %s3488_s29 }
 0x2c8   :  { %2778 = vrot.lane.b32.xlu0 %v3051_v39, %s3488_s29  ;;  %v1443_v39 = vcvt.f32.s32 %v1441_v8 }
 0x2ca   :  { %2780 = vrot.lane.b32.xlu1 %v3052_v4, %s3488_s29 }
 0x2d1   :  { %v3247_v2 = vpop.f32.mrb[28].mxu1 }
 0x2d2   :  { %v2675_v18 = vpop.f32.mrb[29].mxu1  ;;  %vm2708_vm3 = vcmp.lt.f32.partialorder %v3247_v2, %v2693_v7  ;;  %v1439_v2 = vpop.xlane.xlu1 %1438 }
 0x2d3   :  { %vm2706_vm12 = vcmp.lt.f32.partialorder %v2675_v18, %v2693_v7  ;;  %v3248_v44 = vpop.f32.mrb[30].mxu1  ;;  %v3055_v6 = vsel %vm2708_vm3, 1.0, %v5840_v38 }
 0x2d4   :  { %v3053_v49 = vsel %vm2706_vm12, 1.0, %v5840_v38  ;;  %v2678_v40 = vpop.f32.mrb[31].mxu1  ;;  %vm2709_vm14 = vcmp.lt.f32.partialorder %v3248_v44, %v2693_v7 }
 0x2d5   :  { %vm2707_vm13 = vcmp.lt.f32.partialorder %v2678_v40, %v2693_v7  ;;  %2782 = vrot.lane.b32.xlu0 %v3053_v49, %s3488_s29  ;;  %v3056_v5 = vsel %vm2709_vm14, 1.0, %v5840_v38  ;;  %v1444_v49 = vshll.u32 %v1443_v39, 16  ;;  %v1442_v40 = vcvt.f32.s32 %v1439_v2 }
 0x2d6   :  { %v3054_v59 = vsel %vm2707_vm13, 1.0, %v5840_v38  ;;  %v2023_v2 = vsub.s32 2, %v4216_v34 }
 0x2d7   :  { %2784 = vrot.lane.b32.xlu1 %v3054_v59, %s3488_s29 }
 0x2d9   :  { %2786 = vrot.lane.b32.xlu0 %v3055_v6, %s3488_s29  ;;  %v5315_v6 = vadd.s32 %v1444_v49, %v1442_v40 }
 0x2db   :  { %2788 = vrot.lane.b32.xlu1 %v3056_v5, %s3488_s29  ;;  %5945 = vst [vmem:[#allocation21_spill] sm:$0xff] %v5315_v6  ;;  %vm1749_vm1 = vcmp.lt.s32.totalorder %v5057_v57, %v5315_v6 }
 0x2dc   :  { %v5327_v8 = vsel %vm1749_vm1, %v5057_v57, %v5315_v6 }
 0x2dd   :  { %v5291_v32 = vpop.f32.mrb[0].mxu0  ;;  %v1751_v49 = vcvt.s32.f32 %v5327_v8 }
 0x2de   :  { %v647_v3 = vpop.f32.mrb[1].mxu0 }
 0x2df   :  { %vm714_vm15 = vcmp.lt.f32.partialorder %v647_v3, %v5106_v29  ;;  %v5294_v17 = vpop.f32.mrb[2].mxu0  ;;  %v5339_v45 = vrot.slane %v1751_v49, %v2023_v2 }
 0x2e0   :  { %v650_v15 = vpop.f32.mrb[3].mxu0  ;;  %v5298_v7 = vsel %vm714_vm15, 1.0, %v5840_v38  ;;  %vm2860_vm15 = vcmp.gt.s32.totalorder %v5255_v37, 1 }
 0x2e1   :  { %vm715_vm0 = vcmp.lt.f32.partialorder %v650_v15, %v5106_v29 }
 0x2e2   :  { %v5301_v61 = vsel %vm715_vm0, 1.0, %v5840_v38 }
 0x2e5   :  { %v5305_v41 = vpop.f32.mrb[4].mxu0 }
 0x2e6   :  { %v5307_v4 = vpop.f32.mrb[5].mxu0 }
 0x2e7   :  { %v5309_v18 = vpop.f32.mrb[6].mxu0 }
 0x2e8   :  { %v5311_v44 = vpop.f32.mrb[7].mxu0 }
 0x2ed   :  { %v5313_v59 = vpop.f32.mrb[8].mxu0 }
 0x2ee   :  { %v5317_v5 = vpop.f32.mrb[9].mxu0 }
 0x2ef   :  { %v5319_v3 = vpop.f32.mrb[10].mxu0 }
 0x2f0   :  { %v5321_v15 = vpop.f32.mrb[11].mxu0 }
 0x2f5   :  { %v5329_v28 = vpop.f32.mrb[12].mxu0 }
 0x2f6   :  { %v5331_v39 = vpop.f32.mrb[13].mxu0 }
 0x2f7   :  { %v5335_v40 = vpop.f32.mrb[14].mxu0 }
 0x2f8   :  { %v5337_v36 = vpop.f32.mrb[15].mxu0 }
 0x2fe   :  { %v3203_v50 = vpop.f32.mrb[16].mxu0 }
 0x2ff   :  { %vm2027_vm2 = vcmp.lt.f32.partialorder %v3203_v50, %v5339_v45  ;;  %v1958_v55 = vpop.f32.mrb[17].mxu0 }
 0x300   :  { %vm2025_vm4 = vcmp.lt.f32.partialorder %v1958_v55, %v5339_v45  ;;  %v3204_v57 = vpop.f32.mrb[18].mxu0  ;;  %v3011_v34 = vsel %vm2027_vm2, 1.0, %v5840_v38  ;;  %v5946_v55 = vpack.i.bf16 %v5131_v42, %v5125_v47 }
 0x301   :  { %vm2028_vm5 = vcmp.lt.f32.partialorder %v3204_v57, %v5339_v45  ;;  %v1961_v24 = vpop.f32.mrb[19].mxu0  ;;  %v3009_v6 = vsel %vm2025_vm4, 1.0, %v5840_v38  ;;  %vm1272_vm4 = vcmp.lt.f32.partialorder %v5224_v22, %v5106_v29 }
 0x302   :  { %v3012_v63 = vsel %vm2028_vm5, 1.0, %v5840_v38  ;;  %vm2026_vm6 = vcmp.lt.f32.partialorder %v1961_v24, %v5339_v45  ;;  %v5947_v24 = vpack.i.bf16 %v5137_v62, %v5128_v43  ;;  %v5949_v62 = vpack.i.bf16 %v5167_v25, %v5157_v56 }
 0x303   :  { %v3283_v2 = vpack.i.bf16 %v3012_v63, %v3011_v34  ;;  %v3010_v49 = vsel %vm2026_vm6, 1.0, %v5840_v38  ;;  %v5948_v63 = vpack.i.bf16 %v5179_v9, %v5161_v19  ;;  %v5951_v56 = vpack.i.bf16 %v5194_v60, %v5191_v30 }
 0x304   :  { %v3278_v31 = vpack.i.bf16 %v3010_v49, %v3009_v6  ;;  %v5952_v25 = vpack.i.bf16 %v5231_v12, %v5228_v51  ;;  %vm1271_vm6 = vcmp.lt.f32.partialorder %v5220_v21, %v5106_v29 }
 0x305   :  { %3284 = vrot.lane.b32.xlu1 %v3283_v2, %s3497_s0  ;;  %v5950_v2 = vpack.i.bf16 %v5203_v14, %v5198_v58  ;;  %v5954_v14 = vld [vmem:[#allocation66_spill] sm:$0xff] }
 0x306   :  { %3279 = vrot.lane.b32.xlu0 %v3278_v31, %s3497_s0 }
 0x309   :  { %3294 = vrot.lane.b32.xlu1 %v5946_v55, %s3487_s26 }
 0x30a   :  { %3289 = vrot.lane.b32.xlu0 %v5947_v24, %s3487_s26 }
 0x30d   :  { %v3207_v50 = vpop.f32.mrb[20].mxu0  ;;  %3304 = vrot.lane.b32.xlu1 %v5948_v63, %s3487_s26 }
 0x30e   :  { %vm2031_vm7 = vcmp.lt.f32.partialorder %v3207_v50, %v5339_v45  ;;  %v1974_v6 = vpop.f32.mrb[21].mxu0 }
 0x30f   :  { %vm2029_vm8 = vcmp.lt.f32.partialorder %v1974_v6, %v5339_v45  ;;  %v3208_v31 = vpop.f32.mrb[22].mxu0  ;;  %v3015_v42 = vsel %vm2031_vm7, 1.0, %v5840_v38  ;;  %v5953_v6 = vld [vmem:[#allocation69_spill] sm:$0xff]  ;;  %vm717_vm7 = vcmp.lt.f32.partialorder %v5294_v17, %v5106_v29 }
 0x310   :  { %vm2032_vm9 = vcmp.lt.f32.partialorder %v3208_v31, %v5339_v45  ;;  %v1977_v47 = vpop.f32.mrb[23].mxu0  ;;  %v3013_v19 = vsel %vm2029_vm8, 1.0, %v5840_v38  ;;  %vm719_vm8 = vcmp.lt.f32.partialorder %v5311_v44, %v5106_v29 }
 0x311   :  { %v3016_v43 = vsel %vm2032_vm9, 1.0, %v5840_v38  ;;  %vm2030_vm10 = vcmp.lt.f32.partialorder %v1977_v47, %v5339_v45  ;;  %3314 = vrot.lane.b32.xlu1 %v5949_v62, %s3487_s26  ;;  %v5955_v47 = vld [vmem:[#allocation67_spill] sm:$0xff]  ;;  %vm2863_vm9 = vcmp.eq.s32.totalorder %v5249_v26, 0 }
 0x312   :  { %v3308_v9 = vpack.i.bf16 %v3016_v43, %v3015_v42  ;;  %v3014_v57 = vsel %vm2030_vm10, 1.0, %v5840_v38  ;;  %v5956_v43 = vld [vmem:[#allocation68_spill] sm:$0xff]  ;;  %vm721_vm10 = vcmp.lt.f32.partialorder %v5309_v18, %v5106_v29 }
 0x313   :  { %v3298_v34 = vpack.i.bf16 %v3014_v57, %v3013_v19 }
 0x315   :  { %3299 = vrot.lane.b32.xlu0 %v3298_v34, %s3497_s0  ;;  %3324 = vrot.lane.b32.xlu1 %v5950_v2, %s3487_s26 }
 0x319   :  { %3309 = vrot.lane.b32.xlu0 %v3308_v9, %s3497_s0  ;;  %3334 = vrot.lane.b32.xlu1 %v5951_v56, %s3487_s26 }
 0x31d   :  { %3339 = vrot.lane.b32.xlu1 %v5952_v25, %s3487_s26  ;;  %v5957_v25 = vld [vmem:[#allocation71_spill] sm:$0xff] }
 0x326   :  { %v2763_v49 = vpop.permute.xlu1 %2762 }
 0x327   :  { %v2808_v58 = vmul.f32 %v2763_v49, %v5953_v6 }
 0x328   :  { %v3275_v55 = vpop.permute.xlu0 %3274 }
 0x329   :  { %v3277_v24 = vunpack.i.h.bf16 %v3275_v55  ;;  %v3276_v50 = vunpack.i.l.bf16 %v3275_v55  ;;  %v2826_v2 = vsel %vm2822_vm11, %v2808_v58, 0.0 }
 0x32a   :  { %v2765_v63 = vpop.permute.xlu1 %2764 }
 0x32b   :  { %v2807_v31 = vmul.f32 %v3277_v24, %v5954_v14  ;;  %v2806_v42 = vmul.f32 %v3276_v50, %v5955_v47  ;;  %v2809_v62 = vmul.f32 %v2765_v63, %v5956_v43  ;;  %v5958_v14 = vld [vmem:[#allocation70_spill] sm:$0xff] }
 0x32c   :  { %v2767_v30 = vpop.permute.xlu0 %2766  ;;  %v3211_v60 = vpop.f32.mrb[24].mxu0 }
 0x32d   :  { %v2824_v19 = vsel %vm2822_vm11, %v2807_v31, 0.0  ;;  %v2823_v51 = vsel %vm2822_vm11, %v2806_v42, 0.0  ;;  %v1990_v12 = vpop.f32.mrb[25].mxu0  ;;  %vm2035_vm12 = vcmp.lt.f32.partialorder %v3211_v60, %v5339_v45  ;;  %v2828_v56 = vsel %vm2822_vm11, %v2809_v62, 0.0 }
 0x32e   :  { %v2825_v9 = vadd.f32 %v2824_v19, %v2823_v51  ;;  %vm2033_vm3 = vcmp.lt.f32.partialorder %v1990_v12, %v5339_v45  ;;  %v2769_v57 = vpop.permute.xlu1 %2768  ;;  %v3212_v34 = vpop.f32.mrb[26].mxu0  ;;  %v2810_v49 = vmul.f32 %v2767_v30, %v5957_v25  ;;  %v3019_v50 = vsel %vm2035_vm12, 1.0, %v5840_v38  ;;  %v5959_v19 = vld [vmem:[#allocation73_spill] sm:$0xff] }
 0x32f   :  { %v1993_v55 = vpop.f32.mrb[27].mxu0  ;;  %vm2036_vm13 = vcmp.lt.f32.partialorder %v3212_v34, %v5339_v45  ;;  %v3017_v6 = vsel %vm2033_vm3, 1.0, %v5840_v38  ;;  %v2811_v31 = vmul.f32 %v2769_v57, %v5958_v14  ;;  %v5960_v34 = vld [vmem:[#allocation72_spill] sm:$0xff]  ;;  %vm716_vm12 = vcmp.lt.f32.partialorder %v5291_v32, %v5106_v29 }
 0x330   :  { %v2827_v24 = vadd.f32 %v2826_v2, %v2825_v9  ;;  %vm2034_vm14 = vcmp.lt.f32.partialorder %v1993_v55, %v5339_v45  ;;  %v2771_v63 = vpop.permute.xlu0 %2770  ;;  %v3020_v47 = vsel %vm2036_vm13, 1.0, %v5840_v38  ;;  %v2830_v60 = vsel %vm2822_vm11, %v2810_v49, 0.0 }
 0x331   :  { %v3018_v58 = vsel %vm2034_vm14, 1.0, %v5840_v38  ;;  %v3328_v43 = vpack.i.bf16 %v3020_v47, %v3019_v50  ;;  %v2812_v51 = vmul.f32 %v2771_v63, %v5959_v19  ;;  %v2832_v9 = vsel %vm2822_vm11, %v2811_v31, 0.0  ;;  %v5962_v47 = vld [vmem:[#allocation64_spill] sm:$0xff] }
 0x332   :  { %v2829_v42 = vadd.f32 %v2828_v56, %v2827_v24  ;;  %v3318_v62 = vpack.i.bf16 %v3018_v58, %v3017_v6  ;;  %v2773_v30 = vpop.permute.xlu1 %2772  ;;  %v5961_v56 = vld [vmem:[#allocation76_spill] sm:$0xff]  ;;  %v2947_v18 = vsel %vm716_vm12, 1.0, %v5840_v38  ;;  %vm725_vm3 = vcmp.lt.f32.partialorder %v5319_v3, %v5106_v29 }
 0x333   :  { %v2813_v2 = vmul.f32 %v2773_v30, %v5960_v34  ;;  %v2834_v55 = vsel %vm2822_vm11, %v2812_v51, 0.0  ;;  %v5963_v30 = vld [vmem:[#allocation78_spill] sm:$0xff]  ;;  %vm718_vm13 = vcmp.lt.f32.partialorder %v5307_v4, %v5106_v29  ;;  %v2956_v44 = vsel %vm725_vm3, 1.0, %v5840_v38 }
 0x334   :  { %v2831_v12 = vadd.f32 %v2830_v60, %v2829_v42  ;;  %3319 = vrot.lane.b32.xlu0 %v3318_v62, %s3497_s0  ;;  %v2949_v32 = vsel %vm718_vm13, 1.0, %v5840_v38  ;;  %vm727_vm14 = vcmp.lt.f32.partialorder %v5337_v36, %v5106_v29  ;;  %vm2894_vm3 = vcmask 0  }
 0x335   :  { %v2836_v49 = vsel %vm2822_vm11, %v2813_v2, 0.0  ;;  %v2958_v3 = vsel %vm727_vm14, 1.0, %v5840_v38 }
 0x336   :  { %v2833_v57 = vadd.f32 %v2832_v9, %v2831_v12  ;;  %v2775_v25 = vpop.permute.xlu0 %2774  ;;  %v5964_v9 = vld [vmem:[#allocation65_spill] sm:$0xff] }
 0x337   :  { %v2814_v24 = vmul.f32 %v2775_v25, %v5961_v56  ;;  %v5965_v25 = vld [vmem:[#allocation81_spill] sm:$0xff] }
 0x338   :  { %v2835_v14 = vadd.f32 %v2834_v55, %v2833_v57  ;;  %3329 = vrot.lane.b32.xlu0 %v3328_v43, %s3497_s0  ;;  %v2777_v50 = vpop.permute.xlu1 %2776 }
 0x339   :  { %v2838_v6 = vsel %vm2822_vm11, %v2814_v24, 0.0  ;;  %v2815_v58 = vmul.f32 %v2777_v50, %v5962_v47 }
 0x33a   :  { %v2837_v63 = vadd.f32 %v2836_v49, %v2835_v14  ;;  %v2779_v42 = vpop.permute.xlu0 %2778  ;;  %v5966_v49 = vld [vmem:[#allocation82_spill] sm:$0xff] }
 0x33b   :  { %v2840_v62 = vsel %vm2822_vm11, %v2815_v58, 0.0  ;;  %v2816_v60 = vmul.f32 %v2779_v42, %v5963_v30  ;;  %v5967_v58 = vld [vmem:[#allocation26_spill] sm:$0xff] }
 0x33c   :  { %v2839_v31 = vadd.f32 %v2838_v6, %v2837_v63  ;;  %v2781_v51 = vpop.permute.xlu1 %2780 }
 0x33d   :  { %v2842_v12 = vsel %vm2822_vm11, %v2816_v60, 0.0  ;;  %v2817_v43 = vmul.f32 %v2781_v51, %v5964_v9 }
 0x33e   :  { %v2841_v19 = vadd.f32 %v2840_v62, %v2839_v31  ;;  %v2861_v62 = vsel %vm2860_vm15, %v5255_v37, 1  ;;  %vm720_vm15 = vcmp.lt.f32.partialorder %v5305_v41, %v5106_v29 }
 0x33f   :  { %v2844_v57 = vsel %vm2822_vm11, %v2817_v43, 0.0  ;;  %v2951_v4 = vsel %vm720_vm15, 1.0, %v5840_v38 }
 0x340   :  { %v2843_v34 = vadd.f32 %v2842_v12, %v2841_v19  ;;  %v5968_v12 = vld [vmem:[#allocation28_spill] sm:$0xff] }
 0x342   :  { %v2845_v14 = vadd.f32 %v2844_v57, %v2843_v34  ;;  %v2862_v57 = vcvt.s32.f32 %v2861_v62 }
 0x344   :  { %3422 = vrcp.f32 %v2862_v57  ;;  %v5971_v57 = vld [vmem:[#allocation49_spill] sm:$0xff] }
 0x347   :  { %v2783_v2 = vpop.permute.xlu0 %2782 }
 0x348   :  { %v2818_v55 = vmul.f32 %v2783_v2, %v5965_v25 }
 0x349   :  { %v2785_v56 = vpop.permute.xlu1 %2784 }
 0x34a   :  { %v2846_v24 = vsel %vm2822_vm11, %v2818_v55, 0.0  ;;  %v2819_v50 = vmul.f32 %v2785_v56, %v5966_v49 }
 0x34b   :  { %v2847_v63 = vadd.f32 %v2846_v24, %v2845_v14  ;;  %v2787_v6 = vpop.permute.xlu0 %2786 }
 0x34c   :  { %v2848_v47 = vsel %vm2822_vm11, %v2819_v50, 0.0  ;;  %v2820_v31 = vmul.f32 %v2787_v6, %v5967_v58  ;;  %v3215_v42 = vpop.f32.mrb[28].mxu0  ;;  %v2992_v50 = vsel %vm1272_vm4, 1.0, %v5840_v38  ;;  %v2991_v58 = vsel %vm1271_vm6, 1.0, %v5840_v38 }
 0x34d   :  { %v2849_v30 = vadd.f32 %v2848_v47, %v2847_v63  ;;  %v2789_v60 = vpop.permute.xlu1 %2788  ;;  %v2006_v19 = vpop.f32.mrb[29].mxu0  ;;  %vm2039_vm5 = vcmp.lt.f32.partialorder %v3215_v42, %v5339_v45  ;;  %v2948_v42 = vsel %vm717_vm7, 1.0, %v5840_v38  ;;  %vm726_vm4 = vcmp.lt.f32.partialorder %v5331_v39, %v5106_v29  ;;  %v5970_v39 = vld [vmem:[#allocation45_spill] sm:$0xff] }
 0x34e   :  { %v2850_v51 = vsel %vm2822_vm11, %v2820_v31, 0.0  ;;  %v2821_v9 = vmul.f32 %v2789_v60, %v5968_v12  ;;  %vm2037_vm0 = vcmp.lt.f32.partialorder %v2006_v19, %v5339_v45  ;;  %v3216_v43 = vpop.f32.mrb[30].mxu0  ;;  %v3023_v6 = vsel %vm2039_vm5, 1.0, %v5840_v38  ;;  %v3423_v17 = vpop.eup %3422 }
 0x34f   :  { %v2851_v34 = vadd.f32 %v2850_v51, %v2849_v30  ;;  %vm2040_vm1 = vcmp.lt.f32.partialorder %v3216_v43, %v5339_v45  ;;  %v2009_v2 = vpop.f32.mrb[31].mxu0  ;;  %v3021_v14 = vsel %vm2037_vm0, 1.0, %v5840_v38  ;;  %v2952_v60 = vsel %vm721_vm10, 1.0, %v5840_v38 }
 0x350   :  { %v2852_v25 = vsel %vm2822_vm11, %v2821_v9, 0.0  ;;  %v3024_v55 = vsel %vm2040_vm1, 1.0, %v5840_v38  ;;  %vm2038_vm2 = vcmp.lt.f32.partialorder %v2009_v2, %v5339_v45  ;;  %v5969_v45 = vpack.i.bf16 %v5301_v61, %v5298_v7 }
 0x351   :  { %v2853_v37 = vadd.f32 %v2852_v25, %v2851_v34  ;;  %v3022_v56 = vsel %vm2038_vm2, 1.0, %v5840_v38  ;;  %2119 = vrot.lane.b32.xlu1 %v3024_v55, %s3497_s0  ;;  %v2950_v7 = vsel %vm719_vm8, 1.0, %v5840_v38  ;;  %vm723_vm11 = vcmp.lt.f32.partialorder %v5321_v15, %v5106_v29 }
 0x352   :  { %v3343_v24 = vpack.i.bf16 %v3022_v56, %v3021_v14  ;;  %v2954_v26 = vsel %vm723_vm11, 1.0, %v5840_v38  ;;  %vm729_vm0 = vcmp.lt.f32.partialorder %v5335_v40, %v5106_v29  ;;  %vm722_vm1 = vcmp.lt.f32.partialorder %v5317_v5, %v5106_v29 }
 0x353   :  { %v2854_v49 = vrot.slane %v2853_v37, 4  ;;  %v2960_v36 = vsel %vm729_vm0, 1.0, %v5840_v38  ;;  %v2953_v41 = vsel %vm722_vm1, 1.0, %v5840_v38  ;;  %vm724_vm2 = vcmp.lt.f32.partialorder %v5313_v59, %v5106_v29 }
 0x354   :  { %3344 = vrot.lane.b32.xlu0 %v3343_v24, %s3497_s0  ;;  %v2955_v15 = vsel %vm724_vm2, 1.0, %v5840_v38  ;;  %v2957_v5 = vsel %vm726_vm4, 1.0, %v5840_v38  ;;  %vm728_vm5 = vcmp.lt.f32.partialorder %v5329_v28, %v5106_v29  ;;  %vm1385_vm6 = vcmask 39968  }
 0x355   :  { %v2855_v63 = vadd.f32 %v2854_v49, %v2853_v37  ;;  %1351 = vrot.lane.b32.xlu1 %v2992_v50, %s3487_s26  ;;  %v2959_v40 = vsel %vm728_vm5, 1.0, %v5840_v38  ;;  %vm2153_vm7 = vcmask 31768   ;;  %v5972_v49 = vld [vmem:[#allocation50_spill] sm:$0xff]  ;;  %vm2191_vm8 = vcmp.gt.s32.totalorder %v5327_v8, 1 }
 0x356   :  { %vm842_vm10 = vcmask 15368  }
 0x357   :  { %v2856_v22 = vrot.slane %v2855_v63, 2 }
 0x358   :  { %2117 = vrot.lane.b32.xlu0 %v3023_v6, %s3497_s0 }
 0x359   :  { %v2857_v47 = vadd.f32 %v2856_v22, %v2855_v63  ;;  %3349 = vrot.lane.b32.xlu1 %v5969_v45, %s3490_s6 }
 0x35b   :  { %v2858_v31 = vrot.slane %v2857_v47, 1 }
 0x35c   :  { %1349 = vrot.lane.b32.xlu0 %v2991_v58, %s3487_s26  ;;  %s5586_s26 = sld [smem:[#allocation3 + $0x2]] }
 0x35d   :  { %v2859_v21 = vadd.f32 %v2858_v31, %v2857_v47  ;;  %784 = vrot.lane.b32.xlu1 %v2948_v42, %s3490_s6  ;;  %v5973_v31 = vld [vmem:[#allocation51_spill] sm:$0xff] }
 0x35f   :  { %v2865_v62 = vmul.f32 %v3423_v17, %v2859_v21 }
 0x361   :  { %788 = vrot.lane.b32.xlu1 %v2950_v7, %s3490_s6  ;;  %v2866_v61 = vsel %vm2863_vm9, 0.0, %v2865_v62  ;;  %vm880_vm9 = vcmp.gt.s32.totalorder %v5081_v33, 1 }
 0x362   :  { %v2875_v30 = vmul.f32 10.0, %v2866_v61 }
 0x364   :  { %v2877_v19 = vrot.slane %v2875_v30, 6 }
 0x365   :  { %792 = vrot.lane.b32.xlu1 %v2952_v60, %s3490_s6 }
 0x366   :  { %2878 = vrot.lane.b32.xlu0 %v2877_v19, %s3492_s7  ;;  %v5974_v19 = vld [vmem:[#allocation52_spill] sm:$0xff] }
 0x369   :  { %796 = vrot.lane.b32.xlu1 %v2954_v26, %s3490_s6 }
 0x36a   :  { %782 = vrot.lane.b32.xlu0 %v2947_v18, %s3490_s6 }
 0x36d   :  { %800 = vrot.lane.b32.xlu1 %v2956_v44, %s3490_s6 }
 0x36e   :  { %786 = vrot.lane.b32.xlu0 %v2949_v32, %s3490_s6 }
 0x371   :  { %804 = vrot.lane.b32.xlu1 %v2958_v3, %s3490_s6 }
 0x372   :  { %790 = vrot.lane.b32.xlu0 %v2951_v4, %s3490_s6 }
 0x375   :  { %808 = vrot.lane.b32.xlu1 %v2960_v36, %s3490_s6 }
 0x376   :  { %794 = vrot.lane.b32.xlu0 %v2953_v41, %s3490_s6 }
 0x377   :  { %v3285_v51 = vpop.permute.xlu1 %3284 }
 0x378   :  { %v3280_v59 = vpop.permute.xlu0 %3279  ;;  %v3286_v6 = vunpack.i.l.bf16 %v3285_v51  ;;  %v3287_v62 = vunpack.i.h.bf16 %v3285_v51 }
 0x379   :  { %v3282_v55 = vunpack.i.h.bf16 %v3280_v59  ;;  %v3281_v37 = vunpack.i.l.bf16 %v3280_v59 }
 0x37a   :  { %798 = vrot.lane.b32.xlu0 %v2955_v15, %s3490_s6  ;;  %v2140_v32 = vmul.f32 %v3287_v62, %v4865_v54  ;;  %v5975_v15 = vld [vmem:[#allocation53_spill] sm:$0xff] }
 0x37b   :  { %v3295_v34 = vpop.permute.xlu1 %3294  ;;  %v2138_v14 = vmul.f32 %v3282_v55, %v4872_v0  ;;  %v2137_v56 = vmul.f32 %v3281_v37, %v4853_v23  ;;  %v2139_v23 = vmul.f32 %v3286_v6, %v4881_v10 }
 0x37c   :  { %v3290_v12 = vpop.permute.xlu0 %3289  ;;  %v3296_v29 = vunpack.i.l.bf16 %v3295_v34  ;;  %v3297_v24 = vunpack.i.h.bf16 %v3295_v34 }
 0x37d   :  { %v3292_v9 = vunpack.i.h.bf16 %v3290_v12  ;;  %v3291_v43 = vunpack.i.l.bf16 %v3290_v12  ;;  %v2155_v47 = vsel %vm2153_vm7, %v2138_v14, 0.0  ;;  %v2154_v58 = vsel %vm2153_vm7, %v2137_v56, 0.0 }
 0x37e   :  { %802 = vrot.lane.b32.xlu0 %v2957_v5, %s3490_s6  ;;  %v1371_v50 = vmul.f32 %v3296_v29, %v5972_v49  ;;  %v1372_v42 = vmul.f32 %v3297_v24, %v5973_v31  ;;  %v2156_v61 = vadd.f32 %v2155_v47, %v2154_v58  ;;  %v2157_v3 = vsel %vm2153_vm7, %v2139_v23, 0.0 }
 0x37f   :  { %v1370_v2 = vmul.f32 %v3292_v9, %v5970_v39  ;;  %v1369_v25 = vmul.f32 %v3291_v43, %v5971_v57  ;;  %v3305_v22 = vpop.permute.xlu1 %3304  ;;  %v2159_v12 = vsel %vm2153_vm7, %v2140_v32, 0.0 }
 0x380   :  { %v1389_v21 = vsel %vm1385_vm6, %v1371_v50, 0.0  ;;  %v3306_v17 = vunpack.i.l.bf16 %v3305_v22  ;;  %v1391_v30 = vsel %vm1385_vm6, %v1372_v42, 0.0  ;;  %v3307_v60 = vunpack.i.h.bf16 %v3305_v22 }
 0x381   :  { %v1387_v28 = vsel %vm1385_vm6, %v1370_v2, 0.0  ;;  %v1386_v38 = vsel %vm1385_vm6, %v1369_v25, 0.0  ;;  %v2158_v36 = vadd.f32 %v2157_v3, %v2156_v61  ;;  %v5976_v2 = vld [vmem:[#allocation54_spill] sm:$0xff] }
 0x382   :  { %806 = vrot.lane.b32.xlu0 %v2959_v40, %s3490_s6  ;;  %v1388_v63 = vadd.f32 %v1387_v28, %v1386_v38  ;;  %v1373_v26 = vmul.f32 %v3306_v17, %v5974_v19  ;;  %v1374_v5 = vmul.f32 %v3307_v60, %v5975_v15  ;;  %v5977_v38 = vld [vmem:[#allocation55_spill] sm:$0xff] }
 0x383   :  { %v3315_v44 = vpop.permute.xlu1 %3314  ;;  %v2160_v54 = vadd.f32 %v2159_v12, %v2158_v36  ;;  %v5980_v36 = vld [vmem:[#allocation58_spill] sm:$0xff] }
 0x384   :  { %v1390_v0 = vadd.f32 %v1389_v21, %v1388_v63  ;;  %v1393_v10 = vsel %vm1385_vm6, %v1373_v26, 0.0  ;;  %v3316_v40 = vunpack.i.l.bf16 %v3315_v44  ;;  %v3317_v34 = vunpack.i.h.bf16 %v3315_v44 }
 0x385   :  { %v1395_v39 = vsel %vm1385_vm6, %v1374_v5, 0.0 }
 0x386   :  { %v1392_v18 = vadd.f32 %v1391_v30, %v1390_v0  ;;  %v1376_v14 = vmul.f32 %v3317_v34, %v5977_v38 }
 0x387   :  { %v3300_v45 = vpop.permute.xlu0 %3299  ;;  %v3325_v25 = vpop.permute.xlu1 %3324 }
 0x388   :  { %v3301_v7 = vunpack.i.l.bf16 %v3300_v45  ;;  %v3302_v59 = vunpack.i.h.bf16 %v3300_v45  ;;  %v1394_v51 = vadd.f32 %v1393_v10, %v1392_v18  ;;  %v3326_v56 = vunpack.i.l.bf16 %v3325_v25  ;;  %v5978_v45 = vld [vmem:[#allocation56_spill] sm:$0xff] }
 0x389   :  { %v1399_v31 = vsel %vm1385_vm6, %v1376_v14, 0.0 }
 0x38a   :  { %v2141_v4 = vmul.f32 %v3301_v7, %v4897_v27  ;;  %v1375_v27 = vmul.f32 %v3316_v40, %v5976_v2  ;;  %v2142_v57 = vmul.f32 %v3302_v59, %v4900_v16  ;;  %v1396_v55 = vadd.f32 %v1395_v39, %v1394_v51  ;;  %v5979_v7 = vld [vmem:[#allocation57_spill] sm:$0xff]  ;;  %v5981_v51 = vld [vmem:[#allocation59_spill] sm:$0xff] }
 0x38b   :  { %v3310_v41 = vpop.permute.xlu0 %3309  ;;  %v3327_v16 = vunpack.i.h.bf16 %v3325_v25  ;;  %v1377_v58 = vmul.f32 %v3326_v56, %v5978_v45  ;;  %v3335_v0 = vpop.permute.xlu1 %3334 }
 0x38c   :  { %v2161_v9 = vsel %vm2153_vm7, %v2141_v4, 0.0  ;;  %v3311_v43 = vunpack.i.l.bf16 %v3310_v41  ;;  %v1397_v24 = vsel %vm1385_vm6, %v1375_v27, 0.0  ;;  %v2163_v49 = vsel %vm2153_vm7, %v2142_v57, 0.0 }
 0x38d   :  { %v2162_v37 = vadd.f32 %v2161_v9, %v2160_v54  ;;  %v3312_v50 = vunpack.i.h.bf16 %v3310_v41  ;;  %v1398_v22 = vadd.f32 %v1397_v24, %v1396_v55  ;;  %v1378_v61 = vmul.f32 %v3327_v16, %v5979_v7  ;;  %v5982_v55 = vld [vmem:[#allocation61_spill] sm:$0xff] }
 0x38e   :  { %v2143_v28 = vmul.f32 %v3311_v43, %v4905_v1  ;;  %v1401_v30 = vsel %vm1385_vm6, %v1377_v58, 0.0  ;;  %v3336_v19 = vunpack.i.l.bf16 %v3335_v0 }
 0x38f   :  { %v2164_v6 = vadd.f32 %v2163_v49, %v2162_v37  ;;  %v2144_v1 = vmul.f32 %v3312_v50, %v4908_v20  ;;  %v1400_v21 = vadd.f32 %v1399_v31, %v1398_v22  ;;  %v1403_v4 = vsel %vm1385_vm6, %v1378_v61, 0.0  ;;  %v3340_v15 = vpop.permute.xlu1 %3339 }
 0x390   :  { %v2165_v47 = vsel %vm2153_vm7, %v2143_v28, 0.0  ;;  %v1379_v41 = vmul.f32 %v3336_v19, %v5980_v36  ;;  %v3341_v34 = vunpack.i.l.bf16 %v3340_v15  ;;  %v3342_v25 = vunpack.i.h.bf16 %v3340_v15 }
 0x391   :  { %v2166_v17 = vadd.f32 %v2165_v47, %v2164_v6  ;;  %v2167_v60 = vsel %vm2153_vm7, %v2144_v1, 0.0  ;;  %v1402_v44 = vadd.f32 %v1401_v30, %v1400_v21 }
 0x392   :  { %v1405_v43 = vsel %vm1385_vm6, %v1379_v41, 0.0  ;;  %v1381_v37 = vmul.f32 %v3341_v34, %v5982_v55  ;;  %v5989_v55 = vld [vmem:[#allocation34_spill] sm:$0xff] }
 0x393   :  { %v2168_v32 = vadd.f32 %v2167_v60, %v2166_v17  ;;  %v1404_v10 = vadd.f32 %v1403_v4, %v1402_v44  ;;  %v881_v60 = vsel %vm880_vm9, %v5081_v33, 1 }
 0x394   :  { %v1409_v6 = vsel %vm1385_vm6, %v1381_v37, 0.0 }
 0x395   :  { %v1406_v39 = vadd.f32 %v1405_v43, %v1404_v10 }
 0x3a6   :  { %v3320_v29 = vpop.permute.xlu0 %3319 }
 0x3a7   :  { %v3321_v63 = vunpack.i.l.bf16 %v3320_v29  ;;  %v3322_v23 = vunpack.i.h.bf16 %v3320_v29 }
 0x3a9   :  { %v2145_v42 = vmul.f32 %v3321_v63, %v4935_v53  ;;  %v2146_v20 = vmul.f32 %v3322_v23, %v4938_v52  ;;  %v3337_v53 = vunpack.i.h.bf16 %v3335_v0  ;;  %v5983_v63 = vld [vmem:[#allocation60_spill] sm:$0xff] }
 0x3aa   :  { %v3330_v62 = vpop.permute.xlu0 %3329  ;;  %v1382_v22 = vmul.f32 %v3342_v25, %v5983_v63 }
 0x3ab   :  { %v2169_v26 = vsel %vm2153_vm7, %v2145_v42, 0.0  ;;  %v3331_v18 = vunpack.i.l.bf16 %v3330_v62  ;;  %v2171_v40 = vsel %vm2153_vm7, %v2146_v20, 0.0  ;;  %v3332_v59 = vunpack.i.h.bf16 %v3330_v62  ;;  %v5985_v62 = vld [vmem:[#allocation62_spill] sm:$0xff] }
 0x3ac   :  { %v2170_v3 = vadd.f32 %v2169_v26, %v2168_v32  ;;  %v1380_v12 = vmul.f32 %v3337_v53, %v5981_v51  ;;  %v2192_v42 = vsel %vm2191_vm8, %v5327_v8, 1  ;;  %v1411_v0 = vsel %vm1385_vm6, %v1382_v22, 0.0  ;;  %v5988_v51 = vld [vmem:[#allocation32_spill] sm:$0xff] }
 0x3ad   :  { %v2147_v5 = vmul.f32 %v3331_v18, %v4943_v13  ;;  %v2148_v2 = vmul.f32 %v3332_v59, %v4946_v11  ;;  %v2193_v18 = vcvt.s32.f32 %v2192_v42  ;;  %v882_v53 = vcvt.s32.f32 %v881_v60  ;;  %v5995_v60 = vld [vmem:[#allocation39_spill] sm:$0xff] }
 0x3ae   :  { %v2172_v9 = vadd.f32 %v2171_v40, %v2170_v3  ;;  %v1407_v27 = vsel %vm1385_vm6, %v1380_v12, 0.0  ;;  %v5987_v40 = vld [vmem:[#allocation44_spill] sm:$0xff] }
 0x3af   :  { %v2173_v52 = vsel %vm2153_vm7, %v2147_v5, 0.0  ;;  %v1408_v14 = vadd.f32 %v1407_v27, %v1406_v39  ;;  %v2175_v56 = vsel %vm2153_vm7, %v2148_v2, 0.0  ;;  %3424 = vrcp.f32 %v2193_v18  ;;  %v5996_v18 = vld [vmem:[#allocation38_spill] sm:$0xff] }
 0x3b0   :  { %v2174_v57 = vadd.f32 %v2173_v52, %v2172_v9  ;;  %3426 = vrcp.f32 %v882_v53 }
 0x3b1   :  { %v1410_v58 = vadd.f32 %v1409_v6, %v1408_v14 }
 0x3b2   :  { %v2176_v11 = vadd.f32 %v2175_v56, %v2174_v57 }
 0x3b3   :  { %v1412_v26 = vadd.f32 %v1411_v0, %v1410_v58 }
 0x3c3   :  { %v2120_v54 = vpop.permute.xlu1 %2119 }
 0x3c6   :  { %v3345_v13 = vpop.permute.xlu0 %3344 }
 0x3c7   :  { %v3347_v29 = vunpack.i.h.bf16 %v3345_v13  ;;  %v3346_v28 = vunpack.i.l.bf16 %v3345_v13  ;;  %v1352_v38 = vpop.permute.xlu1 %1351 }
 0x3c8   :  { %v1384_v23 = vmul.f32 %v1352_v38, %v5985_v62  ;;  %v5994_v62 = vld [vmem:[#allocation22_spill] sm:$0xff] }
 0x3c9   :  { %v2150_v24 = vmul.f32 %v3347_v29, %v4979_v46  ;;  %v2149_v49 = vmul.f32 %v3346_v28, %v4976_v35  ;;  %v5984_v46 = vld [vmem:[#allocation20_spill] sm:$0xff]  ;;  %v5990_v29 = vld [vmem:[#allocation30_spill] sm:$0xff]  ;;  %vm883_vm12 = vcmp.eq.s32.totalorder %v5994_v62, 0 }
 0x3ca   :  { %v2118_v50 = vpop.permute.xlu0 %2117  ;;  %v2152_v1 = vmul.f32 %v2120_v54, %v5984_v46  ;;  %v1415_v3 = vsel %vm1385_vm6, %v1384_v23, 0.0  ;;  %v5993_v46 = vld [vmem:[#allocation36_spill] sm:$0xff] }
 0x3cb   :  { %v2177_v47 = vsel %vm2153_vm7, %v2149_v49, 0.0  ;;  %v2151_v16 = vmul.f32 %v2118_v50, %v4985_v48  ;;  %v3350_v45 = vpop.permute.xlu1 %3349  ;;  %v2179_v35 = vsel %vm2153_vm7, %v2150_v24, 0.0  ;;  %v5986_v48 = vld [vmem:[#allocation63_spill] sm:$0xff]  ;;  %v3425_v24 = vpop.eup %3424  ;;  %v5991_v50 = vld [vmem:[#allocation13_spill] sm:$0xff] }
 0x3cc   :  { %v2178_v31 = vadd.f32 %v2177_v47, %v2176_v11  ;;  %v2183_v44 = vsel %vm2153_vm7, %v2152_v1, 0.0  ;;  %v3352_v4 = vunpack.i.h.bf16 %v3350_v45  ;;  %v3351_v36 = vunpack.i.l.bf16 %v3350_v45  ;;  %v5592_v45 = vpop.eup %3426 }
 0x3cd   :  { %v2181_v7 = vsel %vm2153_vm7, %v2151_v16, 0.0 }
 0x3ce   :  { %v2180_v21 = vadd.f32 %v2179_v35, %v2178_v31  ;;  %v1350_v17 = vpop.permute.xlu0 %1349  ;;  %v827_v59 = vmul.f32 %v3352_v4, %v5987_v40  ;;  %v826_v12 = vmul.f32 %v3351_v36, %v5988_v51  ;;  %v5992_v31 = vld [vmem:[#allocation21_spill] sm:$0xff] }
 0x3cf   :  { %v1383_v61 = vmul.f32 %v1350_v17, %v5986_v48  ;;  %v785_v30 = vpop.permute.xlu1 %784  ;;  %vm2194_vm11 = vcmp.eq.s32.totalorder %v5992_v31, 0 }
 0x3d0   :  { %v2182_v19 = vadd.f32 %v2181_v7, %v2180_v21  ;;  %v844_v2 = vsel %vm842_vm10, %v827_v59, 0.0  ;;  %v843_v27 = vsel %vm842_vm10, %v826_v12, 0.0  ;;  %v829_v37 = vmul.f32 %v785_v30, %v5989_v55 }
 0x3d1   :  { %v1413_v8 = vsel %vm1385_vm6, %v1383_v61, 0.0  ;;  %v845_v56 = vadd.f32 %v844_v2, %v843_v27  ;;  %v2882_v7 = vstv %s5586_s26 }
 0x3d2   :  { %v2184_v32 = vadd.f32 %v2183_v44, %v2182_v19  ;;  %v1414_v20 = vadd.f32 %v1413_v8, %v1412_v26  ;;  %v848_v58 = vsel %vm842_vm10, %v829_v37, 0.0  ;;  %v6001_v37 = vld [vmem:[#allocation19_spill] sm:$0xff] }
 0x3d3   :  { %v789_v5 = vpop.permute.xlu1 %788 }
 0x3d4   :  { %v2185_v41 = vrot.slane %v2184_v32, 4  ;;  %v1416_v15 = vadd.f32 %v1415_v3, %v1414_v20  ;;  %v831_v63 = vmul.f32 %v789_v5, %v5991_v50  ;;  %v5997_v5 = vld [vmem:[#allocation18_spill] sm:$0xff] }
 0x3d6   :  { %v2186_v10 = vadd.f32 %v2185_v41, %v2184_v32  ;;  %v1417_v33 = vrot.slane %v1416_v15, 4  ;;  %v852_v23 = vsel %vm842_vm10, %v831_v63, 0.0  ;;  %v6003_v63 = vld [vmem:[#allocation84_spill] sm:$0xff] }
 0x3d7   :  { %v793_v54 = vpop.permute.xlu1 %792 }
 0x3d8   :  { %v2187_v9 = vrot.slane %v2186_v10, 2  ;;  %v1418_v43 = vadd.f32 %v1417_v33, %v1416_v15  ;;  %v2879_v34 = vpop.permute.xlu0 %2878  ;;  %v833_v19 = vmul.f32 %v793_v54, %v5995_v60  ;;  %v5998_v33 = vld [vmem:[#allocation14_spill] sm:$0xff] }
 0x3da   :  { %v1419_v52 = vrot.slane %v1418_v43, 2  ;;  %v2188_v39 = vadd.f32 %v2187_v9, %v2186_v10  ;;  %v856_v41 = vsel %vm842_vm10, %v833_v19, 0.0 }
 0x3db   :  { %v797_v6 = vpop.permute.xlu1 %796 }
 0x3dc   :  { %v1420_v57 = vadd.f32 %v1419_v52, %v1418_v43  ;;  %v2189_v13 = vrot.slane %v2188_v39, 1  ;;  %v783_v25 = vpop.permute.xlu0 %782  ;;  %v835_v10 = vmul.f32 %v797_v6, %v5997_v5  ;;  %v5999_v52 = vld [vmem:[#allocation17_spill] sm:$0xff]  ;;  %v6004_v6 = vld [vmem:[#allocation16_spill] sm:$0xff] }
 0x3dd   :  { %v828_v28 = vmul.f32 %v783_v25, %v5990_v29 }
 0x3de   :  { %v1421_v38 = vrot.slane %v1420_v57, 1  ;;  %v2190_v14 = vadd.f32 %v2189_v13, %v2188_v39  ;;  %v6000_v39 = vld [vmem:[#allocation46_spill] sm:$0xff] }
 0x3df   :  { %v846_v49 = vsel %vm842_vm10, %v828_v28, 0.0  ;;  %v801_v32 = vpop.permute.xlu1 %800  ;;  %v6002_v28 = vld [vmem:[#allocation11_spill] sm:$0xff] }
 0x3e0   :  { %v1422_v11 = vadd.f32 %v1421_v38, %v1420_v57  ;;  %v2196_v22 = vmul.f32 %v3425_v24, %v2190_v14  ;;  %v847_v47 = vadd.f32 %v846_v49, %v845_v56  ;;  %v787_v16 = vpop.permute.xlu0 %786  ;;  %v837_v54 = vmul.f32 %v801_v32, %v5999_v52 }
 0x3e1   :  { %v830_v1 = vmul.f32 %v787_v16, %v5993_v46 }
 0x3e2   :  { %v2197_v35 = vsel %vm2194_vm11, 0.0, %v2196_v22  ;;  %v849_v42 = vadd.f32 %v848_v58, %v847_v47  ;;  %v1423_v21 = vmul.f32 %v5592_v45, %v1422_v11  ;;  %v864_v55 = vsel %vm842_vm10, %v837_v54, 0.0 }
 0x3e3   :  { %v2874_v17 = vsub.f32 0.0, %v2197_v35  ;;  %v850_v0 = vsel %vm842_vm10, %v830_v1, 0.0  ;;  %v805_v12 = vpop.permute.xlu1 %804 }
 0x3e4   :  { %v851_v48 = vadd.f32 %v850_v0, %v849_v42  ;;  %v791_v61 = vpop.permute.xlu0 %790  ;;  %v1424_v30 = vsel %vm883_vm12, 0.0, %v1423_v21  ;;  %v839_v29 = vmul.f32 %v805_v12, %v6001_v37 }
 0x3e5   :  { %v2881_v26 = vadd.f32 %v2879_v34, %v2874_v17  ;;  %v832_v44 = vmul.f32 %v791_v61, %v5996_v18  ;;  %v2868_v8 = vmul.f32 10.0, %v1424_v30  ;;  %v860_v34 = vsel %vm842_vm10, %v835_v10, 0.0 }
 0x3e6   :  { %v853_v20 = vadd.f32 %v852_v23, %v851_v48  ;;  %v868_v50 = vsel %vm842_vm10, %v839_v29, 0.0 }
 0x3e7   :  { %v2883_v53 = vmul.f32 %v2882_v7, %v2881_v26  ;;  %v854_v3 = vsel %vm842_vm10, %v832_v44, 0.0  ;;  %2870 = vrot.lane.b32.xlu0 %v2868_v8, %s3484_s23  ;;  %v809_v14 = vpop.permute.xlu1 %808  ;;  %s3498_s23 = smov [#allocation6]  }
 0x3e8   :  { %v855_v4 = vadd.f32 %v854_v3, %v853_v20  ;;  %v795_v36 = vpop.permute.xlu0 %794  ;;  %v841_v22 = vmul.f32 %v809_v14, %v6003_v63  ;;  %s2902_s29 = sshll.u32 %s3498_s23, 4  ;;  %s2903_s29 = int_to_ptr.vmem [resolvable:$true] %s2902_s29 }
 0x3e9   :  { %v2885_v15 = vrot.slane %v2883_v53, 2  ;;  %v834_v40 = vmul.f32 %v795_v36, %v5998_v33  ;;  %s3457_s6 = scalar_lea.vmem %s2903_s29, 16  ;;  %p3462_p6 = scmp.lt.s32.totalorder %s2903_s29, %s2903_s29 }
 0x3ea   :  { %v857_v59 = vadd.f32 %v856_v41, %v855_v4  ;;  %v872_v46 = vsel %vm842_vm10, %v841_v22, 0.0  ;;  %p3458_p5 = scmp.ne.s32.totalorder %s2903_s29, %s3457_s6 }
 0x3eb   :  { %v858_v51 = vsel %vm842_vm10, %v834_v40, 0.0  ;;  %2886 = vrot.lane.b32.xlu1 %v2885_v15, %s3492_s7  ;;  %s3461_s7 = scalar_lea.vmem %s2903_s29, 32 }
 0x3ec   :  { %v859_v9 = vadd.f32 %v858_v51, %v857_v59  ;;  %v799_v43 = vpop.permute.xlu0 %798  ;;  %p3463_p7 = scmp.lt.s32.totalorder %s3461_s7, %s3457_s6 }
 0x3ed   :  { %v836_v2 = vmul.f32 %v799_v43, %v6000_v39 }
 0x3ee   :  { %v861_v27 = vadd.f32 %v860_v34, %v859_v9  ;;  %p3464_p8 = por %p3463_p7, %p3462_p6 }
 0x3ef   :  { %v862_v57 = vsel %vm842_vm10, %v836_v2, 0.0 }
 0x3f0   :  { %v863_v13 = vadd.f32 %v862_v57, %v861_v27  ;;  %v803_v25 = vpop.permute.xlu0 %802  ;;  %p3465_p9 = pnand %p3464_p8, %p3458_p5 }
 0x3f1   :  { %v838_v38 = vmul.f32 %v803_v25, %v6002_v28 }
 0x3f2   :  { %v865_v56 = vadd.f32 %v864_v55, %v863_v13 }
 0x3f3   :  { %v866_v24 = vsel %vm842_vm10, %v838_v38, 0.0 }
 0x3f4   :  { %v867_v49 = vadd.f32 %v866_v24, %v865_v56  ;;  %v807_v11 = vpop.permute.xlu0 %806 }
 0x3f5   :  { %v840_v47 = vmul.f32 %v807_v11, %v6004_v6 }
 0x3f6   :  { %v869_v16 = vadd.f32 %v868_v50, %v867_v49 }
 0x3f7   :  { %v870_v58 = vsel %vm842_vm10, %v840_v47, 0.0 }
 0x3f8   :  { %v871_v31 = vadd.f32 %v870_v58, %v869_v16 }
 0x3fa   :  { %v873_v1 = vadd.f32 %v872_v46, %v871_v31 }
 0x3fc   :  { %v874_v35 = vrot.slane %v873_v1, 4 }
 0x3fe   :  { %v875_v42 = vadd.f32 %v874_v35, %v873_v1 }
 0x400   :  { %v876_v21 = vrot.slane %v875_v42, 2 }
 0x402   :  { %v877_v17 = vadd.f32 %v876_v21, %v875_v42 }
 0x404   :  { %v878_v0 = vrot.slane %v877_v17, 1 }
 0x406   :  { %v879_v23 = vadd.f32 %v878_v0, %v877_v17 }
 0x408   :  { %v885_v7 = vmul.f32 %v5592_v45, %v879_v23 }
 0x40a   :  { %v886_v48 = vsel %vm883_vm12, 0.0, %v885_v7 }
 0x40b   :  { %v2867_v30 = vsub.f32 0.0, %v886_v48 }
 0x459   :  { %v2871_v61 = vpop.permute.xlu0 %2870 }
 0x45a   :  { %v2873_v60 = vadd.f32 %v2871_v61, %v2867_v30 }
 0x45d   :  { %v2887_v19 = vpop.permute.xlu1 %2886 }
 0x45e   :  { %v2889_v26 = vadd.f32 %v2887_v19, %v2873_v60 }
 0x460   :  { %2891 = vrot.lane.b32.xlu0 %v2889_v26, %s3489_s30 }
 0x4d2   :  { %v2892_v18 = vpop.permute.xlu0 %2891 }
 0x4d3   :  { %2895 = vst.msk [vmem:[#allocation6] sm:$0x1] %vm2894_vm3, %v2892_v18 }
 0x4d4   :  { %3468 = shalt.err (!%p3465_p9)
}
 0x4d5   :  { %s3469_s24 = scalar_lea.hbm %s5646_s4, 16 }
 0x4d6   :  { %p3470_p10 = scmp.ne.s32.totalorder %s5646_s4, %s3469_s24  ;;  %p3473_p11 = scmp.lt.u32.totalorder %s3469_s24, %s5646_s4 }
 0x4d8   :  { %p3475_p12 = pnand %p3473_p11, %p3470_p10 }
 0x4da   :  { %3478 = shalt.err (!%p3475_p12)
}
 0x4db   :  { %2905 = dma.vmem_to_hbm [thread:$0]  %s2903_s29, 16, %s5646_s4, [#allocation4]  }
 0x4dc   :  { %3481 = dma.done.wait [#allocation4], 16  }
 0x4dd   :  { %3482 = vsyncadd [#allocation4], 4294967280 }
 0x4de   :  { %2909 = vsyncpa [#allocation4], 1 }
 0x4df   :  { %2910 = vsyncpa [#allocation5], 1 }

</bundles_post_ra>
